<compile_context>
chip_gen: v7x
topology: tpu7x:2x2x1
jax: 0.10.0
libtpu: 0.0.40
codegen_flags: <defaults>
</compile_context>

<pallas_src>
import functools

import jax
import jax.numpy as jnp
import numpy as np
from jax.experimental import pallas as pl
from jax.experimental.pallas import tpu as pltpu

NEG_SLOPE = 0.1   # nn.LeakyReLU(0.1)
BN_EPS = 1e-5     # nn.BatchNorm2d default eps
PADL = 8          # sublane-aligned left pad for the in-kernel halo buffers


def _leaky(y):
    return jnp.where(y >= 0, y, y * NEG_SLOPE)


# ----------------------------------------------------------------------------
# Fused Block kernel (one batch element per grid step)
# ----------------------------------------------------------------------------
def _block_kernel(x_ref, w1_ref, w2_ref, w3_ref, wd_ref, bias_ref, o_ref,
                  pad_in, pad_c, y_scr, yh_scr, *, H, W, use_relu):
    """Fused ResNet-12 Block forward.

    x_ref : (1, H, W, Cin)          input tile
    w*_ref: (3, 3, Cin|Cm, Cm)      BN-scale-folded conv weights (HWIO)
    wd_ref: (Cin, Cm)               BN-scale-folded 1x1 downsample weight
    bias_ref: (4, Cm)               folded BN biases [b1, b2, b3, bd]
    o_ref : (1, H//2, W//2, Cm)     pooled output tile
    pad_in: (H+2, W+2*PADL, Cin)    halo scratch (conv1 input)
    pad_c : (H+2, W+2*PADL, Cm)     halo scratch (conv2/conv3 input)
    y_scr : (H, W, Cm)              pre-pool activation scratch
    yh_scr: (H//2, W, Cm)           row-pooled intermediate scratch
    """
    Cin = x_ref.shape[-1]
    Cm = o_ref.shape[-1]

    def conv3x3(pad_ref, w_ref, cin):
        # 9 shifted-window MXU matmuls accumulated into a single f32 value.
        acc = jnp.zeros((H * W, Cm), jnp.float32)
        for dy in range(3):
            for dx in range(3):
                c0 = PADL - 1 + dx
                patch = pad_ref[dy:dy + H, c0:c0 + W, :]
                acc = acc + jnp.dot(patch.reshape(H * W, cin), w_ref[dy, dx],
                                    preferred_element_type=jnp.float32)
        return acc

    # Zero the halo buffers every step (borders must be 0; interiors get
    # overwritten). Cheap VMEM-only writes.
    pad_in[...] = jnp.zeros_like(pad_in)
    pad_c[...] = jnp.zeros_like(pad_c)

    x = x_ref[0].astype(jnp.float32)                       # (H, W, Cin)
    pad_in[1:H + 1, PADL:PADL + W, :] = x

    # conv1 + bn1 + LeakyReLU
    h = _leaky(conv3x3(pad_in, w1_ref, Cin) + bias_ref[0:1, :])
    pad_c[1:H + 1, PADL:PADL + W, :] = h.reshape(H, W, Cm)

    # conv2 + bn2 + LeakyReLU
    h = _leaky(conv3x3(pad_c, w2_ref, Cm) + bias_ref[1:2, :])
    pad_c[1:H + 1, PADL:PADL + W, :] = h.reshape(H, W, Cm)

    # conv3 + bn3, fused with the 1x1-conv+bn downsample branch + residual add
    y = conv3x3(pad_c, w3_ref, Cm) + bias_ref[2:3, :]
    y = y + jnp.dot(x.reshape(H * W, Cin), wd_ref[...],
                    preferred_element_type=jnp.float32) + bias_ref[3:4, :]
    if use_relu:
        y = _leaky(y)

    # 2x2 max-pool, stride 2 (strided selection via VMEM scratch reads).
    y_scr[...] = y.reshape(H, W, Cm)
    yh_scr[...] = jnp.maximum(y_scr[pl.ds(0, H // 2, stride=2)],
                              y_scr[pl.ds(1, H // 2, stride=2)])
    pooled = jnp.maximum(yh_scr[:, pl.ds(0, W // 2, stride=2), :],
                         yh_scr[:, pl.ds(1, W // 2, stride=2), :])
    o_ref[...] = pooled[None].astype(o_ref.dtype)


# ----------------------------------------------------------------------------
# Wrapper
# ----------------------------------------------------------------------------
def fold_bn(gamma, beta, mean, var):
    scale = gamma / jnp.sqrt(var + BN_EPS)
    bias = beta - mean * scale
    return scale, bias


def block_forward(x_nchw, params, use_relu=True):
    x = jnp.transpose(x_nchw, (0, 2, 3, 1)).astype(jnp.float32)  # NCHW -> NHWC
    N, H, W, Cin = x.shape
    Cm = params["w1"].shape[-1]
    assert H % 2 == 0 and W % 2 == 0, "MaxPool2d(2) needs even H, W"

    s1, b1 = fold_bn(*params["bn1"])
    s2, b2 = fold_bn(*params["bn2"])
    s3, b3 = fold_bn(*params["bn3"])
    sd, bd = fold_bn(*params["bnd"])
    # Fold eval-mode BN scale into the conv weights; only a bias remains.
    w1 = (params["w1"] * s1).astype(jnp.float32)
    w2 = (params["w2"] * s2).astype(jnp.float32)
    w3 = (params["w3"] * s3).astype(jnp.float32)
    wd = (params["wd"] * sd).astype(jnp.float32)
    bias = jnp.stack([b1, b2, b3, bd]).astype(jnp.float32)       # (4, Cm)

    Wp = W + 2 * PADL
    scratch = [
        pltpu.VMEM((H + 2, Wp, Cin), jnp.float32),    # padded conv1 input
        pltpu.VMEM((H + 2, Wp, Cm), jnp.float32),     # padded conv2/3 input
        pltpu.VMEM((H, W, Cm), jnp.float32),          # pre-pool activation
        pltpu.VMEM((H // 2, W, Cm), jnp.float32),     # row-pooled intermediate
    ]

    # Explicit VMEM budget (double-buffered blocks + weights + scratch + slack),
    # clamped so it is valid on v7x's 64 MiB/TC.
    f32b = 4
    block_bytes = (H * W * Cin + (H // 2) * (W // 2) * Cm
                   + 9 * (Cin + 2 * Cm) * Cm + Cin * Cm + 4 * Cm) * f32b
    scratch_bytes = ((H + 2) * Wp * (Cin + Cm)
                     + H * W * Cm + (H // 2) * W * Cm) * f32b
    vmem_limit = int(min(max(2 * block_bytes + scratch_bytes + (1 << 20),
                             16 * 1024 * 1024), 60 * 1024 * 1024))

    kern = functools.partial(_block_kernel, H=H, W=W, use_relu=use_relu)
    out = pl.pallas_call(
        kern,
        out_shape=jax.ShapeDtypeStruct((N, H // 2, W // 2, Cm), jnp.float32),
        grid=(N,),
        in_specs=[
            pl.BlockSpec((1, H, W, Cin), lambda n: (n, 0, 0, 0)),
            pl.BlockSpec((3, 3, Cin, Cm), lambda n: (0, 0, 0, 0)),
            pl.BlockSpec((3, 3, Cm, Cm), lambda n: (0, 0, 0, 0)),
            pl.BlockSpec((3, 3, Cm, Cm), lambda n: (0, 0, 0, 0)),
            pl.BlockSpec((Cin, Cm), lambda n: (0, 0)),
            pl.BlockSpec((4, Cm), lambda n: (0, 0)),
        ],
        out_specs=pl.BlockSpec((1, H // 2, W // 2, Cm), lambda n: (n, 0, 0, 0)),
        scratch_shapes=scratch,
        compiler_params=pltpu.CompilerParams(
            dimension_semantics=("parallel",),
            vmem_limit_bytes=vmem_limit),
    )(x, w1, w2, w3, wd, bias)
    return jnp.transpose(out, (0, 3, 1, 2))  # NHWC -> NCHW


# ----------------------------------------------------------------------------
# Pure-JAX reference
# ----------------------------------------------------------------------------
def block_forward_ref(x_nchw, params, use_relu=True):
    x = jnp.transpose(x_nchw, (0, 2, 3, 1)).astype(jnp.float32)

    def conv3(inp, w):
        return jax.lax.conv_general_dilated(
            inp, w, (1, 1), "SAME", dimension_numbers=("NHWC", "HWIO", "NHWC"))

    s1, b1 = fold_bn(*params["bn1"])
    s2, b2 = fold_bn(*params["bn2"])
    s3, b3 = fold_bn(*params["bn3"])
    sd, bd = fold_bn(*params["bnd"])
    out = _leaky(conv3(x, params["w1"]) * s1 + b1)
    out = _leaky(conv3(out, params["w2"]) * s2 + b2)
    out = conv3(out, params["w3"]) * s3 + b3
    identity = jnp.einsum("nhwc,cd->nhwd", x, params["wd"]) * sd + bd
    y = out + identity
    if use_relu:
        y = _leaky(y)
    N, H, W, C = y.shape
    y = y.reshape(N, H // 2, 2, W // 2, 2, C).max(axis=(2, 4))
    return jnp.transpose(y, (0, 3, 1, 2))


def init_params(key, inplanes, planes):
    ks = jax.random.split(key, 8)

    def bn(k):
        k1, k2, k3, k4 = jax.random.split(k, 4)
        gamma = 1.0 + 0.1 * jax.random.normal(k1, (planes,), jnp.float32)
        beta = 0.1 * jax.random.normal(k2, (planes,), jnp.float32)
        mean = 0.1 * jax.random.normal(k3, (planes,), jnp.float32)
        var = jax.random.uniform(k4, (planes,), jnp.float32, 0.5, 1.5)
        return gamma, beta, mean, var

    return {
        "w1": 0.2 * jax.random.normal(ks[0], (3, 3, inplanes, planes), jnp.float32),
        "w2": 0.2 * jax.random.normal(ks[1], (3, 3, planes, planes), jnp.float32),
        "w3": 0.2 * jax.random.normal(ks[2], (3, 3, planes, planes), jnp.float32),
        "wd": 0.2 * jax.random.normal(ks[3], (inplanes, planes), jnp.float32),
        "bn1": bn(ks[4]),
        "bn2": bn(ks[5]),
        "bn3": bn(ks[6]),
        "bnd": bn(ks[7]),
    }


if __name__ == "__main__":
    key = jax.random.PRNGKey(0)
    kx, kp = jax.random.split(key)
    N, inplanes, planes, H, W = 2, 4, 8, 16, 16

    x = jax.random.normal(kx, (N, inplanes, H, W), jnp.float32)  # NCHW
    params = init_params(kp, inplanes, planes)

    out = block_forward(x, params, use_relu=True)
    out = jax.block_until_ready(out)
    assert out.shape == (N, planes, H // 2, W // 2), out.shape

    ref = block_forward_ref(x, params, use_relu=True)
    np.testing.assert_allclose(np.asarray(out), np.asarray(ref),
                               rtol=1e-4, atol=1e-4)
    print("KERNEL_OK")
</pallas_src>

<mosaic_0001>
module attributes {stable_mosaic.version = 11 : i64} {
  func.func @_block_kernel(%arg0: i32, %arg1: memref<1x16x16x4xf32, #tpu.memory_space<vmem>>, %arg2: memref<3x3x4x8xf32, #tpu.memory_space<vmem>>, %arg3: memref<3x3x8x8xf32, #tpu.memory_space<vmem>>, %arg4: memref<3x3x8x8xf32, #tpu.memory_space<vmem>>, %arg5: memref<4x8xf32, #tpu.memory_space<vmem>>, %arg6: memref<4x8xf32, #tpu.memory_space<vmem>>, %arg7: memref<1x8x8x8xf32, #tpu.memory_space<vmem>>, %arg8: memref<18x32x4xf32, #tpu.memory_space<vmem>>, %arg9: memref<18x32x8xf32, #tpu.memory_space<vmem>>, %arg10: memref<16x16x8xf32, #tpu.memory_space<vmem>>, %arg11: memref<8x16x8xf32, #tpu.memory_space<vmem>>) attributes {dimension_semantics = [#tpu.dimension_semantics<parallel>], iteration_bounds = array<i64: 2>, scalar_prefetch = 0 : i64, scratch_operands = 4 : i64, tpu.core_type = #tpu.core_type<tc>, window_params = [{transform_indices = @transform_0, window_bounds = array<i64: 1, 16, 16, 4>}, {pipeline_mode = #tpu.pipeline_mode<synchronous>, transform_indices = @transform_1, window_bounds = array<i64: 3, 3, 4, 8>}, {pipeline_mode = #tpu.pipeline_mode<synchronous>, transform_indices = @transform_2, window_bounds = array<i64: 3, 3, 8, 8>}, {pipeline_mode = #tpu.pipeline_mode<synchronous>, transform_indices = @transform_3, window_bounds = array<i64: 3, 3, 8, 8>}, {pipeline_mode = #tpu.pipeline_mode<synchronous>, transform_indices = @transform_4, window_bounds = array<i64: 4, 8>}, {pipeline_mode = #tpu.pipeline_mode<synchronous>, transform_indices = @transform_5, window_bounds = array<i64: 4, 8>}, {transform_indices = @transform_6, window_bounds = array<i64: 1, 8, 8, 8>}]} {
    %cst = arith.constant 0.000000e+00 : f32
    %0 = vector.broadcast %cst : f32 to vector<18x32x4xf32>
    %c0 = arith.constant 0 : index
    %c0_0 = arith.constant 0 : index
    %c0_1 = arith.constant 0 : index
    %1 = vector.load %arg8[%c0, %c0_0, %c0_1] : memref<18x32x4xf32, #tpu.memory_space<vmem>>, vector<18x32x4xf32>
    tpu.vector_store %arg8[%c0, %c0_0, %c0_1], %0 {strides = array<i32>} : memref<18x32x4xf32, #tpu.memory_space<vmem>>, vector<18x32x4xf32>,
    %cst_2 = arith.constant 0.000000e+00 : f32
    %2 = vector.broadcast %cst_2 : f32 to vector<18x32x8xf32>
    %c0_3 = arith.constant 0 : index
    %c0_4 = arith.constant 0 : index
    %c0_5 = arith.constant 0 : index
    %3 = vector.load %arg9[%c0_3, %c0_4, %c0_5] : memref<18x32x8xf32, #tpu.memory_space<vmem>>, vector<18x32x8xf32>
    tpu.vector_store %arg9[%c0_3, %c0_4, %c0_5], %2 {strides = array<i32>} : memref<18x32x8xf32, #tpu.memory_space<vmem>>, vector<18x32x8xf32>,
    %c0_6 = arith.constant 0 : index
    %c0_7 = arith.constant 0 : index
    %c0_8 = arith.constant 0 : index
    %c0_9 = arith.constant 0 : index
    %4 = vector.load %arg1[%c0_6, %c0_7, %c0_8, %c0_9] : memref<1x16x16x4xf32, #tpu.memory_space<vmem>>, vector<1x16x16x4xf32>
    %5 = vector.shape_cast %4 : vector<1x16x16x4xf32> to vector<16x16x4xf32>
    %c1 = arith.constant 1 : index
    %c8 = arith.constant 8 : index
    %c0_10 = arith.constant 0 : index
    %6 = vector.load %arg8[%c1, %c8, %c0_10] : memref<18x32x4xf32, #tpu.memory_space<vmem>>, vector<16x16x4xf32>
    tpu.vector_store %arg8[%c1, %c8, %c0_10], %5 {strides = array<i32>} : memref<18x32x4xf32, #tpu.memory_space<vmem>>, vector<16x16x4xf32>,
    %cst_11 = arith.constant 0.000000e+00 : f32
    %7 = vector.broadcast %cst_11 : f32 to vector<256x8xf32>
    %c0_12 = arith.constant 0 : index
    %c7 = arith.constant 7 : index
    %c0_13 = arith.constant 0 : index
    %8 = vector.load %arg8[%c0_12, %c7, %c0_13] : memref<18x32x4xf32, #tpu.memory_space<vmem>>, vector<16x16x4xf32>
    %9 = vector.shape_cast %8 : vector<16x16x4xf32> to vector<256x4xf32>
    %c0_14 = arith.constant 0 : index
    %c0_15 = arith.constant 0 : index
    %c0_16 = arith.constant 0 : index
    %c0_17 = arith.constant 0 : index
    %10 = vector.load %arg2[%c0_14, %c0_15, %c0_16, %c0_17] : memref<3x3x4x8xf32, #tpu.memory_space<vmem>>, vector<1x1x4x8xf32>
    %11 = vector.shape_cast %10 : vector<1x1x4x8xf32> to vector<4x8xf32>
    %cst_18 = arith.constant dense<0.000000e+00> : vector<256x8xf32>
    %12 = tpu.matmul %9, %11, %cst_18 {dimension_numbers = #tpu.dot_dimension_numbers<[1], [0], [0], [1], [0, 0, 1, 1], [], []>} : vector<256x4xf32>, vector<4x8xf32>, vector<256x8xf32> -> vector<256x8xf32>
    %13 = arith.addf %7, %12 : vector<256x8xf32>
    %c0_19 = arith.constant 0 : index
    %c8_20 = arith.constant 8 : index
    %c0_21 = arith.constant 0 : index
    %14 = vector.load %arg8[%c0_19, %c8_20, %c0_21] : memref<18x32x4xf32, #tpu.memory_space<vmem>>, vector<16x16x4xf32>
    %15 = vector.shape_cast %14 : vector<16x16x4xf32> to vector<256x4xf32>
    %c0_22 = arith.constant 0 : index
    %c1_23 = arith.constant 1 : index
    %c0_24 = arith.constant 0 : index
    %c0_25 = arith.constant 0 : index
    %16 = vector.load %arg2[%c0_22, %c1_23, %c0_24, %c0_25] : memref<3x3x4x8xf32, #tpu.memory_space<vmem>>, vector<1x1x4x8xf32>
    %17 = vector.shape_cast %16 : vector<1x1x4x8xf32> to vector<4x8xf32>
    %cst_26 = arith.constant dense<0.000000e+00> : vector<256x8xf32>
    %18 = tpu.matmul %15, %17, %cst_26 {dimension_numbers = #tpu.dot_dimension_numbers<[1], [0], [0], [1], [0, 0, 1, 1], [], []>} : vector<256x4xf32>, vector<4x8xf32>, vector<256x8xf32> -> vector<256x8xf32>
    %19 = arith.addf %13, %18 : vector<256x8xf32>
    %c0_27 = arith.constant 0 : index
    %c9 = arith.constant 9 : index
    %c0_28 = arith.constant 0 : index
    %20 = vector.load %arg8[%c0_27, %c9, %c0_28] : memref<18x32x4xf32, #tpu.memory_space<vmem>>, vector<16x16x4xf32>
    %21 = vector.shape_cast %20 : vector<16x16x4xf32> to vector<256x4xf32>
    %c0_29 = arith.constant 0 : index
    %c2 = arith.constant 2 : index
    %c0_30 = arith.constant 0 : index
    %c0_31 = arith.constant 0 : index
    %22 = vector.load %arg2[%c0_29, %c2, %c0_30, %c0_31] : memref<3x3x4x8xf32, #tpu.memory_space<vmem>>, vector<1x1x4x8xf32>
    %23 = vector.shape_cast %22 : vector<1x1x4x8xf32> to vector<4x8xf32>
    %cst_32 = arith.constant dense<0.000000e+00> : vector<256x8xf32>
    %24 = tpu.matmul %21, %23, %cst_32 {dimension_numbers = #tpu.dot_dimension_numbers<[1], [0], [0], [1], [0, 0, 1, 1], [], []>} : vector<256x4xf32>, vector<4x8xf32>, vector<256x8xf32> -> vector<256x8xf32>
    %25 = arith.addf %19, %24 : vector<256x8xf32>
    %c1_33 = arith.constant 1 : index
    %c7_34 = arith.constant 7 : index
    %c0_35 = arith.constant 0 : index
    %26 = vector.load %arg8[%c1_33, %c7_34, %c0_35] : memref<18x32x4xf32, #tpu.memory_space<vmem>>, vector<16x16x4xf32>
    %27 = vector.shape_cast %26 : vector<16x16x4xf32> to vector<256x4xf32>
    %c1_36 = arith.constant 1 : index
    %c0_37 = arith.constant 0 : index
    %c0_38 = arith.constant 0 : index
    %c0_39 = arith.constant 0 : index
    %28 = vector.load %arg2[%c1_36, %c0_37, %c0_38, %c0_39] : memref<3x3x4x8xf32, #tpu.memory_space<vmem>>, vector<1x1x4x8xf32>
    %29 = vector.shape_cast %28 : vector<1x1x4x8xf32> to vector<4x8xf32>
    %cst_40 = arith.constant dense<0.000000e+00> : vector<256x8xf32>
    %30 = tpu.matmul %27, %29, %cst_40 {dimension_numbers = #tpu.dot_dimension_numbers<[1], [0], [0], [1], [0, 0, 1, 1], [], []>} : vector<256x4xf32>, vector<4x8xf32>, vector<256x8xf32> -> vector<256x8xf32>
    %31 = arith.addf %25, %30 : vector<256x8xf32>
    %c1_41 = arith.constant 1 : index
    %c8_42 = arith.constant 8 : index
    %c0_43 = arith.constant 0 : index
    %32 = vector.load %arg8[%c1_41, %c8_42, %c0_43] : memref<18x32x4xf32, #tpu.memory_space<vmem>>, vector<16x16x4xf32>
    %33 = vector.shape_cast %32 : vector<16x16x4xf32> to vector<256x4xf32>
    %c1_44 = arith.constant 1 : index
    %c1_45 = arith.constant 1 : index
    %c0_46 = arith.constant 0 : index
    %c0_47 = arith.constant 0 : index
    %34 = vector.load %arg2[%c1_44, %c1_45, %c0_46, %c0_47] : memref<3x3x4x8xf32, #tpu.memory_space<vmem>>, vector<1x1x4x8xf32>
    %35 = vector.shape_cast %34 : vector<1x1x4x8xf32> to vector<4x8xf32>
    %cst_48 = arith.constant dense<0.000000e+00> : vector<256x8xf32>
    %36 = tpu.matmul %33, %35, %cst_48 {dimension_numbers = #tpu.dot_dimension_numbers<[1], [0], [0], [1], [0, 0, 1, 1], [], []>} : vector<256x4xf32>, vector<4x8xf32>, vector<256x8xf32> -> vector<256x8xf32>
    %37 = arith.addf %31, %36 : vector<256x8xf32>
    %c1_49 = arith.constant 1 : index
    %c9_50 = arith.constant 9 : index
    %c0_51 = arith.constant 0 : index
    %38 = vector.load %arg8[%c1_49, %c9_50, %c0_51] : memref<18x32x4xf32, #tpu.memory_space<vmem>>, vector<16x16x4xf32>
    %39 = vector.shape_cast %38 : vector<16x16x4xf32> to vector<256x4xf32>
    %c1_52 = arith.constant 1 : index
    %c2_53 = arith.constant 2 : index
    %c0_54 = arith.constant 0 : index
    %c0_55 = arith.constant 0 : index
    %40 = vector.load %arg2[%c1_52, %c2_53, %c0_54, %c0_55] : memref<3x3x4x8xf32, #tpu.memory_space<vmem>>, vector<1x1x4x8xf32>
    %41 = vector.shape_cast %40 : vector<1x1x4x8xf32> to vector<4x8xf32>
    %cst_56 = arith.constant dense<0.000000e+00> : vector<256x8xf32>
    %42 = tpu.matmul %39, %41, %cst_56 {dimension_numbers = #tpu.dot_dimension_numbers<[1], [0], [0], [1], [0, 0, 1, 1], [], []>} : vector<256x4xf32>, vector<4x8xf32>, vector<256x8xf32> -> vector<256x8xf32>
    %43 = arith.addf %37, %42 : vector<256x8xf32>
    %c2_57 = arith.constant 2 : index
    %c7_58 = arith.constant 7 : index
    %c0_59 = arith.constant 0 : index
    %44 = vector.load %arg8[%c2_57, %c7_58, %c0_59] : memref<18x32x4xf32, #tpu.memory_space<vmem>>, vector<16x16x4xf32>
    %45 = vector.shape_cast %44 : vector<16x16x4xf32> to vector<256x4xf32>
    %c2_60 = arith.constant 2 : index
    %c0_61 = arith.constant 0 : index
    %c0_62 = arith.constant 0 : index
    %c0_63 = arith.constant 0 : index
    %46 = vector.load %arg2[%c2_60, %c0_61, %c0_62, %c0_63] : memref<3x3x4x8xf32, #tpu.memory_space<vmem>>, vector<1x1x4x8xf32>
    %47 = vector.shape_cast %46 : vector<1x1x4x8xf32> to vector<4x8xf32>
    %cst_64 = arith.constant dense<0.000000e+00> : vector<256x8xf32>
    %48 = tpu.matmul %45, %47, %cst_64 {dimension_numbers = #tpu.dot_dimension_numbers<[1], [0], [0], [1], [0, 0, 1, 1], [], []>} : vector<256x4xf32>, vector<4x8xf32>, vector<256x8xf32> -> vector<256x8xf32>
    %49 = arith.addf %43, %48 : vector<256x8xf32>
    %c2_65 = arith.constant 2 : index
    %c8_66 = arith.constant 8 : index
    %c0_67 = arith.constant 0 : index
    %50 = vector.load %arg8[%c2_65, %c8_66, %c0_67] : memref<18x32x4xf32, #tpu.memory_space<vmem>>, vector<16x16x4xf32>
    %51 = vector.shape_cast %50 : vector<16x16x4xf32> to vector<256x4xf32>
    %c2_68 = arith.constant 2 : index
    %c1_69 = arith.constant 1 : index
    %c0_70 = arith.constant 0 : index
    %c0_71 = arith.constant 0 : index
    %52 = vector.load %arg2[%c2_68, %c1_69, %c0_70, %c0_71] : memref<3x3x4x8xf32, #tpu.memory_space<vmem>>, vector<1x1x4x8xf32>
    %53 = vector.shape_cast %52 : vector<1x1x4x8xf32> to vector<4x8xf32>
    %cst_72 = arith.constant dense<0.000000e+00> : vector<256x8xf32>
    %54 = tpu.matmul %51, %53, %cst_72 {dimension_numbers = #tpu.dot_dimension_numbers<[1], [0], [0], [1], [0, 0, 1, 1], [], []>} : vector<256x4xf32>, vector<4x8xf32>, vector<256x8xf32> -> vector<256x8xf32>
    %55 = arith.addf %49, %54 : vector<256x8xf32>
    %c2_73 = arith.constant 2 : index
    %c9_74 = arith.constant 9 : index
    %c0_75 = arith.constant 0 : index
    %56 = vector.load %arg8[%c2_73, %c9_74, %c0_75] : memref<18x32x4xf32, #tpu.memory_space<vmem>>, vector<16x16x4xf32>
    %57 = vector.shape_cast %56 : vector<16x16x4xf32> to vector<256x4xf32>
    %c2_76 = arith.constant 2 : index
    %c2_77 = arith.constant 2 : index
    %c0_78 = arith.constant 0 : index
    %c0_79 = arith.constant 0 : index
    %58 = vector.load %arg2[%c2_76, %c2_77, %c0_78, %c0_79] : memref<3x3x4x8xf32, #tpu.memory_space<vmem>>, vector<1x1x4x8xf32>
    %59 = vector.shape_cast %58 : vector<1x1x4x8xf32> to vector<4x8xf32>
    %cst_80 = arith.constant dense<0.000000e+00> : vector<256x8xf32>
    %60 = tpu.matmul %57, %59, %cst_80 {dimension_numbers = #tpu.dot_dimension_numbers<[1], [0], [0], [1], [0, 0, 1, 1], [], []>} : vector<256x4xf32>, vector<4x8xf32>, vector<256x8xf32> -> vector<256x8xf32>
    %61 = arith.addf %55, %60 : vector<256x8xf32>
    %c0_81 = arith.constant 0 : index
    %c0_82 = arith.constant 0 : index
    %62 = vector.load %arg6[%c0_81, %c0_82] : memref<4x8xf32, #tpu.memory_space<vmem>>, vector<1x8xf32>
    %63 = vector.broadcast %62 : vector<1x8xf32> to vector<256x8xf32>
    %64 = arith.addf %61, %63 : vector<256x8xf32>
    %cst_83 = arith.constant 0.000000e+00 : f32
    %65 = vector.broadcast %cst_83 : f32 to vector<256x8xf32>
    %66 = arith.cmpf oge, %64, %65 : vector<256x8xf32>
    %cst_84 = arith.constant 1.000000e-01 : f32
    %67 = vector.broadcast %cst_84 : f32 to vector<256x8xf32>
    %68 = arith.mulf %64, %67 : vector<256x8xf32>
    %69 = arith.select %66, %64, %68 : vector<256x8xi1>, vector<256x8xf32>
    %70 = vector.shape_cast %69 : vector<256x8xf32> to vector<16x16x8xf32>
    %c1_85 = arith.constant 1 : index
    %c8_86 = arith.constant 8 : index
    %c0_87 = arith.constant 0 : index
    %71 = vector.load %arg9[%c1_85, %c8_86, %c0_87] : memref<18x32x8xf32, #tpu.memory_space<vmem>>, vector<16x16x8xf32>
    tpu.vector_store %arg9[%c1_85, %c8_86, %c0_87], %70 {strides = array<i32>} : memref<18x32x8xf32, #tpu.memory_space<vmem>>, vector<16x16x8xf32>,
    %cst_88 = arith.constant 0.000000e+00 : f32
    %72 = vector.broadcast %cst_88 : f32 to vector<256x8xf32>
    %c0_89 = arith.constant 0 : index
    %c7_90 = arith.constant 7 : index
    %c0_91 = arith.constant 0 : index
    %73 = vector.load %arg9[%c0_89, %c7_90, %c0_91] : memref<18x32x8xf32, #tpu.memory_space<vmem>>, vector<16x16x8xf32>
    %74 = vector.shape_cast %73 : vector<16x16x8xf32> to vector<256x8xf32>
    %c0_92 = arith.constant 0 : index
    %c0_93 = arith.constant 0 : index
    %c0_94 = arith.constant 0 : index
    %c0_95 = arith.constant 0 : index
    %75 = vector.load %arg3[%c0_92, %c0_93, %c0_94, %c0_95] : memref<3x3x8x8xf32, #tpu.memory_space<vmem>>, vector<1x1x8x8xf32>
    %76 = vector.shape_cast %75 : vector<1x1x8x8xf32> to vector<8x8xf32>
    %cst_96 = arith.constant dense<0.000000e+00> : vector<256x8xf32>
    %77 = tpu.matmul %74, %76, %cst_96 {dimension_numbers = #tpu.dot_dimension_numbers<[1], [0], [0], [1], [0, 0, 1, 1], [], []>} : vector<256x8xf32>, vector<8x8xf32>, vector<256x8xf32> -> vector<256x8xf32>
    %78 = arith.addf %72, %77 : vector<256x8xf32>
    %c0_97 = arith.constant 0 : index
    %c8_98 = arith.constant 8 : index
    %c0_99 = arith.constant 0 : index
    %79 = vector.load %arg9[%c0_97, %c8_98, %c0_99] : memref<18x32x8xf32, #tpu.memory_space<vmem>>, vector<16x16x8xf32>
    %80 = vector.shape_cast %79 : vector<16x16x8xf32> to vector<256x8xf32>
    %c0_100 = arith.constant 0 : index
    %c1_101 = arith.constant 1 : index
    %c0_102 = arith.constant 0 : index
    %c0_103 = arith.constant 0 : index
    %81 = vector.load %arg3[%c0_100, %c1_101, %c0_102, %c0_103] : memref<3x3x8x8xf32, #tpu.memory_space<vmem>>, vector<1x1x8x8xf32>
    %82 = vector.shape_cast %81 : vector<1x1x8x8xf32> to vector<8x8xf32>
    %cst_104 = arith.constant dense<0.000000e+00> : vector<256x8xf32>
    %83 = tpu.matmul %80, %82, %cst_104 {dimension_numbers = #tpu.dot_dimension_numbers<[1], [0], [0], [1], [0, 0, 1, 1], [], []>} : vector<256x8xf32>, vector<8x8xf32>, vector<256x8xf32> -> vector<256x8xf32>
    %84 = arith.addf %78, %83 : vector<256x8xf32>
    %c0_105 = arith.constant 0 : index
    %c9_106 = arith.constant 9 : index
    %c0_107 = arith.constant 0 : index
    %85 = vector.load %arg9[%c0_105, %c9_106, %c0_107] : memref<18x32x8xf32, #tpu.memory_space<vmem>>, vector<16x16x8xf32>
    %86 = vector.shape_cast %85 : vector<16x16x8xf32> to vector<256x8xf32>
    %c0_108 = arith.constant 0 : index
    %c2_109 = arith.constant 2 : index
    %c0_110 = arith.constant 0 : index
    %c0_111 = arith.constant 0 : index
    %87 = vector.load %arg3[%c0_108, %c2_109, %c0_110, %c0_111] : memref<3x3x8x8xf32, #tpu.memory_space<vmem>>, vector<1x1x8x8xf32>
    %88 = vector.shape_cast %87 : vector<1x1x8x8xf32> to vector<8x8xf32>
    %cst_112 = arith.constant dense<0.000000e+00> : vector<256x8xf32>
    %89 = tpu.matmul %86, %88, %cst_112 {dimension_numbers = #tpu.dot_dimension_numbers<[1], [0], [0], [1], [0, 0, 1, 1], [], []>} : vector<256x8xf32>, vector<8x8xf32>, vector<256x8xf32> -> vector<256x8xf32>
    %90 = arith.addf %84, %89 : vector<256x8xf32>
    %c1_113 = arith.constant 1 : index
    %c7_114 = arith.constant 7 : index
    %c0_115 = arith.constant 0 : index
    %91 = vector.load %arg9[%c1_113, %c7_114, %c0_115] : memref<18x32x8xf32, #tpu.memory_space<vmem>>, vector<16x16x8xf32>
    %92 = vector.shape_cast %91 : vector<16x16x8xf32> to vector<256x8xf32>
    %c1_116 = arith.constant 1 : index
    %c0_117 = arith.constant 0 : index
    %c0_118 = arith.constant 0 : index
    %c0_119 = arith.constant 0 : index
    %93 = vector.load %arg3[%c1_116, %c0_117, %c0_118, %c0_119] : memref<3x3x8x8xf32, #tpu.memory_space<vmem>>, vector<1x1x8x8xf32>
    %94 = vector.shape_cast %93 : vector<1x1x8x8xf32> to vector<8x8xf32>
    %cst_120 = arith.constant dense<0.000000e+00> : vector<256x8xf32>
    %95 = tpu.matmul %92, %94, %cst_120 {dimension_numbers = #tpu.dot_dimension_numbers<[1], [0], [0], [1], [0, 0, 1, 1], [], []>} : vector<256x8xf32>, vector<8x8xf32>, vector<256x8xf32> -> vector<256x8xf32>
    %96 = arith.addf %90, %95 : vector<256x8xf32>
    %c1_121 = arith.constant 1 : index
    %c8_122 = arith.constant 8 : index
    %c0_123 = arith.constant 0 : index
    %97 = vector.load %arg9[%c1_121, %c8_122, %c0_123] : memref<18x32x8xf32, #tpu.memory_space<vmem>>, vector<16x16x8xf32>
    %98 = vector.shape_cast %97 : vector<16x16x8xf32> to vector<256x8xf32>
    %c1_124 = arith.constant 1 : index
    %c1_125 = arith.constant 1 : index
    %c0_126 = arith.constant 0 : index
    %c0_127 = arith.constant 0 : index
    %99 = vector.load %arg3[%c1_124, %c1_125, %c0_126, %c0_127] : memref<3x3x8x8xf32, #tpu.memory_space<vmem>>, vector<1x1x8x8xf32>
    %100 = vector.shape_cast %99 : vector<1x1x8x8xf32> to vector<8x8xf32>
    %cst_128 = arith.constant dense<0.000000e+00> : vector<256x8xf32>
    %101 = tpu.matmul %98, %100, %cst_128 {dimension_numbers = #tpu.dot_dimension_numbers<[1], [0], [0], [1], [0, 0, 1, 1], [], []>} : vector<256x8xf32>, vector<8x8xf32>, vector<256x8xf32> -> vector<256x8xf32>
    %102 = arith.addf %96, %101 : vector<256x8xf32>
    %c1_129 = arith.constant 1 : index
    %c9_130 = arith.constant 9 : index
    %c0_131 = arith.constant 0 : index
    %103 = vector.load %arg9[%c1_129, %c9_130, %c0_131] : memref<18x32x8xf32, #tpu.memory_space<vmem>>, vector<16x16x8xf32>
    %104 = vector.shape_cast %103 : vector<16x16x8xf32> to vector<256x8xf32>
    %c1_132 = arith.constant 1 : index
    %c2_133 = arith.constant 2 : index
    %c0_134 = arith.constant 0 : index
    %c0_135 = arith.constant 0 : index
    %105 = vector.load %arg3[%c1_132, %c2_133, %c0_134, %c0_135] : memref<3x3x8x8xf32, #tpu.memory_space<vmem>>, vector<1x1x8x8xf32>
    %106 = vector.shape_cast %105 : vector<1x1x8x8xf32> to vector<8x8xf32>
    %cst_136 = arith.constant dense<0.000000e+00> : vector<256x8xf32>
    %107 = tpu.matmul %104, %106, %cst_136 {dimension_numbers = #tpu.dot_dimension_numbers<[1], [0], [0], [1], [0, 0, 1, 1], [], []>} : vector<256x8xf32>, vector<8x8xf32>, vector<256x8xf32> -> vector<256x8xf32>
    %108 = arith.addf %102, %107 : vector<256x8xf32>
    %c2_137 = arith.constant 2 : index
    %c7_138 = arith.constant 7 : index
    %c0_139 = arith.constant 0 : index
    %109 = vector.load %arg9[%c2_137, %c7_138, %c0_139] : memref<18x32x8xf32, #tpu.memory_space<vmem>>, vector<16x16x8xf32>
    %110 = vector.shape_cast %109 : vector<16x16x8xf32> to vector<256x8xf32>
    %c2_140 = arith.constant 2 : index
    %c0_141 = arith.constant 0 : index
    %c0_142 = arith.constant 0 : index
    %c0_143 = arith.constant 0 : index
    %111 = vector.load %arg3[%c2_140, %c0_141, %c0_142, %c0_143] : memref<3x3x8x8xf32, #tpu.memory_space<vmem>>, vector<1x1x8x8xf32>
    %112 = vector.shape_cast %111 : vector<1x1x8x8xf32> to vector<8x8xf32>
    %cst_144 = arith.constant dense<0.000000e+00> : vector<256x8xf32>
    %113 = tpu.matmul %110, %112, %cst_144 {dimension_numbers = #tpu.dot_dimension_numbers<[1], [0], [0], [1], [0, 0, 1, 1], [], []>} : vector<256x8xf32>, vector<8x8xf32>, vector<256x8xf32> -> vector<256x8xf32>
    %114 = arith.addf %108, %113 : vector<256x8xf32>
    %c2_145 = arith.constant 2 : index
    %c8_146 = arith.constant 8 : index
    %c0_147 = arith.constant 0 : index
    %115 = vector.load %arg9[%c2_145, %c8_146, %c0_147] : memref<18x32x8xf32, #tpu.memory_space<vmem>>, vector<16x16x8xf32>
    %116 = vector.shape_cast %115 : vector<16x16x8xf32> to vector<256x8xf32>
    %c2_148 = arith.constant 2 : index
    %c1_149 = arith.constant 1 : index
    %c0_150 = arith.constant 0 : index
    %c0_151 = arith.constant 0 : index
    %117 = vector.load %arg3[%c2_148, %c1_149, %c0_150, %c0_151] : memref<3x3x8x8xf32, #tpu.memory_space<vmem>>, vector<1x1x8x8xf32>
    %118 = vector.shape_cast %117 : vector<1x1x8x8xf32> to vector<8x8xf32>
    %cst_152 = arith.constant dense<0.000000e+00> : vector<256x8xf32>
    %119 = tpu.matmul %116, %118, %cst_152 {dimension_numbers = #tpu.dot_dimension_numbers<[1], [0], [0], [1], [0, 0, 1, 1], [], []>} : vector<256x8xf32>, vector<8x8xf32>, vector<256x8xf32> -> vector<256x8xf32>
    %120 = arith.addf %114, %119 : vector<256x8xf32>
    %c2_153 = arith.constant 2 : index
    %c9_154 = arith.constant 9 : index
    %c0_155 = arith.constant 0 : index
    %121 = vector.load %arg9[%c2_153, %c9_154, %c0_155] : memref<18x32x8xf32, #tpu.memory_space<vmem>>, vector<16x16x8xf32>
    %122 = vector.shape_cast %121 : vector<16x16x8xf32> to vector<256x8xf32>
    %c2_156 = arith.constant 2 : index
    %c2_157 = arith.constant 2 : index
    %c0_158 = arith.constant 0 : index
    %c0_159 = arith.constant 0 : index
    %123 = vector.load %arg3[%c2_156, %c2_157, %c0_158, %c0_159] : memref<3x3x8x8xf32, #tpu.memory_space<vmem>>, vector<1x1x8x8xf32>
    %124 = vector.shape_cast %123 : vector<1x1x8x8xf32> to vector<8x8xf32>
    %cst_160 = arith.constant dense<0.000000e+00> : vector<256x8xf32>
    %125 = tpu.matmul %122, %124, %cst_160 {dimension_numbers = #tpu.dot_dimension_numbers<[1], [0], [0], [1], [0, 0, 1, 1], [], []>} : vector<256x8xf32>, vector<8x8xf32>, vector<256x8xf32> -> vector<256x8xf32>
    %126 = arith.addf %120, %125 : vector<256x8xf32>
    %c1_161 = arith.constant 1 : index
    %c0_162 = arith.constant 0 : index
    %127 = vector.load %arg6[%c1_161, %c0_162] : memref<4x8xf32, #tpu.memory_space<vmem>>, vector<1x8xf32>
    %128 = vector.broadcast %127 : vector<1x8xf32> to vector<256x8xf32>
    %129 = arith.addf %126, %128 : vector<256x8xf32>
    %cst_163 = arith.constant 0.000000e+00 : f32
    %130 = vector.broadcast %cst_163 : f32 to vector<256x8xf32>
    %131 = arith.cmpf oge, %129, %130 : vector<256x8xf32>
    %cst_164 = arith.constant 1.000000e-01 : f32
    %132 = vector.broadcast %cst_164 : f32 to vector<256x8xf32>
    %133 = arith.mulf %129, %132 : vector<256x8xf32>
    %134 = arith.select %131, %129, %133 : vector<256x8xi1>, vector<256x8xf32>
    %135 = vector.shape_cast %134 : vector<256x8xf32> to vector<16x16x8xf32>
    %c1_165 = arith.constant 1 : index
    %c8_166 = arith.constant 8 : index
    %c0_167 = arith.constant 0 : index
    %136 = vector.load %arg9[%c1_165, %c8_166, %c0_167] : memref<18x32x8xf32, #tpu.memory_space<vmem>>, vector<16x16x8xf32>
    tpu.vector_store %arg9[%c1_165, %c8_166, %c0_167], %135 {strides = array<i32>} : memref<18x32x8xf32, #tpu.memory_space<vmem>>, vector<16x16x8xf32>,
    %cst_168 = arith.constant 0.000000e+00 : f32
    %137 = vector.broadcast %cst_168 : f32 to vector<256x8xf32>
    %c0_169 = arith.constant 0 : index
    %c7_170 = arith.constant 7 : index
    %c0_171 = arith.constant 0 : index
    %138 = vector.load %arg9[%c0_169, %c7_170, %c0_171] : memref<18x32x8xf32, #tpu.memory_space<vmem>>, vector<16x16x8xf32>
    %139 = vector.shape_cast %138 : vector<16x16x8xf32> to vector<256x8xf32>
    %c0_172 = arith.constant 0 : index
    %c0_173 = arith.constant 0 : index
    %c0_174 = arith.constant 0 : index
    %c0_175 = arith.constant 0 : index
    %140 = vector.load %arg4[%c0_172, %c0_173, %c0_174, %c0_175] : memref<3x3x8x8xf32, #tpu.memory_space<vmem>>, vector<1x1x8x8xf32>
    %141 = vector.shape_cast %140 : vector<1x1x8x8xf32> to vector<8x8xf32>
    %cst_176 = arith.constant dense<0.000000e+00> : vector<256x8xf32>
    %142 = tpu.matmul %139, %141, %cst_176 {dimension_numbers = #tpu.dot_dimension_numbers<[1], [0], [0], [1], [0, 0, 1, 1], [], []>} : vector<256x8xf32>, vector<8x8xf32>, vector<256x8xf32> -> vector<256x8xf32>
    %143 = arith.addf %137, %142 : vector<256x8xf32>
    %c0_177 = arith.constant 0 : index
    %c8_178 = arith.constant 8 : index
    %c0_179 = arith.constant 0 : index
    %144 = vector.load %arg9[%c0_177, %c8_178, %c0_179] : memref<18x32x8xf32, #tpu.memory_space<vmem>>, vector<16x16x8xf32>
    %145 = vector.shape_cast %144 : vector<16x16x8xf32> to vector<256x8xf32>
    %c0_180 = arith.constant 0 : index
    %c1_181 = arith.constant 1 : index
    %c0_182 = arith.constant 0 : index
    %c0_183 = arith.constant 0 : index
    %146 = vector.load %arg4[%c0_180, %c1_181, %c0_182, %c0_183] : memref<3x3x8x8xf32, #tpu.memory_space<vmem>>, vector<1x1x8x8xf32>
    %147 = vector.shape_cast %146 : vector<1x1x8x8xf32> to vector<8x8xf32>
    %cst_184 = arith.constant dense<0.000000e+00> : vector<256x8xf32>
    %148 = tpu.matmul %145, %147, %cst_184 {dimension_numbers = #tpu.dot_dimension_numbers<[1], [0], [0], [1], [0, 0, 1, 1], [], []>} : vector<256x8xf32>, vector<8x8xf32>, vector<256x8xf32> -> vector<256x8xf32>
    %149 = arith.addf %143, %148 : vector<256x8xf32>
    %c0_185 = arith.constant 0 : index
    %c9_186 = arith.constant 9 : index
    %c0_187 = arith.constant 0 : index
    %150 = vector.load %arg9[%c0_185, %c9_186, %c0_187] : memref<18x32x8xf32, #tpu.memory_space<vmem>>, vector<16x16x8xf32>
    %151 = vector.shape_cast %150 : vector<16x16x8xf32> to vector<256x8xf32>
    %c0_188 = arith.constant 0 : index
    %c2_189 = arith.constant 2 : index
    %c0_190 = arith.constant 0 : index
    %c0_191 = arith.constant 0 : index
    %152 = vector.load %arg4[%c0_188, %c2_189, %c0_190, %c0_191] : memref<3x3x8x8xf32, #tpu.memory_space<vmem>>, vector<1x1x8x8xf32>
    %153 = vector.shape_cast %152 : vector<1x1x8x8xf32> to vector<8x8xf32>
    %cst_192 = arith.constant dense<0.000000e+00> : vector<256x8xf32>
    %154 = tpu.matmul %151, %153, %cst_192 {dimension_numbers = #tpu.dot_dimension_numbers<[1], [0], [0], [1], [0, 0, 1, 1], [], []>} : vector<256x8xf32>, vector<8x8xf32>, vector<256x8xf32> -> vector<256x8xf32>
    %155 = arith.addf %149, %154 : vector<256x8xf32>
    %c1_193 = arith.constant 1 : index
    %c7_194 = arith.constant 7 : index
    %c0_195 = arith.constant 0 : index
    %156 = vector.load %arg9[%c1_193, %c7_194, %c0_195] : memref<18x32x8xf32, #tpu.memory_space<vmem>>, vector<16x16x8xf32>
    %157 = vector.shape_cast %156 : vector<16x16x8xf32> to vector<256x8xf32>
    %c1_196 = arith.constant 1 : index
    %c0_197 = arith.constant 0 : index
    %c0_198 = arith.constant 0 : index
    %c0_199 = arith.constant 0 : index
    %158 = vector.load %arg4[%c1_196, %c0_197, %c0_198, %c0_199] : memref<3x3x8x8xf32, #tpu.memory_space<vmem>>, vector<1x1x8x8xf32>
    %159 = vector.shape_cast %158 : vector<1x1x8x8xf32> to vector<8x8xf32>
    %cst_200 = arith.constant dense<0.000000e+00> : vector<256x8xf32>
    %160 = tpu.matmul %157, %159, %cst_200 {dimension_numbers = #tpu.dot_dimension_numbers<[1], [0], [0], [1], [0, 0, 1, 1], [], []>} : vector<256x8xf32>, vector<8x8xf32>, vector<256x8xf32> -> vector<256x8xf32>
    %161 = arith.addf %155, %160 : vector<256x8xf32>
    %c1_201 = arith.constant 1 : index
    %c8_202 = arith.constant 8 : index
    %c0_203 = arith.constant 0 : index
    %162 = vector.load %arg9[%c1_201, %c8_202, %c0_203] : memref<18x32x8xf32, #tpu.memory_space<vmem>>, vector<16x16x8xf32>
    %163 = vector.shape_cast %162 : vector<16x16x8xf32> to vector<256x8xf32>
    %c1_204 = arith.constant 1 : index
    %c1_205 = arith.constant 1 : index
    %c0_206 = arith.constant 0 : index
    %c0_207 = arith.constant 0 : index
    %164 = vector.load %arg4[%c1_204, %c1_205, %c0_206, %c0_207] : memref<3x3x8x8xf32, #tpu.memory_space<vmem>>, vector<1x1x8x8xf32>
    %165 = vector.shape_cast %164 : vector<1x1x8x8xf32> to vector<8x8xf32>
    %cst_208 = arith.constant dense<0.000000e+00> : vector<256x8xf32>
    %166 = tpu.matmul %163, %165, %cst_208 {dimension_numbers = #tpu.dot_dimension_numbers<[1], [0], [0], [1], [0, 0, 1, 1], [], []>} : vector<256x8xf32>, vector<8x8xf32>, vector<256x8xf32> -> vector<256x8xf32>
    %167 = arith.addf %161, %166 : vector<256x8xf32>
    %c1_209 = arith.constant 1 : index
    %c9_210 = arith.constant 9 : index
    %c0_211 = arith.constant 0 : index
    %168 = vector.load %arg9[%c1_209, %c9_210, %c0_211] : memref<18x32x8xf32, #tpu.memory_space<vmem>>, vector<16x16x8xf32>
    %169 = vector.shape_cast %168 : vector<16x16x8xf32> to vector<256x8xf32>
    %c1_212 = arith.constant 1 : index
    %c2_213 = arith.constant 2 : index
    %c0_214 = arith.constant 0 : index
    %c0_215 = arith.constant 0 : index
    %170 = vector.load %arg4[%c1_212, %c2_213, %c0_214, %c0_215] : memref<3x3x8x8xf32, #tpu.memory_space<vmem>>, vector<1x1x8x8xf32>
    %171 = vector.shape_cast %170 : vector<1x1x8x8xf32> to vector<8x8xf32>
    %cst_216 = arith.constant dense<0.000000e+00> : vector<256x8xf32>
    %172 = tpu.matmul %169, %171, %cst_216 {dimension_numbers = #tpu.dot_dimension_numbers<[1], [0], [0], [1], [0, 0, 1, 1], [], []>} : vector<256x8xf32>, vector<8x8xf32>, vector<256x8xf32> -> vector<256x8xf32>
    %173 = arith.addf %167, %172 : vector<256x8xf32>
    %c2_217 = arith.constant 2 : index
    %c7_218 = arith.constant 7 : index
    %c0_219 = arith.constant 0 : index
    %174 = vector.load %arg9[%c2_217, %c7_218, %c0_219] : memref<18x32x8xf32, #tpu.memory_space<vmem>>, vector<16x16x8xf32>
    %175 = vector.shape_cast %174 : vector<16x16x8xf32> to vector<256x8xf32>
    %c2_220 = arith.constant 2 : index
    %c0_221 = arith.constant 0 : index
    %c0_222 = arith.constant 0 : index
    %c0_223 = arith.constant 0 : index
    %176 = vector.load %arg4[%c2_220, %c0_221, %c0_222, %c0_223] : memref<3x3x8x8xf32, #tpu.memory_space<vmem>>, vector<1x1x8x8xf32>
    %177 = vector.shape_cast %176 : vector<1x1x8x8xf32> to vector<8x8xf32>
    %cst_224 = arith.constant dense<0.000000e+00> : vector<256x8xf32>
    %178 = tpu.matmul %175, %177, %cst_224 {dimension_numbers = #tpu.dot_dimension_numbers<[1], [0], [0], [1], [0, 0, 1, 1], [], []>} : vector<256x8xf32>, vector<8x8xf32>, vector<256x8xf32> -> vector<256x8xf32>
    %179 = arith.addf %173, %178 : vector<256x8xf32>
    %c2_225 = arith.constant 2 : index
    %c8_226 = arith.constant 8 : index
    %c0_227 = arith.constant 0 : index
    %180 = vector.load %arg9[%c2_225, %c8_226, %c0_227] : memref<18x32x8xf32, #tpu.memory_space<vmem>>, vector<16x16x8xf32>
    %181 = vector.shape_cast %180 : vector<16x16x8xf32> to vector<256x8xf32>
    %c2_228 = arith.constant 2 : index
    %c1_229 = arith.constant 1 : index
    %c0_230 = arith.constant 0 : index
    %c0_231 = arith.constant 0 : index
    %182 = vector.load %arg4[%c2_228, %c1_229, %c0_230, %c0_231] : memref<3x3x8x8xf32, #tpu.memory_space<vmem>>, vector<1x1x8x8xf32>
    %183 = vector.shape_cast %182 : vector<1x1x8x8xf32> to vector<8x8xf32>
    %cst_232 = arith.constant dense<0.000000e+00> : vector<256x8xf32>
    %184 = tpu.matmul %181, %183, %cst_232 {dimension_numbers = #tpu.dot_dimension_numbers<[1], [0], [0], [1], [0, 0, 1, 1], [], []>} : vector<256x8xf32>, vector<8x8xf32>, vector<256x8xf32> -> vector<256x8xf32>
    %185 = arith.addf %179, %184 : vector<256x8xf32>
    %c2_233 = arith.constant 2 : index
    %c9_234 = arith.constant 9 : index
    %c0_235 = arith.constant 0 : index
    %186 = vector.load %arg9[%c2_233, %c9_234, %c0_235] : memref<18x32x8xf32, #tpu.memory_space<vmem>>, vector<16x16x8xf32>
    %187 = vector.shape_cast %186 : vector<16x16x8xf32> to vector<256x8xf32>
    %c2_236 = arith.constant 2 : index
    %c2_237 = arith.constant 2 : index
    %c0_238 = arith.constant 0 : index
    %c0_239 = arith.constant 0 : index
    %188 = vector.load %arg4[%c2_236, %c2_237, %c0_238, %c0_239] : memref<3x3x8x8xf32, #tpu.memory_space<vmem>>, vector<1x1x8x8xf32>
    %189 = vector.shape_cast %188 : vector<1x1x8x8xf32> to vector<8x8xf32>
    %cst_240 = arith.constant dense<0.000000e+00> : vector<256x8xf32>
    %190 = tpu.matmul %187, %189, %cst_240 {dimension_numbers = #tpu.dot_dimension_numbers<[1], [0], [0], [1], [0, 0, 1, 1], [], []>} : vector<256x8xf32>, vector<8x8xf32>, vector<256x8xf32> -> vector<256x8xf32>
    %191 = arith.addf %185, %190 : vector<256x8xf32>
    %c2_241 = arith.constant 2 : index
    %c0_242 = arith.constant 0 : index
    %192 = vector.load %arg6[%c2_241, %c0_242] : memref<4x8xf32, #tpu.memory_space<vmem>>, vector<1x8xf32>
    %193 = vector.broadcast %192 : vector<1x8xf32> to vector<256x8xf32>
    %194 = arith.addf %191, %193 : vector<256x8xf32>
    %195 = vector.shape_cast %5 : vector<16x16x4xf32> to vector<256x4xf32>
    %c0_243 = arith.constant 0 : index
    %c0_244 = arith.constant 0 : index
    %196 = vector.load %arg5[%c0_243, %c0_244] : memref<4x8xf32, #tpu.memory_space<vmem>>, vector<4x8xf32>
    %cst_245 = arith.constant dense<0.000000e+00> : vector<256x8xf32>
    %197 = tpu.matmul %195, %196, %cst_245 {dimension_numbers = #tpu.dot_dimension_numbers<[1], [0], [0], [1], [0, 0, 1, 1], [], []>} : vector<256x4xf32>, vector<4x8xf32>, vector<256x8xf32> -> vector<256x8xf32>
    %198 = arith.addf %194, %197 : vector<256x8xf32>
    %c3 = arith.constant 3 : index
    %c0_246 = arith.constant 0 : index
    %199 = vector.load %arg6[%c3, %c0_246] : memref<4x8xf32, #tpu.memory_space<vmem>>, vector<1x8xf32>
    %200 = vector.broadcast %199 : vector<1x8xf32> to vector<256x8xf32>
    %201 = arith.addf %198, %200 : vector<256x8xf32>
    %cst_247 = arith.constant 0.000000e+00 : f32
    %202 = vector.broadcast %cst_247 : f32 to vector<256x8xf32>
    %203 = arith.cmpf oge, %201, %202 : vector<256x8xf32>
    %cst_248 = arith.constant 1.000000e-01 : f32
    %204 = vector.broadcast %cst_248 : f32 to vector<256x8xf32>
    %205 = arith.mulf %201, %204 : vector<256x8xf32>
    %206 = arith.select %203, %201, %205 : vector<256x8xi1>, vector<256x8xf32>
    %207 = vector.shape_cast %206 : vector<256x8xf32> to vector<16x16x8xf32>
    %c0_249 = arith.constant 0 : index
    %c0_250 = arith.constant 0 : index
    %c0_251 = arith.constant 0 : index
    %208 = vector.load %arg10[%c0_249, %c0_250, %c0_251] : memref<16x16x8xf32, #tpu.memory_space<vmem>>, vector<16x16x8xf32>
    tpu.vector_store %arg10[%c0_249, %c0_250, %c0_251], %207 {strides = array<i32>} : memref<16x16x8xf32, #tpu.memory_space<vmem>>, vector<16x16x8xf32>,
    %c0_252 = arith.constant 0 : index
    %c0_253 = arith.constant 0 : index
    %c0_254 = arith.constant 0 : index
    %209 = tpu.strided_load %arg10[%c0_252, %c0_253, %c0_254] {strides = array<i32: 2, 1, 1>} : memref<16x16x8xf32, #tpu.memory_space<vmem>>, vector<8x16x8xf32>
    %c1_255 = arith.constant 1 : index
    %c0_256 = arith.constant 0 : index
    %c0_257 = arith.constant 0 : index
    %210 = tpu.strided_load %arg10[%c1_255, %c0_256, %c0_257] {strides = array<i32: 2, 1, 1>} : memref<16x16x8xf32, #tpu.memory_space<vmem>>, vector<8x16x8xf32>
    %211 = arith.maximumf %209, %210 : vector<8x16x8xf32>
    %c0_258 = arith.constant 0 : index
    %c0_259 = arith.constant 0 : index
    %c0_260 = arith.constant 0 : index
    %212 = vector.load %arg11[%c0_258, %c0_259, %c0_260] : memref<8x16x8xf32, #tpu.memory_space<vmem>>, vector<8x16x8xf32>
    tpu.vector_store %arg11[%c0_258, %c0_259, %c0_260], %211 {strides = array<i32>} : memref<8x16x8xf32, #tpu.memory_space<vmem>>, vector<8x16x8xf32>,
    %c0_261 = arith.constant 0 : index
    %c0_262 = arith.constant 0 : index
    %c0_263 = arith.constant 0 : index
    %213 = tpu.strided_load %arg11[%c0_261, %c0_262, %c0_263] {strides = array<i32: 1, 2, 1>} : memref<8x16x8xf32, #tpu.memory_space<vmem>>, vector<8x8x8xf32>
    %c0_264 = arith.constant 0 : index
    %c1_265 = arith.constant 1 : index
    %c0_266 = arith.constant 0 : index
    %214 = tpu.strided_load %arg11[%c0_264, %c1_265, %c0_266] {strides = array<i32: 1, 2, 1>} : memref<8x16x8xf32, #tpu.memory_space<vmem>>, vector<8x8x8xf32>
    %215 = arith.maximumf %213, %214 : vector<8x8x8xf32>
    %216 = vector.shape_cast %215 : vector<8x8x8xf32> to vector<1x8x8x8xf32>
    %c0_267 = arith.constant 0 : index
    %c0_268 = arith.constant 0 : index
    %c0_269 = arith.constant 0 : index
    %c0_270 = arith.constant 0 : index
    %217 = vector.load %arg7[%c0_267, %c0_268, %c0_269, %c0_270] : memref<1x8x8x8xf32, #tpu.memory_space<vmem>>, vector<1x8x8x8xf32>
    tpu.vector_store %arg7[%c0_267, %c0_268, %c0_269, %c0_270], %216 {strides = array<i32>} : memref<1x8x8x8xf32, #tpu.memory_space<vmem>>, vector<1x8x8x8xf32>,
    return
  }
  func.func @transform_0(%arg0: i32) -> (i32, i32, i32, i32) {
    %c0_i32 = arith.constant 0 : i32
    %c0_i32_0 = arith.constant 0 : i32
    %c0_i32_1 = arith.constant 0 : i32
    %c0_i32_2 = arith.constant 0 : i32
    return %arg0, %c0_i32, %c0_i32_0, %c0_i32_1 : i32, i32, i32, i32
  }
  func.func @transform_1(%arg0: i32) -> (i32, i32, i32, i32) {
    %c0_i32 = arith.constant 0 : i32
    %c0_i32_0 = arith.constant 0 : i32
    %c0_i32_1 = arith.constant 0 : i32
    %c0_i32_2 = arith.constant 0 : i32
    %c0_i32_3 = arith.constant 0 : i32
    return %c0_i32, %c0_i32_0, %c0_i32_1, %c0_i32_2 : i32, i32, i32, i32
  }
  func.func @transform_2(%arg0: i32) -> (i32, i32, i32, i32) {
    %c0_i32 = arith.constant 0 : i32
    %c0_i32_0 = arith.constant 0 : i32
    %c0_i32_1 = arith.constant 0 : i32
    %c0_i32_2 = arith.constant 0 : i32
    %c0_i32_3 = arith.constant 0 : i32
    return %c0_i32, %c0_i32_0, %c0_i32_1, %c0_i32_2 : i32, i32, i32, i32
  }
  func.func @transform_3(%arg0: i32) -> (i32, i32, i32, i32) {
    %c0_i32 = arith.constant 0 : i32
    %c0_i32_0 = arith.constant 0 : i32
    %c0_i32_1 = arith.constant 0 : i32
    %c0_i32_2 = arith.constant 0 : i32
    %c0_i32_3 = arith.constant 0 : i32
    return %c0_i32, %c0_i32_0, %c0_i32_1, %c0_i32_2 : i32, i32, i32, i32
  }
  func.func @transform_4(%arg0: i32) -> (i32, i32) {
    %c0_i32 = arith.constant 0 : i32
    %c0_i32_0 = arith.constant 0 : i32
    %c0_i32_1 = arith.constant 0 : i32
    return %c0_i32, %c0_i32_0 : i32, i32
  }
  func.func @transform_5(%arg0: i32) -> (i32, i32) {
    %c0_i32 = arith.constant 0 : i32
    %c0_i32_0 = arith.constant 0 : i32
    %c0_i32_1 = arith.constant 0 : i32
    return %c0_i32, %c0_i32_0 : i32, i32
  }
  func.func @transform_6(%arg0: i32) -> (i32, i32, i32, i32) {
    %c0_i32 = arith.constant 0 : i32
    %c0_i32_0 = arith.constant 0 : i32
    %c0_i32_1 = arith.constant 0 : i32
    %c0_i32_2 = arith.constant 0 : i32
    return %arg0, %c0_i32, %c0_i32_0, %c0_i32_1 : i32, i32, i32, i32
  }
}

</mosaic_0001>

<bundles_post_ra>
// kernel: tpu_custom_call.1
= control target key start
LH: loop header
LB: loop body
LE: loop exit
PB: predicated region body
PF: predicated region fallthrough
CT: control target
= control target key end

     0   :  { %11 = vsyncpa [#allocation7], 0  ;;  %s19423_s0 = inlined_call_operand.vmem [shape: f32[2,16,16,4], index: 0, kind: input, shape index: {}]   ;;  %s19424_s1 = inlined_call_operand.vmem [shape: f32[3,3,4,8], index: 1, kind: input, shape index: {}]   ;;  %s19425_s2 = inlined_call_operand.vmem [shape: f32[3,3,8,8], index: 2, kind: input, shape index: {}]   ;;  %s19426_s3 = inlined_call_operand.vmem [shape: f32[3,3,8,8], index: 3, kind: input, shape index: {}]   ;;  %s19427_s4 = inlined_call_operand.vmem [shape: f32[4,8], index: 4, kind: input, shape index: {}]   ;;  %s19428_s5 = inlined_call_operand.vmem [shape: f32[4,8], index: 5, kind: input, shape index: {}]   ;;  %s19429_s6 = inlined_call_operand.hbm [shape: f32[2,8,8,8], index: 6, kind: output, shape index: {}]  }
   0x1   :  { %13 = vsyncpa [#allocation7 + $0x1], 0  ;;  %s16072_s21 = smov 0   ;;  %s16074_s22 = smov 0  }
   0x2   :  { %s16076_s23 = smov 0   ;;  %s16078_s24 = smov 0  }
   0x3 LB: > { %s16093_s25 = sadd.s32 4294967295, %s16031_s24   ;;  %s11823_s26 = sadd.s32 4294967294, %s16031_s24   ;;  %s16031_s24 = sphi %s16078_s24, %s19895_s24   ;;  %s16027_s23 = sphi %s16076_s23, %s19894_s23   ;;  %s16023_s22 = sphi %s16074_s22, %s19893_s22   ;;  %s16019_s21 = sphi %s16072_s21, %s19892_s21  }
   0x4   : > { %s16097_s27 = sadd.s32 1, %s16031_s24   ;;  %s157_s28 = sadd.s32 1, %s16027_s23 }
   0x5   : > { %s154_s29 = ssub.s32 %s16031_s24, %s16097_s27  ;;  %p167_p0 = scmp.ne.s32.totalorder %s16027_s23, %s16023_s22 }
   0x6   : > { %p155_p1 = scmp.eq.s32.totalorder %s154_s29, 0  ;;  %p168_p2 = scmp.eq.s32.totalorder %s16093_s25, 1 }
   0x7   : > { %p173_p3 = scmp.ne.s32.totalorder %s16023_s22, %s16019_s21  ;;  %p174_p4 = scmp.eq.s32.totalorder %s11823_s26, 1 }
   0x8   : > { %s16108_s30 = scalar_select %p155_p1, %s16027_s23, %s157_s28  }
   0x9   : > { %p16110_p5 = por %p168_p2, %p167_p0  ;;  %p16114_p6 = por %p174_p4, %p173_p3 }
   0xa   : > { %p11826_p7 = scmp.ge.s32.totalorder %s16031_s24, 1  ;;  %p215_p8 = scmp.lt.s32.totalorder %s16031_s24, 3 }
   0xc   : > { %p216_p9 = pnand %p11826_p7, %p215_p8 }
   0xe   : > { %219 = sbr.rel (%p216_p9) target bundleno = 2172 (0x87c), region = 44 }
  0x15   : > { %v16123_v0 = vld [vmem:[%s19424_s1 + $0x4] sm:$0xf]  ;;  %vm624_vm0 = vcmask 1043456   ;;  %vm250_vm1 = vcmask 31744   ;;  %p245_p10 = scmp.lt.s32.totalorder %s16093_s25, 1  ;;  %v19430_v1 = vmov 0.0  }
  0x16   : > { %13695 = vmatprep.subr.msk.mxu1 %vm624_vm0, %v16123_v0  ;;  %252 = vst.msk [vmem:[#allocation2 + $0x8] sm:$0xff] %vm250_vm1, %v19430_v1  ;;  %251 = vst.msk [vmem:[#allocation2] sm:$0xff] %vm250_vm1, %v19430_v1  ;;  %v493_v2 = vld [vmem:[%s19424_s1] sm:$0xf]  ;;  %v11999_v3 = vld [vmem:[%s19424_s1 + $0x14] sm:$0xf] }
  0x17   : > { %253 = vst.msk [vmem:[#allocation2 + $0x10] sm:$0xff] %vm250_vm1, %v19430_v1  ;;  %254 = vst.msk [vmem:[#allocation2 + $0x18] sm:$0xff] %vm250_vm1, %v19430_v1  ;;  %13696 = vmatpush3.msk.msra.mxu1 %vm624_vm0, %v16123_v0  ;;  %13945 = vmatprep.subr.msk.mxu0 %vm624_vm0, %v11999_v3  ;;  %s246_s15 = scalar_select %p245_p10, %s16093_s25, 1  ;;  %v16287_v4 = vld [vmem:[%s19424_s1 + $0x18] sm:$0xf]  ;;  %vm323_vm2 = vcmask 64512  }
  0x18   : > { %255 = vst.msk [vmem:[#allocation2 + $0x20] sm:$0xff] %vm250_vm1, %v19430_v1  ;;  %256 = vst.msk [vmem:[#allocation2 + $0x28] sm:$0xff] %vm250_vm1, %v19430_v1  ;;  %13745 = vmatprep.subr.msk.mxu1 %vm624_vm0, %v493_v2  ;;  %13946 = vmatpush3.msk.msra.mxu0 %vm624_vm0, %v11999_v3  ;;  %v16325_v11 = vld [vmem:[%s19424_s1 + $0x8] sm:$0xf]  ;;  %s16034_s12 = smov [#allocation6]  }
  0x19   : > { %257 = vst.msk [vmem:[#allocation2 + $0x30] sm:$0xff] %vm250_vm1, %v19430_v1  ;;  %258 = vst.msk [vmem:[#allocation2 + $0x38] sm:$0xff] %vm250_vm1, %v19430_v1  ;;  %s12769_s18 = sshll.u32 %s246_s15, 8  ;;  %13995 = vmatprep.subr.msk.mxu0 %vm624_vm0, %v16287_v4  ;;  %s15973_s13 = sshll.u32 %s16034_s12, 4  ;;  %s15974_s13 = int_to_ptr.vmem [resolvable:$false] %s15973_s13 }
  0x1a   : > { %259 = vst.msk [vmem:[#allocation2 + $0x40] sm:$0xff] %vm250_vm1, %v19430_v1  ;;  %260 = vst.msk [vmem:[#allocation2 + $0x48] sm:$0xff] %vm250_vm1, %v19430_v1  ;;  %s16296_s26 = scalar_lea.vmem %s19423_s0, %s12769_s18  ;;  %s242_s18 = sand.u32 1, %s16023_s22  }
  0x1b   : > { %261 = vst.msk [vmem:[#allocation2 + $0x50] sm:$0xff] %vm250_vm1, %v19430_v1  ;;  %262 = vst.msk [vmem:[#allocation2 + $0x58] sm:$0xff] %vm250_vm1, %v19430_v1  ;;  %v16299_v5 = vld [vmem:[%s16296_s26] sm:$0xff]  ;;  %v16302_v6 = vld [vmem:[%s16296_s26 + $0x8] sm:$0xff]  ;;  %s11827_s19 = sshll.u32 %s242_s18, 6  ;;  %s19382_s11 = scalar_lea.sflag [#allocation7], %s242_s18 }
  0x1c   : > { %263 = vst.msk [vmem:[#allocation2 + $0x60] sm:$0xff] %vm250_vm1, %v19430_v1  ;;  %264 = vst.msk [vmem:[#allocation2 + $0x68] sm:$0xff] %vm250_vm1, %v19430_v1  ;;  %v16305_v7 = vld [vmem:[%s16296_s26 + $0x10] sm:$0xff]  ;;  %v16314_v8 = vld [vmem:[%s16296_s26 + $0x18] sm:$0xff]  ;;  %s19293_s20 = scalar_lea.vmem [#allocation6], %s11827_s19  ;;  %s15975_s14 = scalar_lea.vmem %s15974_s13, 2048 }
  0x1d   : > { %265 = vst.msk [vmem:[#allocation2 + $0x70] sm:$0xff] %vm250_vm1, %v19430_v1  ;;  %266 = vst.msk [vmem:[#allocation2 + $0x78] sm:$0xff] %vm250_vm1, %v19430_v1  ;;  %v16317_v9 = vld [vmem:[%s16296_s26 + $0x20] sm:$0xff]  ;;  %v16320_v10 = vld [vmem:[%s16296_s26 + $0x28] sm:$0xff]  ;;  %s11761_s28 = sshll.u32 %s19293_s20, 4  ;;  %s19376_s28 = int_to_ptr.vmem [resolvable:$true] %s11761_s28 }
  0x1e   : > { %267 = vst.msk [vmem:[#allocation2 + $0x80] sm:$0xff] %vm250_vm1, %v19430_v1  ;;  %268 = vst.msk [vmem:[#allocation2 + $0x88] sm:$0xff] %vm250_vm1, %v19430_v1  ;;  %v494_v12 = vld [vmem:[#allocation2 + $0x8] sm:$0xff]  ;;  %v495_v13 = vld [vmem:[#allocation2 + $0x10] sm:$0xff]  ;;  %p15976_p0 = scmp.lt.s32.totalorder %s19376_s28, %s15974_s13 }
  0x1f   : > { %269 = vst.msk [vmem:[#allocation2 + $0x90] sm:$0xff] %vm250_vm1, %v19430_v1  ;;  %270 = vst.msk [vmem:[#allocation2 + $0x98] sm:$0xff] %vm250_vm1, %v19430_v1  ;;  %v16334_v14 = vld [vmem:[%s16296_s26 + $0x30] sm:$0xff]  ;;  %13697 = vmatprep.mubr.msk.f32.mxu1 %vm250_vm1, %v494_v12  ;;  %v16340_v15 = vld [vmem:[%s16296_s26 + $0x38] sm:$0xff] }
  0x20   : > { %271 = vst.msk [vmem:[#allocation2 + $0xa0] sm:$0xff] %vm250_vm1, %v19430_v1  ;;  %272 = vst.msk [vmem:[#allocation2 + $0xa8] sm:$0xff] %vm250_vm1, %v19430_v1  ;;  %v16343_v16 = vld [vmem:[%s16296_s26 + $0x40] sm:$0xff]  ;;  %v16346_v17 = vld [vmem:[%s16296_s26 + $0x48] sm:$0xff]  ;;  %13698 = vmatmul.mubr.msk.f32.vlgmr.msra.gmra.mrb[0].mxu1 %vm250_vm1, %v495_v13 }
  0x21   : > { %273 = vst.msk [vmem:[#allocation2 + $0xb0] sm:$0xff] %vm250_vm1, %v19430_v1  ;;  %274 = vst.msk [vmem:[#allocation2 + $0xb8] sm:$0xff] %vm250_vm1, %v19430_v1  ;;  %v16356_v18 = vld [vmem:[%s16296_s26 + $0x50] sm:$0xff]  ;;  %v16359_v19 = vld [vmem:[%s16296_s26 + $0x58] sm:$0xff]  ;;  %13746 = vmatpush3.msk.msra.mxu1 %vm624_vm0, %v493_v2 }
  0x22   : > { %275 = vst.msk [vmem:[#allocation2 + $0xc0] sm:$0xff] %vm250_vm1, %v19430_v1  ;;  %276 = vst.msk [vmem:[#allocation2 + $0xc8] sm:$0xff] %vm250_vm1, %v19430_v1  ;;  %v16362_v20 = vld [vmem:[%s16296_s26 + $0x60] sm:$0xff]  ;;  %v16372_v21 = vld [vmem:[%s16296_s26 + $0x68] sm:$0xff]  ;;  %13795 = vmatprep.subr.msk.mxu1 %vm624_vm0, %v16325_v11 }
  0x23   : > { %277 = vst.msk [vmem:[#allocation2 + $0xd0] sm:$0xff] %vm250_vm1, %v19430_v1  ;;  %278 = vst.msk [vmem:[#allocation2 + $0xd8] sm:$0xff] %vm250_vm1, %v19430_v1  ;;  %v16375_v22 = vld [vmem:[%s16296_s26 + $0x70] sm:$0xff]  ;;  %v16378_v23 = vld [vmem:[%s16296_s26 + $0x78] sm:$0xff] }
  0x24   : > { %279 = vst.msk [vmem:[#allocation2 + $0xe0] sm:$0xff] %vm250_vm1, %v19430_v1  ;;  %280 = vst.msk [vmem:[#allocation2 + $0xe8] sm:$0xff] %vm250_vm1, %v19430_v1  ;;  %v16387_v24 = vld [vmem:[%s16296_s26 + $0x80] sm:$0xff]  ;;  %v16390_v25 = vld [vmem:[%s16296_s26 + $0x88] sm:$0xff] }
  0x25   : > { %281 = vst.msk [vmem:[#allocation2 + $0xf0] sm:$0xff] %vm250_vm1, %v19430_v1  ;;  %282 = vst.msk [vmem:[#allocation2 + $0xf8] sm:$0xff] %vm250_vm1, %v19430_v1  ;;  %v16393_v26 = vld [vmem:[%s16296_s26 + $0x90] sm:$0xff]  ;;  %v16404_v27 = vld [vmem:[%s16296_s26 + $0x98] sm:$0xff] }
  0x26   : > { %283 = vst.msk [vmem:[#allocation2 + $0x100] sm:$0xff] %vm250_vm1, %v19430_v1  ;;  %284 = vst.msk [vmem:[#allocation2 + $0x108] sm:$0xff] %vm250_vm1, %v19430_v1  ;;  %v16407_v28 = vld [vmem:[%s16296_s26 + $0xa0] sm:$0xff]  ;;  %v16410_v29 = vld [vmem:[%s16296_s26 + $0xa8] sm:$0xff] }
  0x27   : > { %285 = vst.msk [vmem:[#allocation2 + $0x110] sm:$0xff] %vm250_vm1, %v19430_v1  ;;  %286 = vst.msk [vmem:[#allocation2 + $0x118] sm:$0xff] %vm250_vm1, %v19430_v1  ;;  %v16491_v52 = vld [vmem:[%s16296_s26 + $0xb0] sm:$0xff]  ;;  %v16500_v53 = vld [vmem:[%s16296_s26 + $0xb8] sm:$0xff] }
  0x28   : > { %287 = vst.msk [vmem:[#allocation2 + $0x120] sm:$0xff] %vm250_vm1, %v19430_v1  ;;  %288 = vst.msk [vmem:[#allocation2 + $0x128] sm:$0xff] %vm250_vm1, %v19430_v1  ;;  %v16503_v54 = vld [vmem:[%s16296_s26 + $0xc0] sm:$0xff]  ;;  %v16506_v55 = vld [vmem:[%s16296_s26 + $0xc8] sm:$0xff] }
  0x29   : > { %289 = vst.msk [vmem:[#allocation2 + $0x130] sm:$0xff] %vm250_vm1, %v19430_v1  ;;  %290 = vst.msk [vmem:[#allocation2 + $0x138] sm:$0xff] %vm250_vm1, %v19430_v1  ;;  %v16515_v56 = vld [vmem:[%s16296_s26 + $0xd0] sm:$0xff]  ;;  %v16518_v57 = vld [vmem:[%s16296_s26 + $0xd8] sm:$0xff] }
  0x2a   : > { %291 = vst.msk [vmem:[#allocation2 + $0x140] sm:$0xff] %vm250_vm1, %v19430_v1  ;;  %292 = vst.msk [vmem:[#allocation2 + $0x148] sm:$0xff] %vm250_vm1, %v19430_v1  ;;  %v16521_v58 = vld [vmem:[%s16296_s26 + $0xe0] sm:$0xff]  ;;  %v16530_v59 = vld [vmem:[%s16296_s26 + $0xe8] sm:$0xff] }
  0x2b   : > { %293 = vst.msk [vmem:[#allocation2 + $0x150] sm:$0xff] %vm250_vm1, %v19430_v1  ;;  %294 = vst.msk [vmem:[#allocation2 + $0x158] sm:$0xff] %vm250_vm1, %v19430_v1  ;;  %v16533_v60 = vld [vmem:[%s16296_s26 + $0xf0] sm:$0xff]  ;;  %v16542_v61 = vld [vmem:[%s16296_s26 + $0xf8] sm:$0xff]  ;;  %s12770_s26 = sshll.u32 %s16093_s25, 10  ;;  %s15969_s25 = scalar_lea.vmem %s19376_s28, 1024 }
  0x2c   : > { %295 = vst.msk [vmem:[#allocation2 + $0x160] sm:$0xff] %vm250_vm1, %v19430_v1  ;;  %296 = vst.msk [vmem:[#allocation2 + $0x168] sm:$0xff] %vm250_vm1, %v19430_v1  ;;  %s19374_s10 = scalar_lea.hbm %s19429_s6, %s12770_s26  ;;  %p15970_p11 = scmp.ne.s32.totalorder %s19376_s28, %s15969_s25 }
  0x2d   : > { %297 = vst.msk [vmem:[#allocation2 + $0x170] sm:$0xff] %vm250_vm1, %v19430_v1  ;;  %298 = vst.msk [vmem:[#allocation2 + $0x178] sm:$0xff] %vm250_vm1, %v19430_v1  ;;  %p15977_p1 = scmp.lt.s32.totalorder %s15975_s14, %s15969_s25 }
  0x2e   : > { %299 = vst.msk [vmem:[#allocation2 + $0x180] sm:$0xff] %vm250_vm1, %v19430_v1  ;;  %300 = vst.msk [vmem:[#allocation2 + $0x188] sm:$0xff] %vm250_vm1, %v19430_v1  ;;  %p15971_p12 = pnand %p15970_p11, %p16110_p5 }
  0x2f   : > { %301 = vst.msk [vmem:[#allocation2 + $0x190] sm:$0xff] %vm250_vm1, %v19430_v1  ;;  %302 = vst.msk [vmem:[#allocation2 + $0x198] sm:$0xff] %vm250_vm1, %v19430_v1  ;;  %p15978_p2 = por %p15977_p1, %p15976_p0 }
  0x30   : > { %303 = vst.msk [vmem:[#allocation2 + $0x1a0] sm:$0xff] %vm250_vm1, %v19430_v1  ;;  %304 = vst.msk [vmem:[#allocation2 + $0x1a8] sm:$0xff] %vm250_vm1, %v19430_v1  ;;  %p15972_p13 = pneg %p15971_p12 }
  0x31   : > { %305 = vst.msk [vmem:[#allocation2 + $0x1b0] sm:$0xff] %vm250_vm1, %v19430_v1  ;;  %306 = vst.msk [vmem:[#allocation2 + $0x1b8] sm:$0xff] %vm250_vm1, %v19430_v1 }
  0x32   : > { %307 = vst.msk [vmem:[#allocation2 + $0x1c0] sm:$0xff] %vm250_vm1, %v19430_v1  ;;  %308 = vst.msk [vmem:[#allocation2 + $0x1c8] sm:$0xff] %vm250_vm1, %v19430_v1  ;;  %p15979_p3 = pnand %p15978_p2, %p15972_p13 }
  0x33   : > { %309 = vst.msk [vmem:[#allocation2 + $0x1d0] sm:$0xff] %vm250_vm1, %v19430_v1  ;;  %310 = vst.msk [vmem:[#allocation2 + $0x1d8] sm:$0xff] %vm250_vm1, %v19430_v1 }
  0x34   : > { %311 = vst.msk [vmem:[#allocation2 + $0x1e0] sm:$0xff] %vm250_vm1, %v19430_v1  ;;  %312 = vst.msk [vmem:[#allocation2 + $0x1e8] sm:$0xff] %vm250_vm1, %v19430_v1 }
  0x35   : > { %313 = vst.msk [vmem:[#allocation2 + $0x1f0] sm:$0xff] %vm250_vm1, %v19430_v1  ;;  %314 = vst.msk [vmem:[#allocation2 + $0x1f8] sm:$0xff] %vm250_vm1, %v19430_v1 }
  0x36   : > { %315 = vst.msk [vmem:[#allocation2 + $0x200] sm:$0xff] %vm250_vm1, %v19430_v1  ;;  %316 = vst.msk [vmem:[#allocation2 + $0x208] sm:$0xff] %vm250_vm1, %v19430_v1 }
  0x37   : > { %317 = vst.msk [vmem:[#allocation2 + $0x210] sm:$0xff] %vm250_vm1, %v19430_v1  ;;  %318 = vst.msk [vmem:[#allocation2 + $0x218] sm:$0xff] %vm250_vm1, %v19430_v1 }
  0x38   : > { %319 = vst.msk [vmem:[#allocation2 + $0x220] sm:$0xff] %vm250_vm1, %v19430_v1  ;;  %320 = vst.msk [vmem:[#allocation2 + $0x228] sm:$0xff] %vm250_vm1, %v19430_v1 }
  0x39   : > { %321 = vst.msk [vmem:[#allocation2 + $0x230] sm:$0xff] %vm250_vm1, %v19430_v1  ;;  %322 = vst.msk [vmem:[#allocation2 + $0x238] sm:$0xff] %vm250_vm1, %v19430_v1 }
  0x3a   : > { %19615 = vst [vmem:[#allocation9_spill] sm:$0xff] %v16299_v5  ;;  %19616 = vst [vmem:[#allocation10_spill] sm:$0xff] %v16302_v6 }
  0x3b   : > { %19617 = vst [vmem:[#allocation11_spill] sm:$0xff] %v16305_v7  ;;  %429 = vst.msk [vmem:[#allocation2 + $0x28] sm:$0xff] %vm250_vm1, %v16299_v5 }
  0x3c   : > { %430 = vst.msk [vmem:[#allocation2 + $0x30] sm:$0xff] %vm250_vm1, %v16302_v6  ;;  %431 = vst.msk [vmem:[#allocation2 + $0x48] sm:$0xff] %vm250_vm1, %v16305_v7  ;;  %v462_v6 = vld [vmem:[#allocation2 + $0xf] sm:$0xff] }
  0x3d   : > { %19618 = vst [vmem:[#allocation12_spill] sm:$0xff] %v16314_v8  ;;  %19619 = vst [vmem:[#allocation13_spill] sm:$0xff] %v16317_v9 }
  0x3e   : > { %19620 = vst [vmem:[#allocation14_spill] sm:$0xff] %v16320_v10  ;;  %432 = vst.msk [vmem:[#allocation2 + $0x50] sm:$0xff] %vm250_vm1, %v16314_v8  ;;  %v461_v8 = vld [vmem:[#allocation2 + $0x7] sm:$0xff] }
  0x3f   : > { %433 = vst.msk [vmem:[#allocation2 + $0x68] sm:$0xff] %vm250_vm1, %v16317_v9  ;;  %434 = vst.msk [vmem:[#allocation2 + $0x70] sm:$0xff] %vm250_vm1, %v16320_v10 }
  0x40   : > { %19621 = vst [vmem:[#allocation15_spill] sm:$0xff] %v16334_v14  ;;  %435 = vst.msk [vmem:[#allocation2 + $0x88] sm:$0xff] %vm250_vm1, %v16334_v14 }
  0x41   : > { %19622 = vst [vmem:[#allocation16_spill] sm:$0xff] %v16340_v15  ;;  %19623 = vst [vmem:[#allocation17_spill] sm:$0xff] %v16343_v16 }
  0x42   : > { %19624 = vst [vmem:[#allocation18_spill] sm:$0xff] %v16346_v17  ;;  %436 = vst.msk [vmem:[#allocation2 + $0x90] sm:$0xff] %vm250_vm1, %v16340_v15  ;;  %v496_v30 = vld [vmem:[#allocation2 + $0x28] sm:$0xff] }
  0x43   : > { %437 = vst.msk [vmem:[#allocation2 + $0xa8] sm:$0xff] %vm250_vm1, %v16343_v16  ;;  %438 = vst.msk [vmem:[#allocation2 + $0xb0] sm:$0xff] %vm250_vm1, %v16346_v17  ;;  %v16412_v31 = vld [vmem:[#allocation2 + $0x29] sm:$0xff]  ;;  %13700 = vmatprep.mubr.msk.f32.mxu1 %vm250_vm1, %v496_v30  ;;  %v16423_v33 = vld [vmem:[#allocation2 + $0x31] sm:$0xff] }
  0x44   : > { %19625 = vst [vmem:[#allocation19_spill] sm:$0xff] %v16356_v18  ;;  %19626 = vst [vmem:[#allocation20_spill] sm:$0xff] %v16359_v19  ;;  %v497_v32 = vld [vmem:[#allocation2 + $0x30] sm:$0xff]  ;;  %13947 = vmatprep.mubr.msk.f32.mxu0 %vm250_vm1, %v16412_v31  ;;  %v16425_v34 = vld [vmem:[#allocation2 + $0x48] sm:$0xff] }
  0x45   : > { %19627 = vst [vmem:[#allocation21_spill] sm:$0xff] %v16362_v20  ;;  %439 = vst.msk [vmem:[#allocation2 + $0xc8] sm:$0xff] %vm250_vm1, %v16356_v18  ;;  %v16427_v35 = vld [vmem:[#allocation2 + $0x49] sm:$0xff]  ;;  %13701 = vmatmul.mubr.msk.f32.gmra.mrb[2].mxu1 %vm250_vm1, %v497_v32  ;;  %13948 = vmatmul.mubr.msk.f32.vlgmr.msra.gmra.mrb[0].mxu0 %vm250_vm1, %v16423_v33  ;;  %v16438_v37 = vld [vmem:[#allocation2 + $0x51] sm:$0xff] }
  0x46   : > { %440 = vst.msk [vmem:[#allocation2 + $0xd0] sm:$0xff] %vm250_vm1, %v16359_v19  ;;  %441 = vst.msk [vmem:[#allocation2 + $0xe8] sm:$0xff] %vm250_vm1, %v16362_v20  ;;  %13703 = vmatprep.mubr.msk.f32.mxu1 %vm250_vm1, %v16425_v34  ;;  %13950 = vmatprep.mubr.msk.f32.mxu0 %vm250_vm1, %v16427_v35  ;;  %v16436_v36 = vld [vmem:[#allocation2 + $0x50] sm:$0xff]  ;;  %v16440_v38 = vld [vmem:[#allocation2 + $0x68] sm:$0xff] }
  0x47   : > { %19628 = vst [vmem:[#allocation22_spill] sm:$0xff] %v16372_v21  ;;  %19629 = vst [vmem:[#allocation23_spill] sm:$0xff] %v16375_v22  ;;  %v16442_v39 = vld [vmem:[#allocation2 + $0x69] sm:$0xff]  ;;  %13996 = vmatpush3.msk.msra.mxu0 %vm624_vm0, %v16287_v4  ;;  %v16456_v41 = vld [vmem:[#allocation2 + $0x71] sm:$0xff] }
  0x48   : > { %19630 = vst [vmem:[#allocation24_spill] sm:$0xff] %v16378_v23  ;;  %442 = vst.msk [vmem:[#allocation2 + $0xf0] sm:$0xff] %vm250_vm1, %v16372_v21  ;;  %v16454_v40 = vld [vmem:[#allocation2 + $0x70] sm:$0xff]  ;;  %v16458_v42 = vld [vmem:[#allocation2 + $0x88] sm:$0xff] }
  0x49   : > { %443 = vst.msk [vmem:[#allocation2 + $0x108] sm:$0xff] %vm250_vm1, %v16375_v22  ;;  %444 = vst.msk [vmem:[#allocation2 + $0x110] sm:$0xff] %vm250_vm1, %v16378_v23  ;;  %13704 = vmatmul.mubr.msk.f32.gmra.mrb[4].mxu1 %vm250_vm1, %v16436_v36  ;;  %13951 = vmatmul.mubr.msk.f32.gmra.mrb[2].mxu0 %vm250_vm1, %v16438_v37  ;;  %v16460_v43 = vld [vmem:[#allocation2 + $0x89] sm:$0xff]  ;;  %v16472_v45 = vld [vmem:[#allocation2 + $0x91] sm:$0xff] }
  0x4a   : > { %19631 = vst [vmem:[#allocation25_spill] sm:$0xff] %v16387_v24  ;;  %19632 = vst [vmem:[#allocation26_spill] sm:$0xff] %v16390_v25  ;;  %13706 = vmatprep.mubr.msk.f32.mxu1 %vm250_vm1, %v16440_v38  ;;  %13953 = vmatprep.mubr.msk.f32.mxu0 %vm250_vm1, %v16442_v39  ;;  %v16470_v44 = vld [vmem:[#allocation2 + $0x90] sm:$0xff]  ;;  %v16474_v46 = vld [vmem:[#allocation2 + $0xa8] sm:$0xff] }
  0x4b   : > { %19633 = vst [vmem:[#allocation27_spill] sm:$0xff] %v16393_v26  ;;  %445 = vst.msk [vmem:[#allocation2 + $0x128] sm:$0xff] %vm250_vm1, %v16387_v24  ;;  %v16476_v47 = vld [vmem:[#allocation2 + $0xa9] sm:$0xff]  ;;  %v16480_v49 = vld [vmem:[#allocation2 + $0xb1] sm:$0xff] }
  0x4c   : > { %446 = vst.msk [vmem:[#allocation2 + $0x130] sm:$0xff] %vm250_vm1, %v16390_v25  ;;  %447 = vst.msk [vmem:[#allocation2 + $0x148] sm:$0xff] %vm250_vm1, %v16393_v26  ;;  %v16478_v48 = vld [vmem:[#allocation2 + $0xb0] sm:$0xff]  ;;  %v16486_v50 = vld [vmem:[#allocation2 + $0xc8] sm:$0xff] }
  0x4d   : > { %19634 = vst [vmem:[#allocation28_spill] sm:$0xff] %v16404_v27  ;;  %19635 = vst [vmem:[#allocation29_spill] sm:$0xff] %v16407_v28  ;;  %13707 = vmatmul.mubr.msk.f32.gmra.mrb[6].mxu1 %vm250_vm1, %v16454_v40  ;;  %13954 = vmatmul.mubr.msk.f32.gmra.mrb[4].mxu0 %vm250_vm1, %v16456_v41  ;;  %v16488_v51 = vld [vmem:[#allocation2 + $0xc9] sm:$0xff]  ;;  %v16552_v63 = vld [vmem:[#allocation2 + $0xd1] sm:$0xff] }
  0x4e   : > { %19636 = vst [vmem:[#allocation30_spill] sm:$0xff] %v16410_v29  ;;  %448 = vst.msk [vmem:[#allocation2 + $0x150] sm:$0xff] %vm250_vm1, %v16404_v27  ;;  %13709 = vmatprep.mubr.msk.f32.mxu1 %vm250_vm1, %v16458_v42  ;;  %13956 = vmatprep.mubr.msk.f32.mxu0 %vm250_vm1, %v16460_v43  ;;  %v16550_v62 = vld [vmem:[#allocation2 + $0xd0] sm:$0xff]  ;;  %v16556_v0 = vld [vmem:[#allocation2 + $0xe8] sm:$0xff] }
  0x4f   : > { %449 = vst.msk [vmem:[#allocation2 + $0x168] sm:$0xff] %vm250_vm1, %v16407_v28  ;;  %450 = vst.msk [vmem:[#allocation2 + $0x170] sm:$0xff] %vm250_vm1, %v16410_v29  ;;  %v16558_v2 = vld [vmem:[#allocation2 + $0xe9] sm:$0xff]  ;;  %v16570_v4 = vld [vmem:[#allocation2 + $0xf1] sm:$0xff] }
  0x50   : > { %19637 = vst [vmem:[#allocation31_spill] sm:$0xff] %v16491_v52  ;;  %451 = vst.msk [vmem:[#allocation2 + $0x188] sm:$0xff] %vm250_vm1, %v16491_v52  ;;  %v16568_v3 = vld [vmem:[#allocation2 + $0xf0] sm:$0xff]  ;;  %v16572_v12 = vld [vmem:[#allocation2 + $0x108] sm:$0xff] }
  0x51   : > { %13710 = vmatmul.mubr.msk.f32.gmra.mrb[8].mxu1 %vm250_vm1, %v16470_v44  ;;  %13957 = vmatmul.mubr.msk.f32.gmra.mrb[6].mxu0 %vm250_vm1, %v16472_v45  ;;  %19638 = vst [vmem:[#allocation32_spill] sm:$0xff] %v16500_v53  ;;  %19639 = vst [vmem:[#allocation33_spill] sm:$0xff] %v16503_v54  ;;  %v16574_v13 = vld [vmem:[#allocation2 + $0x109] sm:$0xff]  ;;  %v16586_v32 = vld [vmem:[#allocation2 + $0x111] sm:$0xff] }
  0x52   : > { %13712 = vmatprep.mubr.msk.f32.mxu1 %vm250_vm1, %v16474_v46  ;;  %13959 = vmatprep.mubr.msk.f32.mxu0 %vm250_vm1, %v16476_v47  ;;  %19640 = vst [vmem:[#allocation34_spill] sm:$0xff] %v16506_v55  ;;  %452 = vst.msk [vmem:[#allocation2 + $0x190] sm:$0xff] %vm250_vm1, %v16500_v53  ;;  %v16584_v30 = vld [vmem:[#allocation2 + $0x110] sm:$0xff]  ;;  %v16588_v1 = vld [vmem:[#allocation2 + $0x128] sm:$0xff] }
  0x53   : > { %453 = vst.msk [vmem:[#allocation2 + $0x1a8] sm:$0xff] %vm250_vm1, %v16503_v54  ;;  %454 = vst.msk [vmem:[#allocation2 + $0x1b0] sm:$0xff] %vm250_vm1, %v16506_v55  ;;  %v16627_v52 = vld [vmem:[%s19424_s1 + $0x1c] sm:$0xf] }
  0x54   : > { %19641 = vst [vmem:[#allocation35_spill] sm:$0xff] %v16515_v56  ;;  %19642 = vst [vmem:[#allocation36_spill] sm:$0xff] %v16518_v57  ;;  %14045 = vmatprep.subr.msk.mxu0 %vm624_vm0, %v16627_v52 }
  0x55   : > { %19643 = vst [vmem:[#allocation37_spill] sm:$0xff] %v16521_v58  ;;  %455 = vst.msk [vmem:[#allocation2 + $0x1c8] sm:$0xff] %vm250_vm1, %v16515_v56  ;;  %13713 = vmatmul.mubr.msk.f32.gmra.mrb[10].mxu1 %vm250_vm1, %v16478_v48  ;;  %13960 = vmatmul.mubr.msk.f32.gmra.mrb[8].mxu0 %vm250_vm1, %v16480_v49  ;;  %v16616_v56 = vld [vmem:[#allocation2 + $0x150] sm:$0xff] }
  0x56   : > { %456 = vst.msk [vmem:[#allocation2 + $0x1d0] sm:$0xff] %vm250_vm1, %v16518_v57  ;;  %457 = vst.msk [vmem:[#allocation2 + $0x1e8] sm:$0xff] %vm250_vm1, %v16521_v58  ;;  %13715 = vmatprep.mubr.msk.f32.mxu1 %vm250_vm1, %v16486_v50  ;;  %13962 = vmatprep.mubr.msk.f32.mxu0 %vm250_vm1, %v16488_v51  ;;  %v16604_v58 = vld [vmem:[#allocation2 + $0x148] sm:$0xff]  ;;  %v16618_v55 = vld [vmem:[#allocation2 + $0x151] sm:$0xff] }
  0x57   : > { %19644 = vst [vmem:[#allocation38_spill] sm:$0xff] %v16530_v59  ;;  %19645 = vst [vmem:[#allocation39_spill] sm:$0xff] %v16533_v60  ;;  %v16606_v57 = vld [vmem:[#allocation2 + $0x149] sm:$0xff]  ;;  %v16641_v28 = vld [vmem:[#allocation2 + $0x171] sm:$0xff] }
  0x58   : > { %458 = vst.msk [vmem:[#allocation2 + $0x1f0] sm:$0xff] %vm250_vm1, %v16530_v59  ;;  %19646 = vst [vmem:[#allocation40_spill] sm:$0xff] %v16542_v61  ;;  %v16602_v59 = vld [vmem:[#allocation2 + $0x131] sm:$0xff]  ;;  %v16620_v54 = vld [vmem:[#allocation2 + $0x168] sm:$0xff] }
  0x59   : > { %459 = vst.msk [vmem:[#allocation2 + $0x208] sm:$0xff] %vm250_vm1, %v16533_v60  ;;  %460 = vst.msk [vmem:[#allocation2 + $0x210] sm:$0xff] %vm250_vm1, %v16542_v61  ;;  %13716 = vmatmul.mubr.msk.f32.gmra.mrb[12].mxu1 %vm250_vm1, %v16550_v62  ;;  %13963 = vmatmul.mubr.msk.f32.gmra.mrb[10].mxu0 %vm250_vm1, %v16552_v63  ;;  %v16590_v61 = vld [vmem:[#allocation2 + $0x129] sm:$0xff]  ;;  %v16657_v24 = vld [vmem:[#allocation2 + $0x191] sm:$0xff] }
  0x5a   : > { %13718 = vmatprep.mubr.msk.f32.mxu1 %vm250_vm1, %v16556_v0  ;;  %13965 = vmatprep.mubr.msk.f32.mxu0 %vm250_vm1, %v16558_v2  ;;  %v16600_v60 = vld [vmem:[#allocation2 + $0x130] sm:$0xff]  ;;  %v16643_v27 = vld [vmem:[#allocation2 + $0x188] sm:$0xff] }
  0x5b   : > { %v16622_v53 = vld [vmem:[#allocation2 + $0x169] sm:$0xff]  ;;  %v16673_v20 = vld [vmem:[#allocation2 + $0x1b1] sm:$0xff] }
  0x5c   : > { %v16639_v29 = vld [vmem:[#allocation2 + $0x170] sm:$0xff]  ;;  %v16659_v23 = vld [vmem:[#allocation2 + $0x1a8] sm:$0xff] }
  0x5d   : > { %13719 = vmatmul.mubr.msk.f32.gmra.mrb[14].mxu1 %vm250_vm1, %v16568_v3  ;;  %13966 = vmatmul.mubr.msk.f32.gmra.mrb[12].mxu0 %vm250_vm1, %v16570_v4  ;;  %v16645_v26 = vld [vmem:[#allocation2 + $0x189] sm:$0xff]  ;;  %v16689_v16 = vld [vmem:[#allocation2 + $0x1d1] sm:$0xff] }
  0x5e   : > { %13721 = vmatprep.mubr.msk.f32.mxu1 %vm250_vm1, %v16572_v12  ;;  %13968 = vmatprep.mubr.msk.f32.mxu0 %vm250_vm1, %v16574_v13  ;;  %v16655_v25 = vld [vmem:[#allocation2 + $0x190] sm:$0xff]  ;;  %v16675_v19 = vld [vmem:[#allocation2 + $0x1c8] sm:$0xff]  ;;  %19647 = vst [vmem:[#allocation41_spill] sm:$0xff] %v16689_v16 }
  0x5f   : > { %v16661_v22 = vld [vmem:[#allocation2 + $0x1a9] sm:$0xff]  ;;  %v16705_v9 = vld [vmem:[#allocation2 + $0x1f1] sm:$0xff] }
  0x60   : > { %v16671_v21 = vld [vmem:[#allocation2 + $0x1b0] sm:$0xff]  ;;  %v16691_v15 = vld [vmem:[#allocation2 + $0x1e8] sm:$0xff]  ;;  %19650 = vst [vmem:[#allocation44_spill] sm:$0xff] %v16705_v9 }
  0x61   : > { %13722 = vmatmul.mubr.msk.f32.gmra.mrb[16].mxu1 %vm250_vm1, %v16584_v30  ;;  %13969 = vmatmul.mubr.msk.f32.gmra.mrb[14].mxu0 %vm250_vm1, %v16586_v32  ;;  %v16677_v18 = vld [vmem:[#allocation2 + $0x1c9] sm:$0xff]  ;;  %19648 = vst [vmem:[#allocation42_spill] sm:$0xff] %v16691_v15  ;;  %v16716_v5 = vld [vmem:[#allocation2 + $0x211] sm:$0xff] }
  0x62   : > { %13724 = vmatprep.mubr.msk.f32.mxu1 %vm250_vm1, %v16588_v1  ;;  %13971 = vmatprep.mubr.msk.f32.mxu0 %vm250_vm1, %v16590_v61  ;;  %v16687_v17 = vld [vmem:[#allocation2 + $0x1d0] sm:$0xff]  ;;  %19652 = vst [vmem:[#allocation46_spill] sm:$0xff] %v16716_v5 }
  0x63   : > { %v16693_v14 = vld [vmem:[#allocation2 + $0x1e9] sm:$0xff] }
  0x64   : > { %19649 = vst [vmem:[#allocation43_spill] sm:$0xff] %v16693_v14  ;;  %v16703_v10 = vld [vmem:[#allocation2 + $0x1f0] sm:$0xff] }
  0x65   : > { %13725 = vmatmul.mubr.msk.f32.gmra.mrb[18].mxu1 %vm250_vm1, %v16600_v60  ;;  %13972 = vmatmul.mubr.msk.f32.gmra.mrb[16].mxu0 %vm250_vm1, %v16602_v59  ;;  %v16707_v7 = vld [vmem:[#allocation2 + $0x209] sm:$0xff] }
  0x66   : > { %13727 = vmatprep.mubr.msk.f32.mxu1 %vm250_vm1, %v16604_v58  ;;  %13974 = vmatprep.mubr.msk.f32.mxu0 %vm250_vm1, %v16606_v57  ;;  %19651 = vst [vmem:[#allocation45_spill] sm:$0xff] %v16707_v7 }
  0x69   : > { %13728 = vmatmul.mubr.msk.f32.gmra.mrb[20].mxu1 %vm250_vm1, %v16616_v56  ;;  %13975 = vmatmul.mubr.msk.f32.gmra.mrb[18].mxu0 %vm250_vm1, %v16618_v55 }
  0x6a   : > { %13730 = vmatprep.mubr.msk.f32.mxu1 %vm250_vm1, %v16620_v54  ;;  %13977 = vmatprep.mubr.msk.f32.mxu0 %vm250_vm1, %v16622_v53 }
  0x6d   : > { %13731 = vmatmul.mubr.msk.f32.gmra.mrb[22].mxu1 %vm250_vm1, %v16639_v29  ;;  %13978 = vmatmul.mubr.msk.f32.gmra.mrb[20].mxu0 %vm250_vm1, %v16641_v28 }
  0x6e   : > { %13733 = vmatprep.mubr.msk.f32.mxu1 %vm250_vm1, %v16643_v27  ;;  %13980 = vmatprep.mubr.msk.f32.mxu0 %vm250_vm1, %v16645_v26 }
  0x71   : > { %13734 = vmatmul.mubr.msk.f32.gmra.mrb[24].mxu1 %vm250_vm1, %v16655_v25  ;;  %13981 = vmatmul.mubr.msk.f32.gmra.mrb[22].mxu0 %vm250_vm1, %v16657_v24 }
  0x72   : > { %13736 = vmatprep.mubr.msk.f32.mxu1 %vm250_vm1, %v16659_v23  ;;  %13983 = vmatprep.mubr.msk.f32.mxu0 %vm250_vm1, %v16661_v22 }
  0x75   : > { %13737 = vmatmul.mubr.msk.f32.gmra.mrb[26].mxu1 %vm250_vm1, %v16671_v21  ;;  %13984 = vmatmul.mubr.msk.f32.gmra.mrb[24].mxu0 %vm250_vm1, %v16673_v20 }
  0x76   : > { %13739 = vmatprep.mubr.msk.f32.mxu1 %vm250_vm1, %v16675_v19  ;;  %13986 = vmatprep.mubr.msk.f32.mxu0 %vm250_vm1, %v16677_v18 }
  0x79   : > { %13740 = vmatmul.mubr.msk.f32.gmra.mrb[28].mxu1 %vm250_vm1, %v16687_v17  ;;  %13987 = vmatmul.mubr.msk.f32.gmra.mrb[26].mxu0 %vm250_vm1, %v16689_v16  ;;  %v16720_v16 = vld [vmem:[#allocation2 + $0x47] sm:$0xff] }
  0x7a   : > { %13742 = vmatprep.mubr.msk.f32.mxu1 %vm250_vm1, %v16691_v15  ;;  %13989 = vmatprep.mubr.msk.f32.mxu0 %vm250_vm1, %v16693_v14  ;;  %v16718_v14 = vld [vmem:[#allocation2 + $0x27] sm:$0xff]  ;;  %19654 = vst [vmem:[#allocation48_spill] sm:$0xff] %v16720_v16 }
  0x7b   : > { %19653 = vst [vmem:[#allocation47_spill] sm:$0xff] %v16718_v14  ;;  %v16725_v15 = vld [vmem:[%s19424_s1 + $0xc] sm:$0xf] }
  0x7d   : > { %13743 = vmatmul.mubr.msk.f32.gmra.mrb[30].mxu1 %vm250_vm1, %v16703_v10  ;;  %13990 = vmatmul.mubr.msk.f32.gmra.mrb[28].mxu0 %vm250_vm1, %v16705_v9  ;;  %v16740_v9 = vld [vmem:[#allocation2 + $0x67] sm:$0xff] }
  0x7e   : > { %13747 = vmatprep.mubr.msk.f32.mxu1 %vm250_vm1, %v461_v8  ;;  %13992 = vmatprep.mubr.msk.f32.mxu0 %vm250_vm1, %v16707_v7  ;;  %v16734_v8 = vld [vmem:[#allocation2 + $0x2f] sm:$0xff]  ;;  %19657 = vst [vmem:[#allocation51_spill] sm:$0xff] %v16740_v9 }
  0x7f   : > { %19655 = vst [vmem:[#allocation49_spill] sm:$0xff] %v16734_v8  ;;  %v16736_v7 = vld [vmem:[#allocation2 + $0x4f] sm:$0xff] }
  0x80   : > { %19656 = vst [vmem:[#allocation50_spill] sm:$0xff] %v16736_v7 }
  0x81   : > { %13748 = vmatmul.mubr.msk.f32.vlgmr.msra.gmra.mrb[0].mxu1 %vm250_vm1, %v462_v6  ;;  %13993 = vmatmul.mubr.msk.f32.gmra.mrb[30].mxu0 %vm250_vm1, %v16716_v5  ;;  %v16751_v6 = vld [vmem:[%s19424_s1 + $0x20] sm:$0xf]  ;;  %v16759_v5 = vld [vmem:[#allocation2 + $0x87] sm:$0xff] }
  0x82   : > { %13796 = vmatpush3.msk.msra.mxu1 %vm624_vm0, %v16325_v11  ;;  %13750 = vmatprep.mubr.msk.f32.mxu1 %vm250_vm1, %v16718_v14  ;;  %v16757_v11 = vld [vmem:[#allocation2 + $0x6f] sm:$0xff]  ;;  %19659 = vst [vmem:[#allocation53_spill] sm:$0xff] %v16759_v5 }
  0x83   : > { %13997 = vmatprep.mubr.msk.f32.mxu0 %vm250_vm1, %v16720_v16  ;;  %13845 = vmatprep.subr.msk.mxu1 %vm624_vm0, %v16725_v15  ;;  %19658 = vst [vmem:[#allocation52_spill] sm:$0xff] %v16757_v11  ;;  %v2769_v14 = vld [vmem:[#allocation2 + $0x22f] sm:$0xff] }
  0x85   : > { %13751 = vmatmul.mubr.msk.f32.gmra.mrb[2].mxu1 %vm250_vm1, %v16734_v8  ;;  %13998 = vmatmul.mubr.msk.f32.vlgmr.msra.gmra.mrb[0].mxu0 %vm250_vm1, %v16736_v7  ;;  %v16775_v8 = vld [vmem:[#allocation2 + $0xa7] sm:$0xff] }
  0x86   : > { %13753 = vmatprep.mubr.msk.f32.mxu1 %vm250_vm1, %v16720_v16  ;;  %14000 = vmatprep.mubr.msk.f32.mxu0 %vm250_vm1, %v16740_v9  ;;  %v16773_v16 = vld [vmem:[#allocation2 + $0x8f] sm:$0xff]  ;;  %19661 = vst [vmem:[#allocation55_spill] sm:$0xff] %v16775_v8 }
  0x87   : > { %14046 = vmatpush3.msk.msra.mxu0 %vm624_vm0, %v16627_v52  ;;  %19660 = vst [vmem:[#allocation54_spill] sm:$0xff] %v16773_v16  ;;  %v16785_v52 = vld [vmem:[#allocation2 + $0xaf] sm:$0xff] }
  0x88   : > { %14095 = vmatprep.subr.msk.mxu0 %vm624_vm0, %v16751_v6  ;;  %19662 = vst [vmem:[#allocation56_spill] sm:$0xff] %v16785_v52 }
  0x89   : > { %13754 = vmatmul.mubr.msk.f32.gmra.mrb[4].mxu1 %vm250_vm1, %v16736_v7  ;;  %14001 = vmatmul.mubr.msk.f32.gmra.mrb[2].mxu0 %vm250_vm1, %v16757_v11  ;;  %v2768_v7 = vld [vmem:[#allocation2 + $0x227] sm:$0xff] }
  0x8a   : > { %13756 = vmatprep.mubr.msk.f32.mxu1 %vm250_vm1, %v16740_v9  ;;  %14003 = vmatprep.mubr.msk.f32.mxu0 %vm250_vm1, %v16759_v5  ;;  %v16787_v9 = vld [vmem:[#allocation2 + $0xc7] sm:$0xff] }
  0x8b   : > { %19663 = vst [vmem:[#allocation57_spill] sm:$0xff] %v16787_v9 }
  0x8d   : > { %13757 = vmatmul.mubr.msk.f32.gmra.mrb[6].mxu1 %vm250_vm1, %v16757_v11  ;;  %14004 = vmatmul.mubr.msk.f32.gmra.mrb[4].mxu0 %vm250_vm1, %v16773_v16  ;;  %v16799_v11 = vld [vmem:[#allocation2 + $0xe7] sm:$0xff] }
  0x8e   : > { %13759 = vmatprep.mubr.msk.f32.mxu1 %vm250_vm1, %v16759_v5  ;;  %14006 = vmatprep.mubr.msk.f32.mxu0 %vm250_vm1, %v16775_v8  ;;  %v16797_v5 = vld [vmem:[#allocation2 + $0xcf] sm:$0xff]  ;;  %19665 = vst [vmem:[#allocation59_spill] sm:$0xff] %v16799_v11 }
  0x8f   : > { %19664 = vst [vmem:[#allocation58_spill] sm:$0xff] %v16797_v5 }
  0x91   : > { %13760 = vmatmul.mubr.msk.f32.gmra.mrb[8].mxu1 %vm250_vm1, %v16773_v16  ;;  %14007 = vmatmul.mubr.msk.f32.gmra.mrb[6].mxu0 %vm250_vm1, %v16785_v52  ;;  %v16811_v16 = vld [vmem:[#allocation2 + $0x107] sm:$0xff] }
  0x92   : > { %13762 = vmatprep.mubr.msk.f32.mxu1 %vm250_vm1, %v16775_v8  ;;  %14009 = vmatprep.mubr.msk.f32.mxu0 %vm250_vm1, %v16787_v9  ;;  %v16809_v8 = vld [vmem:[#allocation2 + $0xef] sm:$0xff]  ;;  %19667 = vst [vmem:[#allocation61_spill] sm:$0xff] %v16811_v16 }
  0x93   : > { %19666 = vst [vmem:[#allocation60_spill] sm:$0xff] %v16809_v8 }
  0x95   : > { %13763 = vmatmul.mubr.msk.f32.gmra.mrb[10].mxu1 %vm250_vm1, %v16785_v52  ;;  %14010 = vmatmul.mubr.msk.f32.gmra.mrb[8].mxu0 %vm250_vm1, %v16797_v5  ;;  %v16823_v52 = vld [vmem:[#allocation2 + $0x127] sm:$0xff] }
  0x96   : > { %13765 = vmatprep.mubr.msk.f32.mxu1 %vm250_vm1, %v16787_v9  ;;  %14012 = vmatprep.mubr.msk.f32.mxu0 %vm250_vm1, %v16799_v11  ;;  %v16821_v9 = vld [vmem:[#allocation2 + $0x10f] sm:$0xff]  ;;  %19669 = vst [vmem:[#allocation63_spill] sm:$0xff] %v16823_v52 }
  0x97   : > { %19668 = vst [vmem:[#allocation62_spill] sm:$0xff] %v16821_v9 }
  0x99   : > { %13766 = vmatmul.mubr.msk.f32.gmra.mrb[12].mxu1 %vm250_vm1, %v16797_v5  ;;  %14013 = vmatmul.mubr.msk.f32.gmra.mrb[10].mxu0 %vm250_vm1, %v16809_v8  ;;  %v16835_v5 = vld [vmem:[#allocation2 + $0x147] sm:$0xff] }
  0x9a   : > { %13768 = vmatprep.mubr.msk.f32.mxu1 %vm250_vm1, %v16799_v11  ;;  %14015 = vmatprep.mubr.msk.f32.mxu0 %vm250_vm1, %v16811_v16  ;;  %v16833_v11 = vld [vmem:[#allocation2 + $0x12f] sm:$0xff]  ;;  %19671 = vst [vmem:[#allocation65_spill] sm:$0xff] %v16835_v5 }
  0x9b   : > { %19670 = vst [vmem:[#allocation64_spill] sm:$0xff] %v16833_v11 }
  0x9d   : > { %13769 = vmatmul.mubr.msk.f32.gmra.mrb[14].mxu1 %vm250_vm1, %v16809_v8  ;;  %14016 = vmatmul.mubr.msk.f32.gmra.mrb[12].mxu0 %vm250_vm1, %v16821_v9  ;;  %v16847_v8 = vld [vmem:[#allocation2 + $0x167] sm:$0xff] }
  0x9e   : > { %13771 = vmatprep.mubr.msk.f32.mxu1 %vm250_vm1, %v16811_v16  ;;  %14018 = vmatprep.mubr.msk.f32.mxu0 %vm250_vm1, %v16823_v52  ;;  %v16845_v16 = vld [vmem:[#allocation2 + $0x14f] sm:$0xff]  ;;  %19673 = vst [vmem:[#allocation67_spill] sm:$0xff] %v16847_v8 }
  0x9f   : > { %19672 = vst [vmem:[#allocation66_spill] sm:$0xff] %v16845_v16 }
  0xa1   : > { %13772 = vmatmul.mubr.msk.f32.gmra.mrb[16].mxu1 %vm250_vm1, %v16821_v9  ;;  %14019 = vmatmul.mubr.msk.f32.gmra.mrb[14].mxu0 %vm250_vm1, %v16833_v11  ;;  %v16859_v9 = vld [vmem:[#allocation2 + $0x187] sm:$0xff] }
  0xa2   : > { %13774 = vmatprep.mubr.msk.f32.mxu1 %vm250_vm1, %v16823_v52  ;;  %14021 = vmatprep.mubr.msk.f32.mxu0 %vm250_vm1, %v16835_v5  ;;  %v16857_v52 = vld [vmem:[#allocation2 + $0x16f] sm:$0xff]  ;;  %19675 = vst [vmem:[#allocation69_spill] sm:$0xff] %v16859_v9 }
  0xa3   : > { %19674 = vst [vmem:[#allocation68_spill] sm:$0xff] %v16857_v52 }
  0xa5   : > { %13775 = vmatmul.mubr.msk.f32.gmra.mrb[18].mxu1 %vm250_vm1, %v16833_v11  ;;  %14022 = vmatmul.mubr.msk.f32.gmra.mrb[16].mxu0 %vm250_vm1, %v16845_v16  ;;  %v16871_v11 = vld [vmem:[#allocation2 + $0x1a7] sm:$0xff] }
  0xa6   : > { %13777 = vmatprep.mubr.msk.f32.mxu1 %vm250_vm1, %v16835_v5  ;;  %14024 = vmatprep.mubr.msk.f32.mxu0 %vm250_vm1, %v16847_v8  ;;  %v16869_v5 = vld [vmem:[#allocation2 + $0x18f] sm:$0xff]  ;;  %19677 = vst [vmem:[#allocation71_spill] sm:$0xff] %v16871_v11 }
  0xa7   : > { %19676 = vst [vmem:[#allocation70_spill] sm:$0xff] %v16869_v5 }
  0xa9   : > { %13778 = vmatmul.mubr.msk.f32.gmra.mrb[20].mxu1 %vm250_vm1, %v16845_v16  ;;  %14025 = vmatmul.mubr.msk.f32.gmra.mrb[18].mxu0 %vm250_vm1, %v16857_v52  ;;  %v16883_v16 = vld [vmem:[#allocation2 + $0x1c7] sm:$0xff] }
  0xaa   : > { %13780 = vmatprep.mubr.msk.f32.mxu1 %vm250_vm1, %v16847_v8  ;;  %14027 = vmatprep.mubr.msk.f32.mxu0 %vm250_vm1, %v16859_v9  ;;  %v16881_v8 = vld [vmem:[#allocation2 + $0x1af] sm:$0xff]  ;;  %19679 = vst [vmem:[#allocation73_spill] sm:$0xff] %v16883_v16 }
  0xab   : > { %19678 = vst [vmem:[#allocation72_spill] sm:$0xff] %v16881_v8 }
  0xad   : > { %13781 = vmatmul.mubr.msk.f32.gmra.mrb[22].mxu1 %vm250_vm1, %v16857_v52  ;;  %14028 = vmatmul.mubr.msk.f32.gmra.mrb[20].mxu0 %vm250_vm1, %v16869_v5  ;;  %v16895_v52 = vld [vmem:[#allocation2 + $0x1e7] sm:$0xff] }
  0xae   : > { %13783 = vmatprep.mubr.msk.f32.mxu1 %vm250_vm1, %v16859_v9  ;;  %14030 = vmatprep.mubr.msk.f32.mxu0 %vm250_vm1, %v16871_v11  ;;  %v16893_v9 = vld [vmem:[#allocation2 + $0x1cf] sm:$0xff] }
  0xaf   : > { %19680 = vst [vmem:[#allocation74_spill] sm:$0xff] %v16893_v9 }
  0xb1   : > { %13784 = vmatmul.mubr.msk.f32.gmra.mrb[24].mxu1 %vm250_vm1, %v16869_v5  ;;  %14031 = vmatmul.mubr.msk.f32.gmra.mrb[22].mxu0 %vm250_vm1, %v16881_v8  ;;  %v16907_v5 = vld [vmem:[#allocation2 + $0x207] sm:$0xff] }
  0xb2   : > { %13786 = vmatprep.mubr.msk.f32.mxu1 %vm250_vm1, %v16871_v11  ;;  %14033 = vmatprep.mubr.msk.f32.mxu0 %vm250_vm1, %v16883_v16  ;;  %v16905_v11 = vld [vmem:[#allocation2 + $0x1ef] sm:$0xff]  ;;  %19681 = vst [vmem:[#allocation75_spill] sm:$0xff] %v16907_v5 }
  0xb5   : > { %13787 = vmatmul.mubr.msk.f32.gmra.mrb[26].mxu1 %vm250_vm1, %v16881_v8  ;;  %14034 = vmatmul.mubr.msk.f32.gmra.mrb[24].mxu0 %vm250_vm1, %v16893_v9  ;;  %v1177_v8 = vld [vmem:[#allocation2 + $0x9] sm:$0xff] }
  0xb6   : > { %13789 = vmatprep.mubr.msk.f32.mxu1 %vm250_vm1, %v16883_v16  ;;  %14036 = vmatprep.mubr.msk.f32.mxu0 %vm250_vm1, %v16895_v52  ;;  %v16917_v16 = vld [vmem:[#allocation2 + $0x20f] sm:$0xff] }
  0xb9   : > { %13790 = vmatmul.mubr.msk.f32.gmra.mrb[28].mxu1 %vm250_vm1, %v16893_v9  ;;  %14037 = vmatmul.mubr.msk.f32.gmra.mrb[26].mxu0 %vm250_vm1, %v16905_v11  ;;  %v1178_v9 = vld [vmem:[#allocation2 + $0x11] sm:$0xff] }
  0xba   : > { %13792 = vmatprep.mubr.msk.f32.mxu1 %vm250_vm1, %v16895_v52  ;;  %14039 = vmatprep.mubr.msk.f32.mxu0 %vm250_vm1, %v16907_v5  ;;  %v16928_v5 = vld [vmem:[%s19424_s1 + $0x10] sm:$0xf] }
  0xbd   : > { %13793 = vmatmul.mubr.msk.f32.gmra.mrb[30].mxu1 %vm250_vm1, %v16905_v11  ;;  %14040 = vmatmul.mubr.msk.f32.gmra.mrb[28].mxu0 %vm250_vm1, %v16917_v16 }
  0xbe   : > { %13797 = vmatprep.mubr.msk.f32.mxu1 %vm250_vm1, %v1177_v8  ;;  %14042 = vmatprep.mubr.msk.f32.mxu0 %vm250_vm1, %v2768_v7  ;;  %v17046_v7 = vld [vmem:[#allocation2 + $0x208] sm:$0xff]  ;;  %v1966_v8 = vld [vmem:[#allocation2 + $0xb0] sm:$0xff] }
  0xc1   : > { %13798 = vmatmul.mubr.msk.f32.vlgmr.msra.gmra.mrb[0].mxu1 %vm250_vm1, %v1178_v9  ;;  %14043 = vmatmul.mubr.msk.f32.gmra.mrb[30].mxu0 %vm250_vm1, %v2769_v14  ;;  %v19683_v9 = vld [vmem:[#allocation41_spill] sm:$0xff]  ;;  %v19684_v14 = vld [vmem:[#allocation43_spill] sm:$0xff] }
  0xc2   : > { %13846 = vmatpush3.msk.msra.mxu1 %vm624_vm0, %v16725_v15  ;;  %13800 = vmatprep.mubr.msk.f32.mxu1 %vm250_vm1, %v16412_v31  ;;  %v17056_v15 = vld [vmem:[#allocation2 + $0x210] sm:$0xff]  ;;  %v3158_v31 = vld [vmem:[#allocation2 + $0x228] sm:$0xff] }
  0xc3   : > { %14047 = vmatprep.mubr.msk.f32.mxu0 %vm250_vm1, %v16425_v34  ;;  %13895 = vmatprep.subr.msk.mxu1 %vm624_vm0, %v16928_v5  ;;  %v19686_v34 = vld [vmem:[#allocation47_spill] sm:$0xff] }
  0xc5   : > { %13801 = vmatmul.mubr.msk.f32.gmra.mrb[2].mxu1 %vm250_vm1, %v16423_v33  ;;  %14048 = vmatmul.mubr.msk.f32.vlgmr.msra.gmra.mrb[0].mxu0 %vm250_vm1, %v16436_v36  ;;  %v19685_v33 = vld [vmem:[#allocation44_spill] sm:$0xff]  ;;  %v3159_v36 = vld [vmem:[#allocation2 + $0x230] sm:$0xff] }
  0xc6   : > { %13803 = vmatprep.mubr.msk.f32.mxu1 %vm250_vm1, %v16427_v35  ;;  %14050 = vmatprep.mubr.msk.f32.mxu0 %vm250_vm1, %v16440_v38  ;;  %v19687_v38 = vld [vmem:[#allocation49_spill] sm:$0xff] }
  0xc7   : > { %14096 = vmatpush3.msk.msra.mxu0 %vm624_vm0, %v16751_v6  ;;  %v1967_v6 = vld [vmem:[#allocation2 + $0xc8] sm:$0xff] }
  0xc9   : > { %13804 = vmatmul.mubr.msk.f32.gmra.mrb[4].mxu1 %vm250_vm1, %v16438_v37  ;;  %14051 = vmatmul.mubr.msk.f32.gmra.mrb[2].mxu0 %vm250_vm1, %v16454_v40  ;;  %v19688_v40 = vld [vmem:[#allocation48_spill] sm:$0xff] }
  0xca   : > { %13806 = vmatprep.mubr.msk.f32.mxu1 %vm250_vm1, %v16442_v39  ;;  %14053 = vmatprep.mubr.msk.f32.mxu0 %vm250_vm1, %v16458_v42  ;;  %v19689_v42 = vld [vmem:[#allocation50_spill] sm:$0xff] }
  0xcd   : > { %13807 = vmatmul.mubr.msk.f32.gmra.mrb[6].mxu1 %vm250_vm1, %v16456_v41  ;;  %14054 = vmatmul.mubr.msk.f32.gmra.mrb[4].mxu0 %vm250_vm1, %v16470_v44  ;;  %v19690_v44 = vld [vmem:[#allocation51_spill] sm:$0xff] }
  0xce   : > { %13809 = vmatprep.mubr.msk.f32.mxu1 %vm250_vm1, %v16460_v43  ;;  %14056 = vmatprep.mubr.msk.f32.mxu0 %vm250_vm1, %v16474_v46  ;;  %v19691_v46 = vld [vmem:[#allocation52_spill] sm:$0xff] }
  0xd1   : > { %13810 = vmatmul.mubr.msk.f32.gmra.mrb[8].mxu1 %vm250_vm1, %v16472_v45  ;;  %14057 = vmatmul.mubr.msk.f32.gmra.mrb[6].mxu0 %vm250_vm1, %v16478_v48  ;;  %v19700_v48 = vld [vmem:[#allocation61_spill] sm:$0xff] }
  0xd2   : > { %13812 = vmatprep.mubr.msk.f32.mxu1 %vm250_vm1, %v16476_v47  ;;  %14059 = vmatprep.mubr.msk.f32.mxu0 %vm250_vm1, %v16486_v50  ;;  %v19702_v50 = vld [vmem:[#allocation63_spill] sm:$0xff] }
  0xd5   : > { %13813 = vmatmul.mubr.msk.f32.gmra.mrb[10].mxu1 %vm250_vm1, %v16480_v49  ;;  %14060 = vmatmul.mubr.msk.f32.gmra.mrb[8].mxu0 %vm250_vm1, %v16550_v62  ;;  %v19706_v62 = vld [vmem:[#allocation67_spill] sm:$0xff] }
  0xd6   : > { %13815 = vmatprep.mubr.msk.f32.mxu1 %vm250_vm1, %v16488_v51  ;;  %14062 = vmatprep.mubr.msk.f32.mxu0 %vm250_vm1, %v16556_v0  ;;  %v1958_v0 = vld [vmem:[#allocation2 + $0x30] sm:$0xff] }
  0xd9   : > { %13816 = vmatmul.mubr.msk.f32.gmra.mrb[12].mxu1 %vm250_vm1, %v16552_v63  ;;  %14063 = vmatmul.mubr.msk.f32.gmra.mrb[10].mxu0 %vm250_vm1, %v16568_v3  ;;  %v1959_v3 = vld [vmem:[#allocation2 + $0x48] sm:$0xff] }
  0xda   : > { %13818 = vmatprep.mubr.msk.f32.mxu1 %vm250_vm1, %v16558_v2  ;;  %14065 = vmatprep.mubr.msk.f32.mxu0 %vm250_vm1, %v16572_v12  ;;  %v1961_v12 = vld [vmem:[#allocation2 + $0x68] sm:$0xff] }
  0xdd   : > { %13819 = vmatmul.mubr.msk.f32.gmra.mrb[14].mxu1 %vm250_vm1, %v16570_v4  ;;  %14066 = vmatmul.mubr.msk.f32.gmra.mrb[12].mxu0 %vm250_vm1, %v16584_v30  ;;  %v1964_v30 = vld [vmem:[#allocation2 + $0x90] sm:$0xff] }
  0xde   : > { %13821 = vmatprep.mubr.msk.f32.mxu1 %vm250_vm1, %v16574_v13  ;;  %14068 = vmatprep.mubr.msk.f32.mxu0 %vm250_vm1, %v16588_v1  ;;  %v19682_v1 = vld [vmem:[#allocation42_spill] sm:$0xff] }
  0xe1   : > { %13822 = vmatmul.mubr.msk.f32.gmra.mrb[16].mxu1 %vm250_vm1, %v16586_v32  ;;  %14069 = vmatmul.mubr.msk.f32.gmra.mrb[14].mxu0 %vm250_vm1, %v16600_v60  ;;  %v19705_v60 = vld [vmem:[#allocation66_spill] sm:$0xff] }
  0xe2   : > { %13824 = vmatprep.mubr.msk.f32.mxu1 %vm250_vm1, %v16590_v61  ;;  %14071 = vmatprep.mubr.msk.f32.mxu0 %vm250_vm1, %v16604_v58  ;;  %v19704_v58 = vld [vmem:[#allocation65_spill] sm:$0xff] }
  0xe5   : > { %13825 = vmatmul.mubr.msk.f32.gmra.mrb[18].mxu1 %vm250_vm1, %v16602_v59  ;;  %14072 = vmatmul.mubr.msk.f32.gmra.mrb[16].mxu0 %vm250_vm1, %v16616_v56 }
  0xe6   : > { %13827 = vmatprep.mubr.msk.f32.mxu1 %vm250_vm1, %v16606_v57  ;;  %14074 = vmatprep.mubr.msk.f32.mxu0 %vm250_vm1, %v16620_v54 }
  0xe9   : > { %13828 = vmatmul.mubr.msk.f32.gmra.mrb[20].mxu1 %vm250_vm1, %v16618_v55  ;;  %14075 = vmatmul.mubr.msk.f32.gmra.mrb[18].mxu0 %vm250_vm1, %v16639_v29 }
  0xea   : > { %13830 = vmatprep.mubr.msk.f32.mxu1 %vm250_vm1, %v16622_v53  ;;  %14077 = vmatprep.mubr.msk.f32.mxu0 %vm250_vm1, %v16643_v27 }
  0xed   : > { %13831 = vmatmul.mubr.msk.f32.gmra.mrb[22].mxu1 %vm250_vm1, %v16641_v28  ;;  %14078 = vmatmul.mubr.msk.f32.gmra.mrb[20].mxu0 %vm250_vm1, %v16655_v25 }
  0xee   : > { %13833 = vmatprep.mubr.msk.f32.mxu1 %vm250_vm1, %v16645_v26  ;;  %14080 = vmatprep.mubr.msk.f32.mxu0 %vm250_vm1, %v16659_v23 }
  0xf1   : > { %13834 = vmatmul.mubr.msk.f32.gmra.mrb[24].mxu1 %vm250_vm1, %v16657_v24  ;;  %14081 = vmatmul.mubr.msk.f32.gmra.mrb[22].mxu0 %vm250_vm1, %v16671_v21 }
  0xf2   : > { %13836 = vmatprep.mubr.msk.f32.mxu1 %vm250_vm1, %v16661_v22  ;;  %14083 = vmatprep.mubr.msk.f32.mxu0 %vm250_vm1, %v16675_v19 }
  0xf5   : > { %13837 = vmatmul.mubr.msk.f32.gmra.mrb[26].mxu1 %vm250_vm1, %v16673_v20  ;;  %14084 = vmatmul.mubr.msk.f32.gmra.mrb[24].mxu0 %vm250_vm1, %v16687_v17 }
  0xf6   : > { %13839 = vmatprep.mubr.msk.f32.mxu1 %vm250_vm1, %v16677_v18  ;;  %14086 = vmatprep.mubr.msk.f32.mxu0 %vm250_vm1, %v19682_v1 }
  0xf9   : > { %13840 = vmatmul.mubr.msk.f32.gmra.mrb[28].mxu1 %vm250_vm1, %v19683_v9  ;;  %14087 = vmatmul.mubr.msk.f32.gmra.mrb[26].mxu0 %vm250_vm1, %v16703_v10 }
  0xfa   : > { %13842 = vmatprep.mubr.msk.f32.mxu1 %vm250_vm1, %v19684_v14  ;;  %14089 = vmatprep.mubr.msk.f32.mxu0 %vm250_vm1, %v17046_v7 }
  0xfd   : > { %13843 = vmatmul.mubr.msk.f32.gmra.mrb[30].mxu1 %vm250_vm1, %v19685_v33  ;;  %14090 = vmatmul.mubr.msk.f32.gmra.mrb[28].mxu0 %vm250_vm1, %v17056_v15 }
  0xfe   : > { %13847 = vmatprep.mubr.msk.f32.mxu1 %vm250_vm1, %v19686_v34  ;;  %14092 = vmatprep.mubr.msk.f32.mxu0 %vm250_vm1, %v3158_v31  ;;  %v1972_v31 = vld [vmem:[#allocation2 + $0x110] sm:$0xff] }
  0xff   : > { %v1974_v34 = vld [vmem:[#allocation2 + $0x130] sm:$0xff] }
 0x101   : > { %13848 = vmatmul.mubr.msk.f32.vlgmr.msra.gmra.mrb[0].mxu1 %vm250_vm1, %v19687_v38  ;;  %14093 = vmatmul.mubr.msk.f32.gmra.mrb[30].mxu0 %vm250_vm1, %v3159_v36  ;;  %v1975_v36 = vld [vmem:[#allocation2 + $0x148] sm:$0xff] }
 0x102   : > { %13896 = vmatpush3.msk.msra.mxu1 %vm624_vm0, %v16928_v5  ;;  %13850 = vmatprep.mubr.msk.f32.mxu1 %vm250_vm1, %v19688_v40  ;;  %v19692_v5 = vld [vmem:[#allocation53_spill] sm:$0xff]  ;;  %v12136_v38 = vld [vmem:[%s19425_s2 + $0x8] sm:$0xff] }
 0x103   : > { %14097 = vmatprep.mubr.msk.f32.mxu0 %vm250_vm1, %v16427_v35  ;;  %v19693_v35 = vld [vmem:[#allocation54_spill] sm:$0xff]  ;;  %14145 = vmatprep.subr.mxu1 %v12136_v38 }
 0x105   : > { %13851 = vmatmul.mubr.msk.f32.gmra.mrb[2].mxu1 %vm250_vm1, %v19689_v42  ;;  %14098 = vmatmul.mubr.msk.f32.vlgmr.msra.gmra.mrb[0].mxu0 %vm250_vm1, %v16438_v37  ;;  %v19694_v37 = vld [vmem:[#allocation55_spill] sm:$0xff] }
 0x106   : > { %13853 = vmatprep.mubr.msk.f32.mxu1 %vm250_vm1, %v19690_v44  ;;  %14100 = vmatprep.mubr.msk.f32.mxu0 %vm250_vm1, %v16442_v39  ;;  %v19695_v39 = vld [vmem:[#allocation56_spill] sm:$0xff] }
 0x109   : > { %13854 = vmatmul.mubr.msk.f32.gmra.mrb[4].mxu1 %vm250_vm1, %v19691_v46  ;;  %14101 = vmatmul.mubr.msk.f32.gmra.mrb[2].mxu0 %vm250_vm1, %v16456_v41  ;;  %v19696_v41 = vld [vmem:[#allocation57_spill] sm:$0xff] }
 0x10a   : > { %13856 = vmatprep.mubr.msk.f32.mxu1 %vm250_vm1, %v19692_v5  ;;  %14103 = vmatprep.mubr.msk.f32.mxu0 %vm250_vm1, %v16460_v43  ;;  %v19697_v43 = vld [vmem:[#allocation58_spill] sm:$0xff] }
 0x10d   : > { %13857 = vmatmul.mubr.msk.f32.gmra.mrb[6].mxu1 %vm250_vm1, %v19693_v35  ;;  %14104 = vmatmul.mubr.msk.f32.gmra.mrb[4].mxu0 %vm250_vm1, %v16472_v45  ;;  %v19698_v45 = vld [vmem:[#allocation59_spill] sm:$0xff] }
 0x10e   : > { %13859 = vmatprep.mubr.msk.f32.mxu1 %vm250_vm1, %v19694_v37  ;;  %14106 = vmatprep.mubr.msk.f32.mxu0 %vm250_vm1, %v16476_v47  ;;  %v19699_v47 = vld [vmem:[#allocation60_spill] sm:$0xff] }
 0x111   : > { %13860 = vmatmul.mubr.msk.f32.gmra.mrb[8].mxu1 %vm250_vm1, %v19695_v39  ;;  %14107 = vmatmul.mubr.msk.f32.gmra.mrb[6].mxu0 %vm250_vm1, %v16480_v49  ;;  %v19701_v49 = vld [vmem:[#allocation62_spill] sm:$0xff] }
 0x112   : > { %13862 = vmatprep.mubr.msk.f32.mxu1 %vm250_vm1, %v19696_v41  ;;  %14109 = vmatprep.mubr.msk.f32.mxu0 %vm250_vm1, %v16488_v51  ;;  %v19703_v51 = vld [vmem:[#allocation64_spill] sm:$0xff] }
 0x115   : > { %13863 = vmatmul.mubr.msk.f32.gmra.mrb[10].mxu1 %vm250_vm1, %v19697_v43  ;;  %14110 = vmatmul.mubr.msk.f32.gmra.mrb[8].mxu0 %vm250_vm1, %v16552_v63  ;;  %v19716_v63 = vld [vmem:[#allocation46_spill] sm:$0xff] }
 0x116   : > { %13865 = vmatprep.mubr.msk.f32.mxu1 %vm250_vm1, %v19698_v45  ;;  %14112 = vmatprep.mubr.msk.f32.mxu0 %vm250_vm1, %v16558_v2  ;;  %v3549_v2 = vld [vmem:[#allocation2 + $0x231] sm:$0xff] }
 0x119   : > { %13866 = vmatmul.mubr.msk.f32.gmra.mrb[12].mxu1 %vm250_vm1, %v19699_v47  ;;  %14113 = vmatmul.mubr.msk.f32.gmra.mrb[10].mxu0 %vm250_vm1, %v16570_v4  ;;  %v1960_v4 = vld [vmem:[#allocation2 + $0x50] sm:$0xff] }
 0x11a   : > { %13868 = vmatprep.mubr.msk.f32.mxu1 %vm250_vm1, %v19700_v48  ;;  %14115 = vmatprep.mubr.msk.f32.mxu0 %vm250_vm1, %v16574_v13  ;;  %v1963_v13 = vld [vmem:[#allocation2 + $0x88] sm:$0xff] }
 0x11d   : > { %13869 = vmatmul.mubr.msk.f32.gmra.mrb[14].mxu1 %vm250_vm1, %v19701_v49  ;;  %14116 = vmatmul.mubr.msk.f32.gmra.mrb[12].mxu0 %vm250_vm1, %v16586_v32  ;;  %v1965_v32 = vld [vmem:[#allocation2 + $0xa8] sm:$0xff] }
 0x11e   : > { %13871 = vmatprep.mubr.msk.f32.mxu1 %vm250_vm1, %v19702_v50  ;;  %14118 = vmatprep.mubr.msk.f32.mxu0 %vm250_vm1, %v16590_v61  ;;  %v19707_v61 = vld [vmem:[#allocation68_spill] sm:$0xff] }
 0x121   : > { %13872 = vmatmul.mubr.msk.f32.gmra.mrb[16].mxu1 %vm250_vm1, %v19703_v51  ;;  %14119 = vmatmul.mubr.msk.f32.gmra.mrb[14].mxu0 %vm250_vm1, %v16602_v59  ;;  %v19708_v59 = vld [vmem:[#allocation69_spill] sm:$0xff] }
 0x122   : > { %13874 = vmatprep.mubr.msk.f32.mxu1 %vm250_vm1, %v19704_v58  ;;  %14121 = vmatprep.mubr.msk.f32.mxu0 %vm250_vm1, %v16606_v57  ;;  %v19709_v57 = vld [vmem:[#allocation70_spill] sm:$0xff] }
 0x125   : > { %13875 = vmatmul.mubr.msk.f32.gmra.mrb[18].mxu1 %vm250_vm1, %v19705_v60  ;;  %14122 = vmatmul.mubr.msk.f32.gmra.mrb[16].mxu0 %vm250_vm1, %v16618_v55  ;;  %v19710_v55 = vld [vmem:[#allocation71_spill] sm:$0xff] }
 0x126   : > { %13877 = vmatprep.mubr.msk.f32.mxu1 %vm250_vm1, %v19706_v62  ;;  %14124 = vmatprep.mubr.msk.f32.mxu0 %vm250_vm1, %v16622_v53  ;;  %v19711_v53 = vld [vmem:[#allocation72_spill] sm:$0xff] }
 0x129   : > { %13878 = vmatmul.mubr.msk.f32.gmra.mrb[20].mxu1 %vm250_vm1, %v19707_v61  ;;  %14125 = vmatmul.mubr.msk.f32.gmra.mrb[18].mxu0 %vm250_vm1, %v16641_v28  ;;  %v19712_v28 = vld [vmem:[#allocation73_spill] sm:$0xff] }
 0x12a   : > { %13880 = vmatprep.mubr.msk.f32.mxu1 %vm250_vm1, %v19708_v59  ;;  %14127 = vmatprep.mubr.msk.f32.mxu0 %vm250_vm1, %v16645_v26  ;;  %v19713_v26 = vld [vmem:[#allocation74_spill] sm:$0xff] }
 0x12d   : > { %13881 = vmatmul.mubr.msk.f32.gmra.mrb[22].mxu1 %vm250_vm1, %v19709_v57  ;;  %14128 = vmatmul.mubr.msk.f32.gmra.mrb[20].mxu0 %vm250_vm1, %v16657_v24  ;;  %v3548_v24 = vld [vmem:[#allocation2 + $0x229] sm:$0xff] }
 0x12e   : > { %13883 = vmatprep.mubr.msk.f32.mxu1 %vm250_vm1, %v19710_v55  ;;  %14130 = vmatprep.mubr.msk.f32.mxu0 %vm250_vm1, %v16661_v22  ;;  %v1957_v22 = vld [vmem:[#allocation2 + $0x28] sm:$0xff] }
 0x131   : > { %13884 = vmatmul.mubr.msk.f32.gmra.mrb[24].mxu1 %vm250_vm1, %v19711_v53  ;;  %14131 = vmatmul.mubr.msk.f32.gmra.mrb[22].mxu0 %vm250_vm1, %v16673_v20  ;;  %v19714_v20 = vld [vmem:[#allocation75_spill] sm:$0xff]  ;;  %v17446_v53 = vld [vmem:[%s19428_s5] ss:$0 sm:$0xff] }
 0x132   : > { %13886 = vmatprep.mubr.msk.f32.mxu1 %vm250_vm1, %v19712_v28  ;;  %14133 = vmatprep.mubr.msk.f32.mxu0 %vm250_vm1, %v16677_v18  ;;  %v19715_v18 = vld [vmem:[#allocation45_spill] sm:$0xff] }
 0x135   : > { %13887 = vmatmul.mubr.msk.f32.gmra.mrb[26].mxu1 %vm250_vm1, %v19713_v26  ;;  %14134 = vmatmul.mubr.msk.f32.gmra.mrb[24].mxu0 %vm250_vm1, %v19683_v9  ;;  %v1970_v9 = vld [vmem:[#allocation2 + $0xf0] sm:$0xff] }
 0x136   : > { %13889 = vmatprep.mubr.msk.f32.mxu1 %vm250_vm1, %v16895_v52  ;;  %14136 = vmatprep.mubr.msk.f32.mxu0 %vm250_vm1, %v19684_v14  ;;  %v1969_v52 = vld [vmem:[#allocation2 + $0xe8] sm:$0xff] }
 0x137   : > { %v1971_v14 = vld [vmem:[#allocation2 + $0x108] sm:$0xff] }
 0x139   : > { %13890 = vmatmul.mubr.msk.f32.gmra.mrb[28].mxu1 %vm250_vm1, %v16905_v11  ;;  %14137 = vmatmul.mubr.msk.f32.gmra.mrb[26].mxu0 %vm250_vm1, %v19685_v33  ;;  %v1968_v11 = vld [vmem:[#allocation2 + $0xd0] sm:$0xff]  ;;  %v1973_v33 = vld [vmem:[#allocation2 + $0x128] sm:$0xff] }
 0x13a   : > { %13892 = vmatprep.mubr.msk.f32.mxu1 %vm250_vm1, %v19714_v20  ;;  %14139 = vmatprep.mubr.msk.f32.mxu0 %vm250_vm1, %v19715_v18 }
 0x13d   : > { %13893 = vmatmul.mubr.msk.f32.gmra.mrb[30].mxu1 %vm250_vm1, %v16917_v16  ;;  %14140 = vmatmul.mubr.msk.f32.gmra.mrb[28].mxu0 %vm250_vm1, %v19716_v63  ;;  %v1962_v16 = vld [vmem:[#allocation2 + $0x70] sm:$0xff] }
 0x13e   : > { %13897 = vmatprep.mubr.msk.f32.mxu1 %vm250_vm1, %v1957_v22  ;;  %14142 = vmatprep.mubr.msk.f32.mxu0 %vm250_vm1, %v3548_v24 }
 0x141   : > { %13898 = vmatmul.mubr.msk.f32.vlgmr.msra.gmra.mrb[0].mxu1 %vm250_vm1, %v1958_v0  ;;  %14143 = vmatmul.mubr.msk.f32.gmra.mrb[30].mxu0 %vm250_vm1, %v3549_v2 }
 0x142   : > { %13900 = vmatprep.mubr.msk.f32.mxu1 %vm250_vm1, %v1959_v3  ;;  %14146 = vmatpush3.msra.mxu1 %v12136_v38 }
 0x145   : > { %13901 = vmatmul.mubr.msk.f32.gmra.mrb[2].mxu1 %vm250_vm1, %v1960_v4 }
 0x146   : > { %13903 = vmatprep.mubr.msk.f32.mxu1 %vm250_vm1, %v1961_v12 }
 0x149   : > { %13904 = vmatmul.mubr.msk.f32.gmra.mrb[4].mxu1 %vm250_vm1, %v1962_v16 }
 0x14a   : > { %13906 = vmatprep.mubr.msk.f32.mxu1 %vm250_vm1, %v1963_v13 }
 0x14d   : > { %13907 = vmatmul.mubr.msk.f32.gmra.mrb[6].mxu1 %vm250_vm1, %v1964_v30 }
 0x14e   : > { %13909 = vmatprep.mubr.msk.f32.mxu1 %vm250_vm1, %v1965_v32 }
 0x151   : > { %13910 = vmatmul.mubr.msk.f32.gmra.mrb[8].mxu1 %vm250_vm1, %v1966_v8 }
 0x152   : > { %13912 = vmatprep.mubr.msk.f32.mxu1 %vm250_vm1, %v1967_v6 }
 0x155   : > { %13913 = vmatmul.mubr.msk.f32.gmra.mrb[10].mxu1 %vm250_vm1, %v1968_v11 }
 0x156   : > { %13915 = vmatprep.mubr.msk.f32.mxu1 %vm250_vm1, %v1969_v52 }
 0x159   : > { %13916 = vmatmul.mubr.msk.f32.gmra.mrb[12].mxu1 %vm250_vm1, %v1970_v9 }
 0x15a   : > { %13918 = vmatprep.mubr.msk.f32.mxu1 %vm250_vm1, %v1971_v14 }
 0x15d   : > { %13919 = vmatmul.mubr.msk.f32.gmra.mrb[14].mxu1 %vm250_vm1, %v1972_v31 }
 0x15e   : > { %13921 = vmatprep.mubr.msk.f32.mxu1 %vm250_vm1, %v1973_v33 }
 0x161   : > { %13922 = vmatmul.mubr.msk.f32.gmra.mrb[16].mxu1 %vm250_vm1, %v1974_v34 }
 0x162   : > { %13924 = vmatprep.mubr.msk.f32.mxu1 %vm250_vm1, %v1975_v36 }
 0x165   : > { %13925 = vmatmul.mubr.msk.f32.gmra.mrb[18].mxu1 %vm250_vm1, %v16616_v56 }
 0x166   : > { %13927 = vmatprep.mubr.msk.f32.mxu1 %vm250_vm1, %v16620_v54  ;;  %v17392_v54 = vld [vmem:[%s19425_s2 + $0x10] sm:$0xff] }
 0x169   : > { %13928 = vmatmul.mubr.msk.f32.gmra.mrb[20].mxu1 %vm250_vm1, %v16639_v29 }
 0x16a   : > { %13930 = vmatprep.mubr.msk.f32.mxu1 %vm250_vm1, %v16643_v27 }
 0x16d   : > { %13931 = vmatmul.mubr.msk.f32.gmra.mrb[22].mxu1 %vm250_vm1, %v16655_v25 }
 0x16e   : > { %13933 = vmatprep.mubr.msk.f32.mxu1 %vm250_vm1, %v16659_v23 }
 0x171   : > { %13934 = vmatmul.mubr.msk.f32.gmra.mrb[24].mxu1 %vm250_vm1, %v16671_v21  ;;  %v19717_v21 = vmov 0.0  }
 0x172   : > { %13936 = vmatprep.mubr.msk.f32.mxu1 %vm250_vm1, %v16675_v19  ;;  %330 = vst.msk [vmem:[#allocation3 + $0x30] sm:$0xff] %vm323_vm2, %v19717_v21  ;;  %324 = vst.msk [vmem:[#allocation3] sm:$0xff] %vm323_vm2, %v19717_v21  ;;  %v4106_v19 = vld [vmem:[%s19425_s2] sm:$0xff] }
 0x173   : > { %325 = vst.msk [vmem:[#allocation3 + $0x8] sm:$0xff] %vm323_vm2, %v19717_v21  ;;  %326 = vst.msk [vmem:[#allocation3 + $0x10] sm:$0xff] %vm323_vm2, %v19717_v21  ;;  %14195 = vmatprep.subr.mxu1 %v4106_v19 }
 0x174   : > { %327 = vst.msk [vmem:[#allocation3 + $0x18] sm:$0xff] %vm323_vm2, %v19717_v21  ;;  %328 = vst.msk [vmem:[#allocation3 + $0x20] sm:$0xff] %vm323_vm2, %v19717_v21 }
 0x175   : > { %13937 = vmatmul.mubr.msk.f32.gmra.mrb[26].mxu1 %vm250_vm1, %v16687_v17  ;;  %329 = vst.msk [vmem:[#allocation3 + $0x28] sm:$0xff] %vm323_vm2, %v19717_v21  ;;  %331 = vst.msk [vmem:[#allocation3 + $0x38] sm:$0xff] %vm323_vm2, %v19717_v21 }
 0x176   : > { %13939 = vmatprep.mubr.msk.f32.mxu1 %vm250_vm1, %v19682_v1  ;;  %332 = vst.msk [vmem:[#allocation3 + $0x40] sm:$0xff] %vm323_vm2, %v19717_v21  ;;  %333 = vst.msk [vmem:[#allocation3 + $0x48] sm:$0xff] %vm323_vm2, %v19717_v21 }
 0x177   : > { %334 = vst.msk [vmem:[#allocation3 + $0x50] sm:$0xff] %vm323_vm2, %v19717_v21  ;;  %335 = vst.msk [vmem:[#allocation3 + $0x58] sm:$0xff] %vm323_vm2, %v19717_v21 }
 0x178   : > { %336 = vst.msk [vmem:[#allocation3 + $0x60] sm:$0xff] %vm323_vm2, %v19717_v21  ;;  %337 = vst.msk [vmem:[#allocation3 + $0x68] sm:$0xff] %vm323_vm2, %v19717_v21 }
 0x179   : > { %13940 = vmatmul.mubr.msk.f32.gmra.mrb[28].mxu1 %vm250_vm1, %v16703_v10  ;;  %338 = vst.msk [vmem:[#allocation3 + $0x70] sm:$0xff] %vm323_vm2, %v19717_v21  ;;  %339 = vst.msk [vmem:[#allocation3 + $0x78] sm:$0xff] %vm323_vm2, %v19717_v21 }
 0x17a   : > { %13942 = vmatprep.mubr.msk.f32.mxu1 %vm250_vm1, %v17046_v7  ;;  %340 = vst.msk [vmem:[#allocation3 + $0x80] sm:$0xff] %vm323_vm2, %v19717_v21  ;;  %341 = vst.msk [vmem:[#allocation3 + $0x88] sm:$0xff] %vm323_vm2, %v19717_v21  ;;  %v4107_v10 = vld [vmem:[#allocation3 + $0x8] sm:$0xff]  ;;  %v4108_v17 = vld [vmem:[#allocation3 + $0x10] sm:$0xff] }
 0x17b   : > { %342 = vst.msk [vmem:[#allocation3 + $0x90] sm:$0xff] %vm323_vm2, %v19717_v21  ;;  %343 = vst.msk [vmem:[#allocation3 + $0x98] sm:$0xff] %vm323_vm2, %v19717_v21 }
 0x17c   : > { %344 = vst.msk [vmem:[#allocation3 + $0xa0] sm:$0xff] %vm323_vm2, %v19717_v21  ;;  %345 = vst.msk [vmem:[#allocation3 + $0xa8] sm:$0xff] %vm323_vm2, %v19717_v21 }
 0x17d   : > { %13943 = vmatmul.mubr.msk.f32.gmra.mrb[30].mxu1 %vm250_vm1, %v17056_v15  ;;  %346 = vst.msk [vmem:[#allocation3 + $0xb0] sm:$0xff] %vm323_vm2, %v19717_v21  ;;  %347 = vst.msk [vmem:[#allocation3 + $0xb8] sm:$0xff] %vm323_vm2, %v19717_v21 }
 0x17e   : > { %348 = vst.msk [vmem:[#allocation3 + $0xc0] sm:$0xff] %vm323_vm2, %v19717_v21  ;;  %349 = vst.msk [vmem:[#allocation3 + $0xc8] sm:$0xff] %vm323_vm2, %v19717_v21  ;;  %14147 = vmatprep.mubr.msk.f32.mxu1 %vm323_vm2, %v4107_v10 }
 0x17f   : > { %350 = vst.msk [vmem:[#allocation3 + $0xd0] sm:$0xff] %vm323_vm2, %v19717_v21  ;;  %351 = vst.msk [vmem:[#allocation3 + $0xd8] sm:$0xff] %vm323_vm2, %v19717_v21 }
 0x180   : > { %352 = vst.msk [vmem:[#allocation3 + $0xe0] sm:$0xff] %vm323_vm2, %v19717_v21  ;;  %353 = vst.msk [vmem:[#allocation3 + $0xe8] sm:$0xff] %vm323_vm2, %v19717_v21 }
 0x181   : > { %354 = vst.msk [vmem:[#allocation3 + $0xf0] sm:$0xff] %vm323_vm2, %v19717_v21  ;;  %355 = vst.msk [vmem:[#allocation3 + $0xf8] sm:$0xff] %vm323_vm2, %v19717_v21  ;;  %14148 = vmatmul.mubr.msk.f32.vlgmr.msra.gmra.mrb[32].mxu1 %vm323_vm2, %v4108_v17 }
 0x182   : > { %356 = vst.msk [vmem:[#allocation3 + $0x100] sm:$0xff] %vm323_vm2, %v19717_v21  ;;  %357 = vst.msk [vmem:[#allocation3 + $0x108] sm:$0xff] %vm323_vm2, %v19717_v21  ;;  %14196 = vmatpush3.msra.mxu1 %v4106_v19 }
 0x183   : > { %358 = vst.msk [vmem:[#allocation3 + $0x110] sm:$0xff] %vm323_vm2, %v19717_v21  ;;  %359 = vst.msk [vmem:[#allocation3 + $0x118] sm:$0xff] %vm323_vm2, %v19717_v21  ;;  %14245 = vmatprep.subr.mxu1 %v17392_v54 }
 0x184   : > { %360 = vst.msk [vmem:[#allocation3 + $0x120] sm:$0xff] %vm323_vm2, %v19717_v21  ;;  %361 = vst.msk [vmem:[#allocation3 + $0x128] sm:$0xff] %vm323_vm2, %v19717_v21 }
 0x185   : > { %362 = vst.msk [vmem:[#allocation3 + $0x130] sm:$0xff] %vm323_vm2, %v19717_v21  ;;  %363 = vst.msk [vmem:[#allocation3 + $0x138] sm:$0xff] %vm323_vm2, %v19717_v21 }
 0x186   : > { %364 = vst.msk [vmem:[#allocation3 + $0x140] sm:$0xff] %vm323_vm2, %v19717_v21  ;;  %365 = vst.msk [vmem:[#allocation3 + $0x148] sm:$0xff] %vm323_vm2, %v19717_v21 }
 0x187   : > { %366 = vst.msk [vmem:[#allocation3 + $0x150] sm:$0xff] %vm323_vm2, %v19717_v21  ;;  %367 = vst.msk [vmem:[#allocation3 + $0x158] sm:$0xff] %vm323_vm2, %v19717_v21 }
 0x188   : > { %368 = vst.msk [vmem:[#allocation3 + $0x160] sm:$0xff] %vm323_vm2, %v19717_v21  ;;  %369 = vst.msk [vmem:[#allocation3 + $0x168] sm:$0xff] %vm323_vm2, %v19717_v21 }
 0x189   : > { %370 = vst.msk [vmem:[#allocation3 + $0x170] sm:$0xff] %vm323_vm2, %v19717_v21  ;;  %371 = vst.msk [vmem:[#allocation3 + $0x178] sm:$0xff] %vm323_vm2, %v19717_v21 }
 0x18a   : > { %372 = vst.msk [vmem:[#allocation3 + $0x180] sm:$0xff] %vm323_vm2, %v19717_v21  ;;  %373 = vst.msk [vmem:[#allocation3 + $0x188] sm:$0xff] %vm323_vm2, %v19717_v21 }
 0x18b   : > { %374 = vst.msk [vmem:[#allocation3 + $0x190] sm:$0xff] %vm323_vm2, %v19717_v21  ;;  %375 = vst.msk [vmem:[#allocation3 + $0x198] sm:$0xff] %vm323_vm2, %v19717_v21 }
 0x18c   : > { %376 = vst.msk [vmem:[#allocation3 + $0x1a0] sm:$0xff] %vm323_vm2, %v19717_v21  ;;  %377 = vst.msk [vmem:[#allocation3 + $0x1a8] sm:$0xff] %vm323_vm2, %v19717_v21 }
 0x18d   : > { %378 = vst.msk [vmem:[#allocation3 + $0x1b0] sm:$0xff] %vm323_vm2, %v19717_v21  ;;  %379 = vst.msk [vmem:[#allocation3 + $0x1b8] sm:$0xff] %vm323_vm2, %v19717_v21 }
 0x18e   : > { %380 = vst.msk [vmem:[#allocation3 + $0x1c0] sm:$0xff] %vm323_vm2, %v19717_v21  ;;  %381 = vst.msk [vmem:[#allocation3 + $0x1c8] sm:$0xff] %vm323_vm2, %v19717_v21 }
 0x18f   : > { %382 = vst.msk [vmem:[#allocation3 + $0x1d0] sm:$0xff] %vm323_vm2, %v19717_v21  ;;  %383 = vst.msk [vmem:[#allocation3 + $0x1d8] sm:$0xff] %vm323_vm2, %v19717_v21 }
 0x190   : > { %384 = vst.msk [vmem:[#allocation3 + $0x1e0] sm:$0xff] %vm323_vm2, %v19717_v21  ;;  %385 = vst.msk [vmem:[#allocation3 + $0x1e8] sm:$0xff] %vm323_vm2, %v19717_v21 }
 0x191   : > { %386 = vst.msk [vmem:[#allocation3 + $0x1f0] sm:$0xff] %vm323_vm2, %v19717_v21  ;;  %387 = vst.msk [vmem:[#allocation3 + $0x1f8] sm:$0xff] %vm323_vm2, %v19717_v21 }
 0x192   : > { %388 = vst.msk [vmem:[#allocation3 + $0x200] sm:$0xff] %vm323_vm2, %v19717_v21  ;;  %389 = vst.msk [vmem:[#allocation3 + $0x208] sm:$0xff] %vm323_vm2, %v19717_v21 }
 0x193   : > { %390 = vst.msk [vmem:[#allocation3 + $0x210] sm:$0xff] %vm323_vm2, %v19717_v21  ;;  %391 = vst.msk [vmem:[#allocation3 + $0x218] sm:$0xff] %vm323_vm2, %v19717_v21 }
 0x194   : > { %392 = vst.msk [vmem:[#allocation3 + $0x220] sm:$0xff] %vm323_vm2, %v19717_v21  ;;  %393 = vst.msk [vmem:[#allocation3 + $0x228] sm:$0xff] %vm323_vm2, %v19717_v21 }
 0x195   : > { %394 = vst.msk [vmem:[#allocation3 + $0x230] sm:$0xff] %vm323_vm2, %v19717_v21  ;;  %395 = vst.msk [vmem:[#allocation3 + $0x238] sm:$0xff] %vm323_vm2, %v19717_v21 }
 0x1d8   : > { %v14099_v23 = vpop.f32.mrb[0].mxu0 }
 0x1d9   : > { %v3717_v25 = vpop.f32.mrb[1].mxu0 }
 0x1dc   : > { %v14102_v27 = vpop.f32.mrb[2].mxu0 }
 0x1dd   : > { %v3727_v29 = vpop.f32.mrb[3].mxu0 }
 0x1e0   : > { %v14105_v56 = vpop.f32.mrb[4].mxu0 }
 0x1e1   : > { %v3737_v1 = vpop.f32.mrb[5].mxu0 }
 0x1e4   : > { %v17395_v7 = vpop.f32.mrb[6].mxu0 }
 0x1e5   : > { %v17397_v15 = vpop.f32.mrb[7].mxu0 }
 0x1e8   : > { %v17399_v40 = vpop.f32.mrb[8].mxu0 }
 0x1e9   : > { %v17401_v42 = vpop.f32.mrb[9].mxu0 }
 0x1ec   : > { %v17403_v44 = vpop.f32.mrb[10].mxu0 }
 0x1ed   : > { %v17405_v46 = vpop.f32.mrb[11].mxu0 }
 0x1f0   : > { %v17407_v5 = vpop.f32.mrb[12].mxu0 }
 0x1f1   : > { %v17409_v35 = vpop.f32.mrb[13].mxu0 }
 0x1f4   : > { %v17411_v37 = vpop.f32.mrb[14].mxu0 }
 0x1f5   : > { %v17413_v39 = vpop.f32.mrb[15].mxu0 }
 0x1f8   : > { %v17415_v41 = vpop.f32.mrb[16].mxu0 }
 0x1f9   : > { %v17417_v43 = vpop.f32.mrb[17].mxu0 }
 0x1fc   : > { %v17419_v45 = vpop.f32.mrb[18].mxu0 }
 0x1fd   : > { %v17421_v47 = vpop.f32.mrb[19].mxu0 }
 0x200   : > { %v17423_v48 = vpop.f32.mrb[20].mxu0 }
 0x201   : > { %v17425_v49 = vpop.f32.mrb[21].mxu0 }
 0x204   : > { %v17427_v50 = vpop.f32.mrb[22].mxu0 }
 0x205   : > { %v17429_v51 = vpop.f32.mrb[23].mxu0 }
 0x208   : > { %v17431_v58 = vpop.f32.mrb[24].mxu0 }
 0x209   : > { %v17433_v60 = vpop.f32.mrb[25].mxu0 }
 0x20c   : > { %v17435_v62 = vpop.f32.mrb[26].mxu0 }
 0x20d   : > { %v17437_v61 = vpop.f32.mrb[27].mxu0 }
 0x210   : > { %v17439_v59 = vpop.f32.mrb[28].mxu0 }
 0x211   : > { %v17441_v57 = vpop.f32.mrb[29].mxu0 }
 0x214   : > { %v13899_v55 = vpop.f32.mrb[0].mxu1  ;;  %v17448_v28 = vpop.f32.mrb[30].mxu0 }
 0x215   : > { %v15095_v26 = vadd.f32 %v14099_v23, %v13899_v55  ;;  %v2156_v20 = vpop.f32.mrb[1].mxu1  ;;  %v17450_v18 = vpop.f32.mrb[31].mxu0 }
 0x216   : > { %v15096_v22 = vadd.f32 %v3717_v25, %v2156_v20 }
 0x217   : > { %v3914_v24 = vadd.f32 %v15095_v26, %v17446_v53 }
 0x218   : > { %v3913_v63 = vadd.f32 %v15096_v22, %v17446_v53  ;;  %v13902_v0 = vpop.f32.mrb[2].mxu1 }
 0x219   : > { %vm3946_vm3 = vcmp.ge.f32.partialorder %v3914_v24, 0.0  ;;  %v3978_v2 = vmul.f32 0.1, %v3914_v24  ;;  %v15097_v3 = vadd.f32 %v14102_v27, %v13902_v0  ;;  %v2166_v4 = vpop.f32.mrb[3].mxu1 }
 0x21a   : > { %vm3945_vm4 = vcmp.ge.f32.partialorder %v3913_v63, 0.0  ;;  %v3977_v12 = vmul.f32 0.1, %v3913_v63  ;;  %v15098_v16 = vadd.f32 %v3727_v29, %v2166_v4 }
 0x21b   : > { %v4010_v13 = vsel %vm3946_vm3, %v3914_v24, %v3978_v2  ;;  %v3916_v30 = vadd.f32 %v15097_v3, %v17446_v53 }
 0x21c   : > { %4043 = vst.msk [vmem:[#allocation3 + $0x30] sm:$0xff] %vm323_vm2, %v4010_v13  ;;  %v4009_v32 = vsel %vm3945_vm4, %v3913_v63, %v3977_v12  ;;  %v3915_v8 = vadd.f32 %v15098_v16, %v17446_v53  ;;  %v13905_v6 = vpop.f32.mrb[4].mxu1 }
 0x21d   : > { %4042 = vst.msk [vmem:[#allocation3 + $0x28] sm:$0xff] %vm323_vm2, %v4009_v32  ;;  %vm3948_vm5 = vcmp.ge.f32.partialorder %v3916_v30, 0.0  ;;  %v3980_v11 = vmul.f32 0.1, %v3916_v30  ;;  %v15099_v52 = vadd.f32 %v14105_v56, %v13905_v6  ;;  %v2176_v9 = vpop.f32.mrb[5].mxu1 }
 0x21e   : > { %vm3947_vm6 = vcmp.ge.f32.partialorder %v3915_v8, 0.0  ;;  %v3979_v14 = vmul.f32 0.1, %v3915_v8  ;;  %v15100_v31 = vadd.f32 %v3737_v1, %v2176_v9 }
 0x21f   : > { %v4012_v33 = vsel %vm3948_vm5, %v3916_v30, %v3980_v11  ;;  %v3918_v34 = vadd.f32 %v15099_v52, %v17446_v53 }
 0x220   : > { %4045 = vst.msk [vmem:[#allocation3 + $0x50] sm:$0xff] %vm323_vm2, %v4012_v33  ;;  %v4011_v36 = vsel %vm3947_vm6, %v3915_v8, %v3979_v14  ;;  %v3917_v38 = vadd.f32 %v15100_v31, %v17446_v53  ;;  %v13908_v21 = vpop.f32.mrb[6].mxu1 }
 0x221   : > { %4044 = vst.msk [vmem:[#allocation3 + $0x48] sm:$0xff] %vm323_vm2, %v4011_v36  ;;  %vm3950_vm7 = vcmp.ge.f32.partialorder %v3918_v34, 0.0  ;;  %v3982_v10 = vmul.f32 0.1, %v3918_v34  ;;  %v15101_v17 = vadd.f32 %v17395_v7, %v13908_v21  ;;  %v2186_v19 = vpop.f32.mrb[7].mxu1 }
 0x222   : > { %vm3949_vm8 = vcmp.ge.f32.partialorder %v3917_v38, 0.0  ;;  %v3981_v23 = vmul.f32 0.1, %v3917_v38  ;;  %v15102_v25 = vadd.f32 %v17397_v15, %v2186_v19 }
 0x223   : > { %v4014_v27 = vsel %vm3950_vm7, %v3918_v34, %v3982_v10  ;;  %v3920_v29 = vadd.f32 %v15101_v17, %v17446_v53  ;;  %v17473_v15 = vld [vmem:[#allocation3 + $0x30] sm:$0xff] }
 0x224   : > { %4047 = vst.msk [vmem:[#allocation3 + $0x70] sm:$0xff] %vm323_vm2, %v4014_v27  ;;  %v4013_v56 = vsel %vm3949_vm8, %v3917_v38, %v3981_v23  ;;  %v3919_v1 = vadd.f32 %v15102_v25, %v17446_v53  ;;  %v13911_v55 = vpop.f32.mrb[8].mxu1  ;;  %v17467_v26 = vld [vmem:[#allocation3 + $0x28] sm:$0xff] }
 0x225   : > { %4046 = vst.msk [vmem:[#allocation3 + $0x68] sm:$0xff] %vm323_vm2, %v4013_v56  ;;  %vm3952_vm9 = vcmp.ge.f32.partialorder %v3920_v29, 0.0  ;;  %v3984_v7 = vmul.f32 0.1, %v3920_v29  ;;  %v15103_v20 = vadd.f32 %v17399_v40, %v13911_v55  ;;  %v2196_v22 = vpop.f32.mrb[9].mxu1  ;;  %14150 = vmatprep.mubr.msk.f32.mxu1 %vm323_vm2, %v17467_v26 }
 0x226   : > { %vm3951_vm10 = vcmp.ge.f32.partialorder %v3919_v1, 0.0  ;;  %v3983_v24 = vmul.f32 0.1, %v3919_v1  ;;  %v15104_v63 = vadd.f32 %v17401_v42, %v2196_v22  ;;  %14151 = vmatmul.mubr.msk.f32.gmra.mrb[34].mxu1 %vm323_vm2, %v17473_v15 }
 0x227   : > { %v4016_v0 = vsel %vm3952_vm9, %v3920_v29, %v3984_v7  ;;  %v3922_v2 = vadd.f32 %v15103_v20, %v17446_v53  ;;  %v17487_v30 = vld [vmem:[#allocation3 + $0x50] sm:$0xff] }
 0x228   : > { %4049 = vst.msk [vmem:[#allocation3 + $0x90] sm:$0xff] %vm323_vm2, %v4016_v0  ;;  %v4015_v3 = vsel %vm3951_vm10, %v3919_v1, %v3983_v24  ;;  %v3921_v40 = vadd.f32 %v15104_v63, %v17446_v53  ;;  %v13914_v4 = vpop.f32.mrb[10].mxu1  ;;  %v17481_v12 = vld [vmem:[#allocation3 + $0x48] sm:$0xff] }
 0x229   : > { %4048 = vst.msk [vmem:[#allocation3 + $0x88] sm:$0xff] %vm323_vm2, %v4015_v3  ;;  %vm3954_vm11 = vcmp.ge.f32.partialorder %v3922_v2, 0.0  ;;  %v3986_v16 = vmul.f32 0.1, %v3922_v2  ;;  %v15105_v42 = vadd.f32 %v17403_v44, %v13914_v4  ;;  %v2206_v13 = vpop.f32.mrb[11].mxu1  ;;  %14153 = vmatprep.mubr.msk.f32.mxu1 %vm323_vm2, %v17481_v12 }
 0x22a   : > { %vm3953_vm12 = vcmp.ge.f32.partialorder %v3921_v40, 0.0  ;;  %v3985_v32 = vmul.f32 0.1, %v3921_v40  ;;  %v15106_v8 = vadd.f32 %v17405_v46, %v2206_v13  ;;  %14154 = vmatmul.mubr.msk.f32.gmra.mrb[36].mxu1 %vm323_vm2, %v17487_v30 }
 0x22b   : > { %v4018_v6 = vsel %vm3954_vm11, %v3922_v2, %v3986_v16  ;;  %v3924_v11 = vadd.f32 %v15105_v42, %v17446_v53  ;;  %v17501_v34 = vld [vmem:[#allocation3 + $0x70] sm:$0xff] }
 0x22c   : > { %4051 = vst.msk [vmem:[#allocation3 + $0xb0] sm:$0xff] %vm323_vm2, %v4018_v6  ;;  %v4017_v52 = vsel %vm3953_vm12, %v3921_v40, %v3985_v32  ;;  %v3923_v44 = vadd.f32 %v15106_v8, %v17446_v53  ;;  %v13917_v9 = vpop.f32.mrb[12].mxu1  ;;  %v17495_v14 = vld [vmem:[#allocation3 + $0x68] sm:$0xff] }
 0x22d   : > { %4050 = vst.msk [vmem:[#allocation3 + $0xa8] sm:$0xff] %vm323_vm2, %v4017_v52  ;;  %vm3956_vm13 = vcmp.ge.f32.partialorder %v3924_v11, 0.0  ;;  %v3988_v31 = vmul.f32 0.1, %v3924_v11  ;;  %v15107_v46 = vadd.f32 %v17407_v5, %v13917_v9  ;;  %v2216_v33 = vpop.f32.mrb[13].mxu1  ;;  %14156 = vmatprep.mubr.msk.f32.mxu1 %vm323_vm2, %v17495_v14 }
 0x22e   : > { %vm3955_vm14 = vcmp.ge.f32.partialorder %v3923_v44, 0.0  ;;  %v3987_v36 = vmul.f32 0.1, %v3923_v44  ;;  %v15108_v38 = vadd.f32 %v17409_v35, %v2216_v33  ;;  %14157 = vmatmul.mubr.msk.f32.gmra.mrb[38].mxu1 %vm323_vm2, %v17501_v34 }
 0x22f   : > { %v4020_v21 = vsel %vm3956_vm13, %v3924_v11, %v3988_v31  ;;  %v3926_v10 = vadd.f32 %v15107_v46, %v17446_v53  ;;  %v17515_v29 = vld [vmem:[#allocation3 + $0x90] sm:$0xff] }
 0x230   : > { %4053 = vst.msk [vmem:[#allocation3 + $0xd0] sm:$0xff] %vm323_vm2, %v4020_v21  ;;  %v4019_v17 = vsel %vm3955_vm14, %v3923_v44, %v3987_v36  ;;  %v3925_v5 = vadd.f32 %v15108_v38, %v17446_v53  ;;  %v13920_v19 = vpop.f32.mrb[14].mxu1  ;;  %v17509_v23 = vld [vmem:[#allocation3 + $0x88] sm:$0xff] }
 0x231   : > { %4052 = vst.msk [vmem:[#allocation3 + $0xc8] sm:$0xff] %vm323_vm2, %v4019_v17  ;;  %vm3958_vm15 = vcmp.ge.f32.partialorder %v3926_v10, 0.0  ;;  %v3990_v25 = vmul.f32 0.1, %v3926_v10  ;;  %v15109_v35 = vadd.f32 %v17411_v37, %v13920_v19  ;;  %v2226_v27 = vpop.f32.mrb[15].mxu1  ;;  %14159 = vmatprep.mubr.msk.f32.mxu1 %vm323_vm2, %v17509_v23 }
 0x232   : > { %vm3957_vm3 = vcmp.ge.f32.partialorder %v3925_v5, 0.0  ;;  %v3989_v56 = vmul.f32 0.1, %v3925_v5  ;;  %v15110_v1 = vadd.f32 %v17413_v39, %v2226_v27  ;;  %14160 = vmatmul.mubr.msk.f32.gmra.mrb[40].mxu1 %vm323_vm2, %v17515_v29 }
 0x233   : > { %v4022_v55 = vsel %vm3958_vm15, %v3926_v10, %v3990_v25  ;;  %v3928_v7 = vadd.f32 %v15109_v35, %v17446_v53  ;;  %v17529_v2 = vld [vmem:[#allocation3 + $0xb0] sm:$0xff] }
 0x234   : > { %4055 = vst.msk [vmem:[#allocation3 + $0xf0] sm:$0xff] %vm323_vm2, %v4022_v55  ;;  %v4021_v20 = vsel %vm3957_vm3, %v3925_v5, %v3989_v56  ;;  %v3927_v37 = vadd.f32 %v15110_v1, %v17446_v53  ;;  %v13923_v22 = vpop.f32.mrb[16].mxu1  ;;  %v17523_v24 = vld [vmem:[#allocation3 + $0xa8] sm:$0xff] }
 0x235   : > { %4054 = vst.msk [vmem:[#allocation3 + $0xe8] sm:$0xff] %vm323_vm2, %v4021_v20  ;;  %vm3960_vm4 = vcmp.ge.f32.partialorder %v3928_v7, 0.0  ;;  %v3992_v63 = vmul.f32 0.1, %v3928_v7  ;;  %v15111_v39 = vadd.f32 %v17415_v41, %v13923_v22  ;;  %v2236_v0 = vpop.f32.mrb[17].mxu1  ;;  %14162 = vmatprep.mubr.msk.f32.mxu1 %vm323_vm2, %v17523_v24 }
 0x236   : > { %vm3959_vm5 = vcmp.ge.f32.partialorder %v3927_v37, 0.0  ;;  %v3991_v3 = vmul.f32 0.1, %v3927_v37  ;;  %v15112_v40 = vadd.f32 %v17417_v43, %v2236_v0  ;;  %14163 = vmatmul.mubr.msk.f32.gmra.mrb[42].mxu1 %vm323_vm2, %v17529_v2 }
 0x237   : > { %v4024_v4 = vsel %vm3960_vm4, %v3928_v7, %v3992_v63  ;;  %v3930_v16 = vadd.f32 %v15111_v39, %v17446_v53  ;;  %v17543_v11 = vld [vmem:[#allocation3 + $0xd0] sm:$0xff] }
 0x238   : > { %4057 = vst.msk [vmem:[#allocation3 + $0x110] sm:$0xff] %vm323_vm2, %v4024_v4  ;;  %v4023_v42 = vsel %vm3959_vm5, %v3927_v37, %v3991_v3  ;;  %v3929_v41 = vadd.f32 %v15112_v40, %v17446_v53  ;;  %v13926_v13 = vpop.f32.mrb[18].mxu1  ;;  %v17537_v32 = vld [vmem:[#allocation3 + $0xc8] sm:$0xff] }
 0x239   : > { %4056 = vst.msk [vmem:[#allocation3 + $0x108] sm:$0xff] %vm323_vm2, %v4023_v42  ;;  %vm3962_vm6 = vcmp.ge.f32.partialorder %v3930_v16, 0.0  ;;  %v3994_v8 = vmul.f32 0.1, %v3930_v16  ;;  %v15113_v43 = vadd.f32 %v17419_v45, %v13926_v13  ;;  %v2246_v6 = vpop.f32.mrb[19].mxu1  ;;  %14165 = vmatprep.mubr.msk.f32.mxu1 %vm323_vm2, %v17537_v32 }
 0x23a   : > { %vm3961_vm7 = vcmp.ge.f32.partialorder %v3929_v41, 0.0  ;;  %v3993_v52 = vmul.f32 0.1, %v3929_v41  ;;  %v15114_v44 = vadd.f32 %v17421_v47, %v2246_v6  ;;  %14166 = vmatmul.mubr.msk.f32.gmra.mrb[44].mxu1 %vm323_vm2, %v17543_v11 }
 0x23b   : > { %v4026_v9 = vsel %vm3962_vm6, %v3930_v16, %v3994_v8  ;;  %v3932_v31 = vadd.f32 %v15113_v43, %v17446_v53  ;;  %v17557_v10 = vld [vmem:[#allocation3 + $0xf0] sm:$0xff] }
 0x23c   : > { %4059 = vst.msk [vmem:[#allocation3 + $0x130] sm:$0xff] %vm323_vm2, %v4026_v9  ;;  %v4025_v46 = vsel %vm3961_vm7, %v3929_v41, %v3993_v52  ;;  %v3931_v45 = vadd.f32 %v15114_v44, %v17446_v53  ;;  %v13929_v33 = vpop.f32.mrb[20].mxu1  ;;  %v17551_v36 = vld [vmem:[#allocation3 + $0xe8] sm:$0xff] }
 0x23d   : > { %4058 = vst.msk [vmem:[#allocation3 + $0x128] sm:$0xff] %vm323_vm2, %v4025_v46  ;;  %vm3964_vm8 = vcmp.ge.f32.partialorder %v3932_v31, 0.0  ;;  %v3996_v38 = vmul.f32 0.1, %v3932_v31  ;;  %v15115_v47 = vadd.f32 %v17423_v48, %v13929_v33  ;;  %v2256_v21 = vpop.f32.mrb[21].mxu1  ;;  %14168 = vmatprep.mubr.msk.f32.mxu1 %vm323_vm2, %v17551_v36 }
 0x23e   : > { %vm3963_vm9 = vcmp.ge.f32.partialorder %v3931_v45, 0.0  ;;  %v3995_v17 = vmul.f32 0.1, %v3931_v45  ;;  %v15116_v5 = vadd.f32 %v17425_v49, %v2256_v21  ;;  %14169 = vmatmul.mubr.msk.f32.gmra.mrb[46].mxu1 %vm323_vm2, %v17557_v10 }
 0x23f   : > { %v4028_v19 = vsel %vm3964_vm8, %v3932_v31, %v3996_v38  ;;  %v3934_v25 = vadd.f32 %v15115_v47, %v17446_v53  ;;  %v17571_v7 = vld [vmem:[#allocation3 + $0x110] sm:$0xff] }
 0x240   : > { %4061 = vst.msk [vmem:[#allocation3 + $0x150] sm:$0xff] %vm323_vm2, %v4028_v19  ;;  %v4027_v35 = vsel %vm3963_vm9, %v3931_v45, %v3995_v17  ;;  %v3933_v48 = vadd.f32 %v15116_v5, %v17446_v53  ;;  %v13932_v27 = vpop.f32.mrb[22].mxu1  ;;  %v17565_v56 = vld [vmem:[#allocation3 + $0x108] sm:$0xff] }
 0x241   : > { %4060 = vst.msk [vmem:[#allocation3 + $0x148] sm:$0xff] %vm323_vm2, %v4027_v35  ;;  %vm3966_vm10 = vcmp.ge.f32.partialorder %v3934_v25, 0.0  ;;  %v3998_v1 = vmul.f32 0.1, %v3934_v25  ;;  %v15117_v49 = vadd.f32 %v17427_v50, %v13932_v27  ;;  %v2266_v55 = vpop.f32.mrb[23].mxu1  ;;  %14171 = vmatprep.mubr.msk.f32.mxu1 %vm323_vm2, %v17565_v56 }
 0x242   : > { %vm3965_vm11 = vcmp.ge.f32.partialorder %v3933_v48, 0.0  ;;  %v3997_v20 = vmul.f32 0.1, %v3933_v48  ;;  %v15118_v37 = vadd.f32 %v17429_v51, %v2266_v55  ;;  %14172 = vmatmul.mubr.msk.f32.gmra.mrb[48].mxu1 %vm323_vm2, %v17571_v7 }
 0x243   : > { %v4030_v22 = vsel %vm3966_vm10, %v3934_v25, %v3998_v1  ;;  %v3936_v63 = vadd.f32 %v15117_v49, %v17446_v53  ;;  %v17585_v16 = vld [vmem:[#allocation3 + $0x130] sm:$0xff] }
 0x244   : > { %4063 = vst.msk [vmem:[#allocation3 + $0x170] sm:$0xff] %vm323_vm2, %v4030_v22  ;;  %v4029_v39 = vsel %vm3965_vm11, %v3933_v48, %v3997_v20  ;;  %v3935_v50 = vadd.f32 %v15118_v37, %v17446_v53  ;;  %v13935_v0 = vpop.f32.mrb[24].mxu1  ;;  %v17579_v3 = vld [vmem:[#allocation3 + $0x128] sm:$0xff] }
 0x245   : > { %4062 = vst.msk [vmem:[#allocation3 + $0x168] sm:$0xff] %vm323_vm2, %v4029_v39  ;;  %vm3968_vm12 = vcmp.ge.f32.partialorder %v3936_v63, 0.0  ;;  %v4000_v40 = vmul.f32 0.1, %v3936_v63  ;;  %v15119_v51 = vadd.f32 %v17431_v58, %v13935_v0  ;;  %v2276_v4 = vpop.f32.mrb[25].mxu1  ;;  %14174 = vmatprep.mubr.msk.f32.mxu1 %vm323_vm2, %v17579_v3 }
 0x246   : > { %vm3967_vm13 = vcmp.ge.f32.partialorder %v3935_v50, 0.0  ;;  %v3999_v42 = vmul.f32 0.1, %v3935_v50  ;;  %v15120_v41 = vadd.f32 %v17433_v60, %v2276_v4  ;;  %14175 = vmatmul.mubr.msk.f32.gmra.mrb[50].mxu1 %vm323_vm2, %v17585_v16 }
 0x247   : > { %v4032_v13 = vsel %vm3968_vm12, %v3936_v63, %v4000_v40  ;;  %v3938_v8 = vadd.f32 %v15119_v51, %v17446_v53  ;;  %v17599_v31 = vld [vmem:[#allocation3 + $0x150] sm:$0xff] }
 0x248   : > { %4065 = vst.msk [vmem:[#allocation3 + $0x190] sm:$0xff] %vm323_vm2, %v4032_v13  ;;  %v4031_v43 = vsel %vm3967_vm13, %v3935_v50, %v3999_v42  ;;  %v3937_v58 = vadd.f32 %v15120_v41, %v17446_v53  ;;  %v13938_v6 = vpop.f32.mrb[26].mxu1  ;;  %v17593_v52 = vld [vmem:[#allocation3 + $0x148] sm:$0xff] }
 0x249   : > { %4064 = vst.msk [vmem:[#allocation3 + $0x188] sm:$0xff] %vm323_vm2, %v4031_v43  ;;  %vm3970_vm14 = vcmp.ge.f32.partialorder %v3938_v8, 0.0  ;;  %v4002_v44 = vmul.f32 0.1, %v3938_v8  ;;  %v15121_v60 = vadd.f32 %v17435_v62, %v13938_v6  ;;  %v2286_v9 = vpop.f32.mrb[27].mxu1  ;;  %14177 = vmatprep.mubr.msk.f32.mxu1 %vm323_vm2, %v17593_v52  ;;  %v4074_v6 = vld [vmem:[#allocation3 + $0x7] sm:$0xff] }
 0x24a   : > { %vm3969_vm15 = vcmp.ge.f32.partialorder %v3937_v58, 0.0  ;;  %v4001_v46 = vmul.f32 0.1, %v3937_v58  ;;  %v15122_v45 = vadd.f32 %v17437_v61, %v2286_v9  ;;  %14178 = vmatmul.mubr.msk.f32.gmra.mrb[52].mxu1 %vm323_vm2, %v17599_v31  ;;  %v17666_v9 = vld [vmem:[%s19425_s2 + $0x18] sm:$0xff] }
 0x24b   : > { %v4034_v33 = vsel %vm3970_vm14, %v3938_v8, %v4002_v44  ;;  %v3940_v38 = vadd.f32 %v15121_v60, %v17446_v53  ;;  %v17613_v25 = vld [vmem:[#allocation3 + $0x170] sm:$0xff] }
 0x24c   : > { %4067 = vst.msk [vmem:[#allocation3 + $0x1b0] sm:$0xff] %vm323_vm2, %v4034_v33  ;;  %v4033_v47 = vsel %vm3969_vm15, %v3937_v58, %v4001_v46  ;;  %v3939_v62 = vadd.f32 %v15122_v45, %v17446_v53  ;;  %v13941_v21 = vpop.f32.mrb[28].mxu1  ;;  %v17607_v17 = vld [vmem:[#allocation3 + $0x168] sm:$0xff] }
 0x24d   : > { %4066 = vst.msk [vmem:[#allocation3 + $0x1a8] sm:$0xff] %vm323_vm2, %v4033_v47  ;;  %vm3972_vm3 = vcmp.ge.f32.partialorder %v3940_v38, 0.0  ;;  %v4004_v5 = vmul.f32 0.1, %v3940_v38  ;;  %v15123_v61 = vadd.f32 %v17439_v59, %v13941_v21  ;;  %v2296_v19 = vpop.f32.mrb[29].mxu1  ;;  %14180 = vmatprep.mubr.msk.f32.mxu1 %vm323_vm2, %v17607_v17  ;;  %v4075_v60 = vld [vmem:[#allocation3 + $0xf] sm:$0xff] }
 0x24e   : > { %vm3971_vm4 = vcmp.ge.f32.partialorder %v3939_v62, 0.0  ;;  %v4003_v35 = vmul.f32 0.1, %v3939_v62  ;;  %v15124_v48 = vadd.f32 %v17441_v57, %v2296_v19  ;;  %14181 = vmatmul.mubr.msk.f32.gmra.mrb[54].mxu1 %vm323_vm2, %v17613_v25  ;;  %v17669_v46 = vld [vmem:[#allocation3 + $0x27] sm:$0xff]  ;;  %v17675_v45 = vld [vmem:[#allocation3 + $0x2f] sm:$0xff] }
 0x24f   : > { %v4036_v27 = vsel %vm3972_vm3, %v3940_v38, %v4004_v5  ;;  %v3942_v1 = vadd.f32 %v15123_v61, %v17446_v53  ;;  %v17627_v63 = vld [vmem:[#allocation3 + $0x190] sm:$0xff]  ;;  %v17679_v33 = vld [vmem:[#allocation3 + $0x47] sm:$0xff] }
 0x250   : > { %4069 = vst.msk [vmem:[#allocation3 + $0x1d0] sm:$0xff] %vm323_vm2, %v4036_v27  ;;  %v4035_v49 = vsel %vm3971_vm4, %v3939_v62, %v4003_v35  ;;  %v3941_v59 = vadd.f32 %v15124_v48, %v17446_v53  ;;  %v13944_v55 = vpop.f32.mrb[30].mxu1  ;;  %v17621_v20 = vld [vmem:[#allocation3 + $0x188] sm:$0xff] }
 0x251   : > { %4068 = vst.msk [vmem:[#allocation3 + $0x1c8] sm:$0xff] %vm323_vm2, %v4035_v49  ;;  %vm3974_vm5 = vcmp.ge.f32.partialorder %v3942_v1, 0.0  ;;  %v4006_v37 = vmul.f32 0.1, %v3942_v1  ;;  %v15125_v57 = vadd.f32 %v17448_v28, %v13944_v55  ;;  %v2306_v22 = vpop.f32.mrb[31].mxu1  ;;  %14183 = vmatprep.mubr.msk.f32.mxu1 %vm323_vm2, %v17621_v20  ;;  %v17683_v38 = vld [vmem:[#allocation3 + $0x4f] sm:$0xff] }
 0x252   : > { %vm3973_vm6 = vcmp.ge.f32.partialorder %v3941_v59, 0.0  ;;  %v4005_v39 = vmul.f32 0.1, %v3941_v59  ;;  %v15126_v50 = vadd.f32 %v17450_v18, %v2306_v22  ;;  %14184 = vmatmul.mubr.msk.f32.gmra.mrb[56].mxu1 %vm323_vm2, %v17627_v63  ;;  %v17691_v47 = vld [vmem:[#allocation3 + $0x6f] sm:$0xff]  ;;  %v17695_v62 = vld [vmem:[#allocation3 + $0x87] sm:$0xff] }
 0x253   : > { %v4038_v0 = vsel %vm3974_vm5, %v3942_v1, %v4006_v37  ;;  %v3944_v40 = vadd.f32 %v15125_v57, %v17446_v53  ;;  %v17640_v18 = vld [vmem:[#allocation3 + $0x1b0] sm:$0xff]  ;;  %v17703_v5 = vld [vmem:[#allocation3 + $0xa7] sm:$0xff] }
 0x254   : > { %4071 = vst.msk [vmem:[#allocation3 + $0x1f0] sm:$0xff] %vm323_vm2, %v4038_v0  ;;  %v4037_v51 = vsel %vm3973_vm6, %v3941_v59, %v4005_v39  ;;  %v3943_v28 = vadd.f32 %v15126_v50, %v17446_v53  ;;  %v17635_v4 = vld [vmem:[#allocation3 + $0x1a8] sm:$0xff] }
 0x255   : > { %4070 = vst.msk [vmem:[#allocation3 + $0x1e8] sm:$0xff] %vm323_vm2, %v4037_v51  ;;  %vm3976_vm7 = vcmp.ge.f32.partialorder %v3944_v40, 0.0  ;;  %v4008_v42 = vmul.f32 0.1, %v3944_v40  ;;  %14186 = vmatprep.mubr.msk.f32.mxu1 %vm323_vm2, %v17635_v4  ;;  %v17699_v21 = vld [vmem:[#allocation3 + $0x8f] sm:$0xff]  ;;  %v17711_v19 = vld [vmem:[#allocation3 + $0xc7] sm:$0xff] }
 0x256   : > { %vm3975_vm8 = vcmp.ge.f32.partialorder %v3943_v28, 0.0  ;;  %v4007_v41 = vmul.f32 0.1, %v3943_v28  ;;  %14187 = vmatmul.mubr.msk.f32.gmra.mrb[58].mxu1 %vm323_vm2, %v17640_v18  ;;  %v17707_v61 = vld [vmem:[#allocation3 + $0xaf] sm:$0xff]  ;;  %v17719_v48 = vld [vmem:[#allocation3 + $0xe7] sm:$0xff] }
 0x257   : > { %v4040_v13 = vsel %vm3976_vm7, %v3944_v40, %v4008_v42  ;;  %v17650_v43 = vld [vmem:[#allocation3 + $0x1d0] sm:$0xff]  ;;  %v17727_v1 = vld [vmem:[#allocation3 + $0x107] sm:$0xff] }
 0x258   : > { %4073 = vst.msk [vmem:[#allocation3 + $0x210] sm:$0xff] %vm323_vm2, %v4040_v13  ;;  %v4039_v53 = vsel %vm3975_vm8, %v3943_v28, %v4007_v41  ;;  %v17645_v8 = vld [vmem:[#allocation3 + $0x1c8] sm:$0xff] }
 0x259   : > { %4072 = vst.msk [vmem:[#allocation3 + $0x208] sm:$0xff] %vm323_vm2, %v4039_v53  ;;  %14189 = vmatprep.mubr.msk.f32.mxu1 %vm323_vm2, %v17645_v8  ;;  %v17715_v35 = vld [vmem:[#allocation3 + $0xcf] sm:$0xff]  ;;  %v17735_v59 = vld [vmem:[#allocation3 + $0x127] sm:$0xff] }
 0x25a   : > { %14190 = vmatmul.mubr.msk.f32.gmra.mrb[60].mxu1 %vm323_vm2, %v17650_v43  ;;  %v17723_v27 = vld [vmem:[#allocation3 + $0xef] sm:$0xff]  ;;  %v17743_v37 = vld [vmem:[#allocation3 + $0x147] sm:$0xff] }
 0x25b   : > { %v17658_v44 = vld [vmem:[#allocation3 + $0x1f0] sm:$0xff]  ;;  %v17751_v22 = vld [vmem:[#allocation3 + $0x167] sm:$0xff] }
 0x25c   : > { %v17654_v58 = vld [vmem:[#allocation3 + $0x1e8] sm:$0xff]  ;;  %19719 = vst [vmem:[#allocation41_spill] sm:$0xff] %v17658_v44 }
 0x25d   : > { %19718 = vst [vmem:[#allocation42_spill] sm:$0xff] %v17654_v58  ;;  %14192 = vmatprep.mubr.msk.f32.mxu1 %vm323_vm2, %v17654_v58  ;;  %v17731_v49 = vld [vmem:[#allocation3 + $0x10f] sm:$0xff]  ;;  %v17759_v50 = vld [vmem:[#allocation3 + $0x187] sm:$0xff] }
 0x25e   : > { %14193 = vmatmul.mubr.msk.f32.gmra.mrb[62].mxu1 %vm323_vm2, %v17658_v44  ;;  %v17739_v55 = vld [vmem:[#allocation3 + $0x12f] sm:$0xff]  ;;  %v17767_v40 = vld [vmem:[#allocation3 + $0x1a7] sm:$0xff] }
 0x25f   : > { %14197 = vmatprep.mubr.msk.f32.mxu1 %vm323_vm2, %v4074_v6  ;;  %v17747_v57 = vld [vmem:[#allocation3 + $0x14f] sm:$0xff]  ;;  %v17775_v28 = vld [vmem:[#allocation3 + $0x1c7] sm:$0xff] }
 0x260   : > { %v17755_v39 = vld [vmem:[#allocation3 + $0x16f] sm:$0xff]  ;;  %v17783_v41 = vld [vmem:[#allocation3 + $0x1e7] sm:$0xff] }
 0x261   : > { %v17763_v0 = vld [vmem:[#allocation3 + $0x18f] sm:$0xff] }
 0x262   : > { %14198 = vmatmul.mubr.msk.f32.vlgmr.msra.gmra.mrb[32].mxu1 %vm323_vm2, %v4075_v60  ;;  %v17771_v51 = vld [vmem:[#allocation3 + $0x1af] sm:$0xff]  ;;  %v17795_v60 = vld [vmem:[%s19425_s2 + $0x20] sm:$0xff] }
 0x263   : > { %14246 = vmatpush3.msra.mxu1 %v17392_v54  ;;  %14200 = vmatprep.mubr.msk.f32.mxu1 %vm323_vm2, %v17669_v46  ;;  %v17687_v54 = vld [vmem:[#allocation3 + $0x67] sm:$0xff]  ;;  %v17779_v42 = vld [vmem:[#allocation3 + $0x1cf] sm:$0xff] }
 0x264   : > { %14295 = vmatprep.subr.mxu1 %v17666_v9  ;;  %v4783_v13 = vld [vmem:[#allocation3 + $0x9] sm:$0xff]  ;;  %v4784_v6 = vld [vmem:[#allocation3 + $0x11] sm:$0xff] }
 0x265   : > { %v17787_v53 = vld [vmem:[#allocation3 + $0x1ef] sm:$0xff] }
 0x266   : > { %14201 = vmatmul.mubr.msk.f32.gmra.mrb[34].mxu1 %vm323_vm2, %v17675_v45  ;;  %v17798_v44 = vld [vmem:[#allocation3 + $0x29] sm:$0xff]  ;;  %v17804_v58 = vld [vmem:[#allocation3 + $0x31] sm:$0xff] }
 0x267   : > { %14203 = vmatprep.mubr.msk.f32.mxu1 %vm323_vm2, %v17679_v33  ;;  %19720 = vst [vmem:[#allocation43_spill] sm:$0xff] %v17798_v44  ;;  %19721 = vst [vmem:[#allocation44_spill] sm:$0xff] %v17804_v58 }
 0x26a   : > { %14204 = vmatmul.mubr.msk.f32.gmra.mrb[36].mxu1 %vm323_vm2, %v17683_v38 }
 0x26b   : > { %14206 = vmatprep.mubr.msk.f32.mxu1 %vm323_vm2, %v17687_v54 }
 0x26e   : > { %14207 = vmatmul.mubr.msk.f32.gmra.mrb[38].mxu1 %vm323_vm2, %v17691_v47 }
 0x26f   : > { %14209 = vmatprep.mubr.msk.f32.mxu1 %vm323_vm2, %v17695_v62 }
 0x272   : > { %14210 = vmatmul.mubr.msk.f32.gmra.mrb[40].mxu1 %vm323_vm2, %v17699_v21 }
 0x273   : > { %14212 = vmatprep.mubr.msk.f32.mxu1 %vm323_vm2, %v17703_v5 }
 0x276   : > { %14213 = vmatmul.mubr.msk.f32.gmra.mrb[42].mxu1 %vm323_vm2, %v17707_v61 }
 0x277   : > { %14215 = vmatprep.mubr.msk.f32.mxu1 %vm323_vm2, %v17711_v19 }
 0x27a   : > { %14216 = vmatmul.mubr.msk.f32.gmra.mrb[44].mxu1 %vm323_vm2, %v17715_v35 }
 0x27b   : > { %14218 = vmatprep.mubr.msk.f32.mxu1 %vm323_vm2, %v17719_v48 }
 0x27e   : > { %14219 = vmatmul.mubr.msk.f32.gmra.mrb[46].mxu1 %vm323_vm2, %v17723_v27 }
 0x27f   : > { %14221 = vmatprep.mubr.msk.f32.mxu1 %vm323_vm2, %v17727_v1 }
 0x282   : > { %14222 = vmatmul.mubr.msk.f32.gmra.mrb[48].mxu1 %vm323_vm2, %v17731_v49 }
 0x283   : > { %14224 = vmatprep.mubr.msk.f32.mxu1 %vm323_vm2, %v17735_v59 }
 0x286   : > { %14225 = vmatmul.mubr.msk.f32.gmra.mrb[50].mxu1 %vm323_vm2, %v17739_v55 }
 0x287   : > { %14227 = vmatprep.mubr.msk.f32.mxu1 %vm323_vm2, %v17743_v37 }
 0x28a   : > { %14228 = vmatmul.mubr.msk.f32.gmra.mrb[52].mxu1 %vm323_vm2, %v17747_v57 }
 0x28b   : > { %14230 = vmatprep.mubr.msk.f32.mxu1 %vm323_vm2, %v17751_v22 }
 0x28e   : > { %14231 = vmatmul.mubr.msk.f32.gmra.mrb[54].mxu1 %vm323_vm2, %v17755_v39 }
 0x28f   : > { %14233 = vmatprep.mubr.msk.f32.mxu1 %vm323_vm2, %v17759_v50 }
 0x292   : > { %14234 = vmatmul.mubr.msk.f32.gmra.mrb[56].mxu1 %vm323_vm2, %v17763_v0 }
 0x293   : > { %14236 = vmatprep.mubr.msk.f32.mxu1 %vm323_vm2, %v17767_v40 }
 0x296   : > { %14237 = vmatmul.mubr.msk.f32.gmra.mrb[58].mxu1 %vm323_vm2, %v17771_v51 }
 0x297   : > { %14239 = vmatprep.mubr.msk.f32.mxu1 %vm323_vm2, %v17775_v28 }
 0x29a   : > { %14240 = vmatmul.mubr.msk.f32.gmra.mrb[60].mxu1 %vm323_vm2, %v17779_v42 }
 0x29b   : > { %14242 = vmatprep.mubr.msk.f32.mxu1 %vm323_vm2, %v17783_v41 }
 0x29e   : > { %14243 = vmatmul.mubr.msk.f32.gmra.mrb[62].mxu1 %vm323_vm2, %v17787_v53 }
 0x29f   : > { %14247 = vmatprep.mubr.msk.f32.mxu1 %vm323_vm2, %v4783_v13  ;;  %v17808_v13 = vld [vmem:[#allocation3 + $0x49] sm:$0xff] }
 0x2a0   : > { %19722 = vst [vmem:[#allocation47_spill] sm:$0xff] %v17808_v13 }
 0x2a2   : > { %14248 = vmatmul.mubr.msk.f32.vlgmr.msra.gmra.mrb[32].mxu1 %vm323_vm2, %v4784_v6  ;;  %v17812_v6 = vld [vmem:[#allocation3 + $0x51] sm:$0xff] }
 0x2a3   : > { %14296 = vmatpush3.msra.mxu1 %v17666_v9  ;;  %14250 = vmatprep.mubr.msk.f32.mxu1 %vm323_vm2, %v17798_v44  ;;  %19723 = vst [vmem:[#allocation49_spill] sm:$0xff] %v17812_v6  ;;  %v17816_v9 = vld [vmem:[#allocation3 + $0x69] sm:$0xff]  ;;  %v17820_v44 = vld [vmem:[#allocation3 + $0x71] sm:$0xff] }
 0x2a4   : > { %14345 = vmatprep.subr.mxu1 %v17795_v60  ;;  %19724 = vst [vmem:[#allocation48_spill] sm:$0xff] %v17816_v9  ;;  %19725 = vst [vmem:[#allocation50_spill] sm:$0xff] %v17820_v44 }
 0x2a6   : > { %14251 = vmatmul.mubr.msk.f32.gmra.mrb[34].mxu1 %vm323_vm2, %v17804_v58  ;;  %v17824_v58 = vld [vmem:[#allocation3 + $0x89] sm:$0xff] }
 0x2a7   : > { %14253 = vmatprep.mubr.msk.f32.mxu1 %vm323_vm2, %v17808_v13  ;;  %19726 = vst [vmem:[#allocation51_spill] sm:$0xff] %v17824_v58  ;;  %v17828_v13 = vld [vmem:[#allocation3 + $0x91] sm:$0xff] }
 0x2a8   : > { %19727 = vst [vmem:[#allocation52_spill] sm:$0xff] %v17828_v13 }
 0x2aa   : > { %14254 = vmatmul.mubr.msk.f32.gmra.mrb[36].mxu1 %vm323_vm2, %v17812_v6  ;;  %v17832_v6 = vld [vmem:[#allocation3 + $0xa9] sm:$0xff] }
 0x2ab   : > { %14256 = vmatprep.mubr.msk.f32.mxu1 %vm323_vm2, %v17816_v9  ;;  %19728 = vst [vmem:[#allocation53_spill] sm:$0xff] %v17832_v6  ;;  %v17836_v9 = vld [vmem:[#allocation3 + $0xb1] sm:$0xff] }
 0x2ac   : > { %19729 = vst [vmem:[#allocation54_spill] sm:$0xff] %v17836_v9 }
 0x2ae   : > { %14257 = vmatmul.mubr.msk.f32.gmra.mrb[38].mxu1 %vm323_vm2, %v17820_v44  ;;  %v17840_v44 = vld [vmem:[#allocation3 + $0xc9] sm:$0xff] }
 0x2af   : > { %14259 = vmatprep.mubr.msk.f32.mxu1 %vm323_vm2, %v17824_v58  ;;  %19730 = vst [vmem:[#allocation55_spill] sm:$0xff] %v17840_v44  ;;  %v17844_v58 = vld [vmem:[#allocation3 + $0xd1] sm:$0xff] }
 0x2b0   : > { %19731 = vst [vmem:[#allocation56_spill] sm:$0xff] %v17844_v58 }
 0x2b2   : > { %14260 = vmatmul.mubr.msk.f32.gmra.mrb[40].mxu1 %vm323_vm2, %v17828_v13  ;;  %v17848_v13 = vld [vmem:[#allocation3 + $0xe9] sm:$0xff] }
 0x2b3   : > { %14262 = vmatprep.mubr.msk.f32.mxu1 %vm323_vm2, %v17832_v6  ;;  %19732 = vst [vmem:[#allocation57_spill] sm:$0xff] %v17848_v13  ;;  %v17852_v6 = vld [vmem:[#allocation3 + $0xf1] sm:$0xff] }
 0x2b4   : > { %19733 = vst [vmem:[#allocation58_spill] sm:$0xff] %v17852_v6 }
 0x2b6   : > { %14263 = vmatmul.mubr.msk.f32.gmra.mrb[42].mxu1 %vm323_vm2, %v17836_v9  ;;  %v17856_v9 = vld [vmem:[#allocation3 + $0x109] sm:$0xff] }
 0x2b7   : > { %14265 = vmatprep.mubr.msk.f32.mxu1 %vm323_vm2, %v17840_v44  ;;  %19734 = vst [vmem:[#allocation59_spill] sm:$0xff] %v17856_v9  ;;  %v17860_v44 = vld [vmem:[#allocation3 + $0x111] sm:$0xff] }
 0x2b8   : > { %19735 = vst [vmem:[#allocation60_spill] sm:$0xff] %v17860_v44 }
 0x2ba   : > { %14266 = vmatmul.mubr.msk.f32.gmra.mrb[44].mxu1 %vm323_vm2, %v17844_v58  ;;  %v17864_v58 = vld [vmem:[#allocation3 + $0x129] sm:$0xff] }
 0x2bb   : > { %14268 = vmatprep.mubr.msk.f32.mxu1 %vm323_vm2, %v17848_v13  ;;  %19736 = vst [vmem:[#allocation61_spill] sm:$0xff] %v17864_v58  ;;  %v17868_v13 = vld [vmem:[#allocation3 + $0x131] sm:$0xff] }
 0x2bc   : > { %19737 = vst [vmem:[#allocation62_spill] sm:$0xff] %v17868_v13 }
 0x2be   : > { %14269 = vmatmul.mubr.msk.f32.gmra.mrb[46].mxu1 %vm323_vm2, %v17852_v6  ;;  %v17872_v6 = vld [vmem:[#allocation3 + $0x149] sm:$0xff] }
 0x2bf   : > { %14271 = vmatprep.mubr.msk.f32.mxu1 %vm323_vm2, %v17856_v9  ;;  %19738 = vst [vmem:[#allocation63_spill] sm:$0xff] %v17872_v6  ;;  %v17876_v9 = vld [vmem:[#allocation3 + $0x151] sm:$0xff] }
 0x2c0   : > { %19739 = vst [vmem:[#allocation64_spill] sm:$0xff] %v17876_v9 }
 0x2c2   : > { %14272 = vmatmul.mubr.msk.f32.gmra.mrb[48].mxu1 %vm323_vm2, %v17860_v44  ;;  %v17880_v44 = vld [vmem:[#allocation3 + $0x169] sm:$0xff] }
 0x2c3   : > { %14274 = vmatprep.mubr.msk.f32.mxu1 %vm323_vm2, %v17864_v58  ;;  %19740 = vst [vmem:[#allocation65_spill] sm:$0xff] %v17880_v44  ;;  %v17884_v58 = vld [vmem:[#allocation3 + $0x171] sm:$0xff] }
 0x2c4   : > { %19741 = vst [vmem:[#allocation66_spill] sm:$0xff] %v17884_v58 }
 0x2c6   : > { %14275 = vmatmul.mubr.msk.f32.gmra.mrb[50].mxu1 %vm323_vm2, %v17868_v13  ;;  %v17888_v13 = vld [vmem:[#allocation3 + $0x189] sm:$0xff] }
 0x2c7   : > { %14277 = vmatprep.mubr.msk.f32.mxu1 %vm323_vm2, %v17872_v6  ;;  %19742 = vst [vmem:[#allocation67_spill] sm:$0xff] %v17888_v13  ;;  %v17892_v6 = vld [vmem:[#allocation3 + $0x191] sm:$0xff] }
 0x2c8   : > { %19743 = vst [vmem:[#allocation68_spill] sm:$0xff] %v17892_v6 }
 0x2ca   : > { %14278 = vmatmul.mubr.msk.f32.gmra.mrb[52].mxu1 %vm323_vm2, %v17876_v9  ;;  %v17896_v9 = vld [vmem:[#allocation3 + $0x1a9] sm:$0xff] }
 0x2cb   : > { %14280 = vmatprep.mubr.msk.f32.mxu1 %vm323_vm2, %v17880_v44  ;;  %19744 = vst [vmem:[#allocation69_spill] sm:$0xff] %v17896_v9  ;;  %v17900_v44 = vld [vmem:[#allocation3 + $0x1b1] sm:$0xff] }
 0x2ce   : > { %14281 = vmatmul.mubr.msk.f32.gmra.mrb[54].mxu1 %vm323_vm2, %v17884_v58  ;;  %v17904_v58 = vld [vmem:[#allocation3 + $0x1c9] sm:$0xff] }
 0x2cf   : > { %14283 = vmatprep.mubr.msk.f32.mxu1 %vm323_vm2, %v17888_v13  ;;  %19745 = vst [vmem:[#allocation70_spill] sm:$0xff] %v17904_v58  ;;  %v17908_v13 = vld [vmem:[#allocation3 + $0x1d1] sm:$0xff] }
 0x2d2   : > { %14284 = vmatmul.mubr.msk.f32.gmra.mrb[56].mxu1 %vm323_vm2, %v17892_v6  ;;  %v17912_v6 = vld [vmem:[#allocation3 + $0x1e9] sm:$0xff] }
 0x2d3   : > { %14286 = vmatprep.mubr.msk.f32.mxu1 %vm323_vm2, %v17896_v9  ;;  %19746 = vst [vmem:[#allocation71_spill] sm:$0xff] %v17912_v6  ;;  %v17916_v9 = vld [vmem:[#allocation3 + $0x1f1] sm:$0xff] }
 0x2d6   : > { %14287 = vmatmul.mubr.msk.f32.gmra.mrb[58].mxu1 %vm323_vm2, %v17900_v44 }
 0x2d7   : > { %14289 = vmatprep.mubr.msk.f32.mxu1 %vm323_vm2, %v17904_v58  ;;  %v12300_v58 = vld [vmem:[%s19425_s2 + $0x28] sm:$0xff] }
 0x2da   : > { %14290 = vmatmul.mubr.msk.f32.gmra.mrb[60].mxu1 %vm323_vm2, %v17908_v13 }
 0x2db   : > { %14292 = vmatprep.mubr.msk.f32.mxu1 %vm323_vm2, %v17912_v6 }
 0x2de   : > { %14293 = vmatmul.mubr.msk.f32.gmra.mrb[62].mxu1 %vm323_vm2, %v17916_v9 }
 0x2df   : > { %14297 = vmatprep.mubr.msk.f32.mxu1 %vm323_vm2, %v17669_v46  ;;  %v17984_v46 = vld [vmem:[#allocation3 + $0x207] sm:$0xff] }
 0x2e2   : > { %14298 = vmatmul.mubr.msk.f32.vlgmr.msra.gmra.mrb[32].mxu1 %vm323_vm2, %v17675_v45  ;;  %v17988_v45 = vld [vmem:[#allocation3 + $0x20f] sm:$0xff] }
 0x2e3   : > { %14346 = vmatpush3.msra.mxu1 %v17795_v60  ;;  %14300 = vmatprep.mubr.msk.f32.mxu1 %vm323_vm2, %v17679_v33  ;;  %v12333_v60 = vld [vmem:[%s19425_s2 + $0x30] sm:$0xff] }
 0x2e4   : > { %14395 = vmatprep.subr.mxu1 %v12300_v58 }
 0x2e6   : > { %14301 = vmatmul.mubr.msk.f32.gmra.mrb[34].mxu1 %vm323_vm2, %v17683_v38 }
 0x2e7   : > { %14303 = vmatprep.mubr.msk.f32.mxu1 %vm323_vm2, %v17687_v54 }
 0x2ea   : > { %14304 = vmatmul.mubr.msk.f32.gmra.mrb[36].mxu1 %vm323_vm2, %v17691_v47 }
 0x2eb   : > { %14306 = vmatprep.mubr.msk.f32.mxu1 %vm323_vm2, %v17695_v62 }
 0x2ee   : > { %14307 = vmatmul.mubr.msk.f32.gmra.mrb[38].mxu1 %vm323_vm2, %v17699_v21 }
 0x2ef   : > { %14309 = vmatprep.mubr.msk.f32.mxu1 %vm323_vm2, %v17703_v5 }
 0x2f2   : > { %14310 = vmatmul.mubr.msk.f32.gmra.mrb[40].mxu1 %vm323_vm2, %v17707_v61 }
 0x2f3   : > { %14312 = vmatprep.mubr.msk.f32.mxu1 %vm323_vm2, %v17711_v19 }
 0x2f6   : > { %14313 = vmatmul.mubr.msk.f32.gmra.mrb[42].mxu1 %vm323_vm2, %v17715_v35 }
 0x2f7   : > { %14315 = vmatprep.mubr.msk.f32.mxu1 %vm323_vm2, %v17719_v48 }
 0x2fa   : > { %14316 = vmatmul.mubr.msk.f32.gmra.mrb[44].mxu1 %vm323_vm2, %v17723_v27 }
 0x2fb   : > { %14318 = vmatprep.mubr.msk.f32.mxu1 %vm323_vm2, %v17727_v1 }
 0x2fe   : > { %14319 = vmatmul.mubr.msk.f32.gmra.mrb[46].mxu1 %vm323_vm2, %v17731_v49 }
 0x2ff   : > { %14321 = vmatprep.mubr.msk.f32.mxu1 %vm323_vm2, %v17735_v59 }
 0x302   : > { %14322 = vmatmul.mubr.msk.f32.gmra.mrb[48].mxu1 %vm323_vm2, %v17739_v55 }
 0x303   : > { %14324 = vmatprep.mubr.msk.f32.mxu1 %vm323_vm2, %v17743_v37 }
 0x306   : > { %14325 = vmatmul.mubr.msk.f32.gmra.mrb[50].mxu1 %vm323_vm2, %v17747_v57 }
 0x307   : > { %14327 = vmatprep.mubr.msk.f32.mxu1 %vm323_vm2, %v17751_v22 }
 0x30a   : > { %14328 = vmatmul.mubr.msk.f32.gmra.mrb[52].mxu1 %vm323_vm2, %v17755_v39 }
 0x30b   : > { %14330 = vmatprep.mubr.msk.f32.mxu1 %vm323_vm2, %v17759_v50 }
 0x30e   : > { %14331 = vmatmul.mubr.msk.f32.gmra.mrb[54].mxu1 %vm323_vm2, %v17763_v0 }
 0x30f   : > { %14333 = vmatprep.mubr.msk.f32.mxu1 %vm323_vm2, %v17767_v40 }
 0x312   : > { %14334 = vmatmul.mubr.msk.f32.gmra.mrb[56].mxu1 %vm323_vm2, %v17771_v51 }
 0x313   : > { %14336 = vmatprep.mubr.msk.f32.mxu1 %vm323_vm2, %v17775_v28 }
 0x316   : > { %14337 = vmatmul.mubr.msk.f32.gmra.mrb[58].mxu1 %vm323_vm2, %v17779_v42 }
 0x317   : > { %14339 = vmatprep.mubr.msk.f32.mxu1 %vm323_vm2, %v17783_v41 }
 0x31a   : > { %14340 = vmatmul.mubr.msk.f32.gmra.mrb[60].mxu1 %vm323_vm2, %v17787_v53 }
 0x31b   : > { %14342 = vmatprep.mubr.msk.f32.mxu1 %vm323_vm2, %v17984_v46 }
 0x31e   : > { %14343 = vmatmul.mubr.msk.f32.gmra.mrb[62].mxu1 %vm323_vm2, %v17988_v45 }
 0x31f   : > { %14347 = vmatprep.mubr.msk.f32.mxu1 %vm323_vm2, %v17467_v26  ;;  %v19747_v26 = vld [vmem:[#allocation42_spill] sm:$0xff] }
 0x322   : > { %14348 = vmatmul.mubr.msk.f32.vlgmr.msra.gmra.mrb[32].mxu1 %vm323_vm2, %v17473_v15  ;;  %v19748_v15 = vld [vmem:[#allocation41_spill] sm:$0xff] }
 0x323   : > { %14396 = vmatpush3.msra.mxu1 %v12300_v58  ;;  %14350 = vmatprep.mubr.msk.f32.mxu1 %vm323_vm2, %v17481_v12  ;;  %v18055_v12 = vld [vmem:[#allocation3 + $0x208] sm:$0xff]  ;;  %v19760_v58 = vld [vmem:[#allocation56_spill] sm:$0xff] }
 0x324   : > { %14445 = vmatprep.subr.mxu1 %v12333_v60 }
 0x326   : > { %14351 = vmatmul.mubr.msk.f32.gmra.mrb[34].mxu1 %vm323_vm2, %v17487_v30  ;;  %v18059_v30 = vld [vmem:[#allocation3 + $0x210] sm:$0xff] }
 0x327   : > { %14353 = vmatprep.mubr.msk.f32.mxu1 %vm323_vm2, %v17495_v14  ;;  %v19749_v14 = vld [vmem:[#allocation43_spill] sm:$0xff] }
 0x32a   : > { %14354 = vmatmul.mubr.msk.f32.gmra.mrb[36].mxu1 %vm323_vm2, %v17501_v34  ;;  %v12366_v34 = vld [vmem:[%s19425_s2 + $0x38] sm:$0xff] }
 0x32b   : > { %14356 = vmatprep.mubr.msk.f32.mxu1 %vm323_vm2, %v17509_v23  ;;  %v19750_v23 = vld [vmem:[#allocation44_spill] sm:$0xff] }
 0x32e   : > { %14357 = vmatmul.mubr.msk.f32.gmra.mrb[38].mxu1 %vm323_vm2, %v17515_v29  ;;  %v19751_v29 = vld [vmem:[#allocation47_spill] sm:$0xff] }
 0x32f   : > { %14359 = vmatprep.mubr.msk.f32.mxu1 %vm323_vm2, %v17523_v24  ;;  %v19752_v24 = vld [vmem:[#allocation49_spill] sm:$0xff] }
 0x332   : > { %14360 = vmatmul.mubr.msk.f32.gmra.mrb[40].mxu1 %vm323_vm2, %v17529_v2  ;;  %v19753_v2 = vld [vmem:[#allocation48_spill] sm:$0xff] }
 0x333   : > { %14362 = vmatprep.mubr.msk.f32.mxu1 %vm323_vm2, %v17537_v32  ;;  %v19754_v32 = vld [vmem:[#allocation50_spill] sm:$0xff] }
 0x336   : > { %14363 = vmatmul.mubr.msk.f32.gmra.mrb[42].mxu1 %vm323_vm2, %v17543_v11  ;;  %v19755_v11 = vld [vmem:[#allocation51_spill] sm:$0xff] }
 0x337   : > { %14365 = vmatprep.mubr.msk.f32.mxu1 %vm323_vm2, %v17551_v36  ;;  %v19756_v36 = vld [vmem:[#allocation52_spill] sm:$0xff] }
 0x33a   : > { %14366 = vmatmul.mubr.msk.f32.gmra.mrb[44].mxu1 %vm323_vm2, %v17557_v10  ;;  %v19757_v10 = vld [vmem:[#allocation53_spill] sm:$0xff] }
 0x33b   : > { %14368 = vmatprep.mubr.msk.f32.mxu1 %vm323_vm2, %v17565_v56  ;;  %v19758_v56 = vld [vmem:[#allocation54_spill] sm:$0xff] }
 0x33e   : > { %14369 = vmatmul.mubr.msk.f32.gmra.mrb[46].mxu1 %vm323_vm2, %v17571_v7  ;;  %v19759_v7 = vld [vmem:[#allocation55_spill] sm:$0xff] }
 0x33f   : > { %14371 = vmatprep.mubr.msk.f32.mxu1 %vm323_vm2, %v17579_v3 }
 0x342   : > { %14372 = vmatmul.mubr.msk.f32.gmra.mrb[48].mxu1 %vm323_vm2, %v17585_v16 }
 0x343   : > { %14374 = vmatprep.mubr.msk.f32.mxu1 %vm323_vm2, %v17593_v52 }
 0x346   : > { %14375 = vmatmul.mubr.msk.f32.gmra.mrb[50].mxu1 %vm323_vm2, %v17599_v31 }
 0x347   : > { %14377 = vmatprep.mubr.msk.f32.mxu1 %vm323_vm2, %v17607_v17 }
 0x34a   : > { %14378 = vmatmul.mubr.msk.f32.gmra.mrb[52].mxu1 %vm323_vm2, %v17613_v25 }
 0x34b   : > { %14380 = vmatprep.mubr.msk.f32.mxu1 %vm323_vm2, %v17621_v20 }
 0x34e   : > { %14381 = vmatmul.mubr.msk.f32.gmra.mrb[54].mxu1 %vm323_vm2, %v17627_v63 }
 0x34f   : > { %14383 = vmatprep.mubr.msk.f32.mxu1 %vm323_vm2, %v17635_v4 }
 0x352   : > { %14384 = vmatmul.mubr.msk.f32.gmra.mrb[56].mxu1 %vm323_vm2, %v17640_v18 }
 0x353   : > { %14386 = vmatprep.mubr.msk.f32.mxu1 %vm323_vm2, %v17645_v8 }
 0x356   : > { %14387 = vmatmul.mubr.msk.f32.gmra.mrb[58].mxu1 %vm323_vm2, %v17650_v43 }
 0x357   : > { %14389 = vmatprep.mubr.msk.f32.mxu1 %vm323_vm2, %v19747_v26 }
 0x35a   : > { %14390 = vmatmul.mubr.msk.f32.gmra.mrb[60].mxu1 %vm323_vm2, %v19748_v15 }
 0x35b   : > { %14392 = vmatprep.mubr.msk.f32.mxu1 %vm323_vm2, %v18055_v12 }
 0x35e   : > { %14393 = vmatmul.mubr.msk.f32.gmra.mrb[62].mxu1 %vm323_vm2, %v18059_v30 }
 0x35f   : > { %14397 = vmatprep.mubr.msk.f32.mxu1 %vm323_vm2, %v19749_v14  ;;  %v19762_v14 = vld [vmem:[#allocation58_spill] sm:$0xff] }
 0x362   : > { %14398 = vmatmul.mubr.msk.f32.vlgmr.msra.gmra.mrb[32].mxu1 %vm323_vm2, %v19750_v23  ;;  %v19763_v23 = vld [vmem:[#allocation59_spill] sm:$0xff] }
 0x363   : > { %14446 = vmatpush3.msra.mxu1 %v12333_v60  ;;  %14400 = vmatprep.mubr.msk.f32.mxu1 %vm323_vm2, %v19751_v29  ;;  %v19761_v60 = vld [vmem:[#allocation57_spill] sm:$0xff] }
 0x364   : > { %14495 = vmatprep.subr.mxu1 %v12366_v34 }
 0x366   : > { %14401 = vmatmul.mubr.msk.f32.gmra.mrb[34].mxu1 %vm323_vm2, %v19752_v24 }
 0x367   : > { %14403 = vmatprep.mubr.msk.f32.mxu1 %vm323_vm2, %v19753_v2 }
 0x36a   : > { %14404 = vmatmul.mubr.msk.f32.gmra.mrb[36].mxu1 %vm323_vm2, %v19754_v32 }
 0x36b   : > { %14406 = vmatprep.mubr.msk.f32.mxu1 %vm323_vm2, %v19755_v11 }
 0x36e   : > { %14407 = vmatmul.mubr.msk.f32.gmra.mrb[38].mxu1 %vm323_vm2, %v19756_v36  ;;  %v19764_v36 = vld [vmem:[#allocation60_spill] sm:$0xff] }
 0x36f   : > { %14409 = vmatprep.mubr.msk.f32.mxu1 %vm323_vm2, %v19757_v10  ;;  %v19765_v10 = vld [vmem:[#allocation61_spill] sm:$0xff] }
 0x372   : > { %14410 = vmatmul.mubr.msk.f32.gmra.mrb[40].mxu1 %vm323_vm2, %v19758_v56  ;;  %v19766_v56 = vld [vmem:[#allocation62_spill] sm:$0xff] }
 0x373   : > { %14412 = vmatprep.mubr.msk.f32.mxu1 %vm323_vm2, %v19759_v7  ;;  %v19767_v7 = vld [vmem:[#allocation63_spill] sm:$0xff] }
 0x376   : > { %14413 = vmatmul.mubr.msk.f32.gmra.mrb[42].mxu1 %vm323_vm2, %v19760_v58  ;;  %v19768_v58 = vld [vmem:[#allocation64_spill] sm:$0xff] }
 0x377   : > { %14415 = vmatprep.mubr.msk.f32.mxu1 %vm323_vm2, %v19761_v60  ;;  %v19769_v60 = vld [vmem:[#allocation65_spill] sm:$0xff] }
 0x37a   : > { %14416 = vmatmul.mubr.msk.f32.gmra.mrb[44].mxu1 %vm323_vm2, %v19762_v14  ;;  %v19770_v14 = vld [vmem:[#allocation66_spill] sm:$0xff] }
 0x37b   : > { %14418 = vmatprep.mubr.msk.f32.mxu1 %vm323_vm2, %v19763_v23  ;;  %v19771_v23 = vld [vmem:[#allocation67_spill] sm:$0xff] }
 0x37e   : > { %14419 = vmatmul.mubr.msk.f32.gmra.mrb[46].mxu1 %vm323_vm2, %v19764_v36  ;;  %v19772_v36 = vld [vmem:[#allocation68_spill] sm:$0xff] }
 0x37f   : > { %14421 = vmatprep.mubr.msk.f32.mxu1 %vm323_vm2, %v19765_v10  ;;  %v19773_v10 = vld [vmem:[#allocation69_spill] sm:$0xff] }
 0x382   : > { %14422 = vmatmul.mubr.msk.f32.gmra.mrb[48].mxu1 %vm323_vm2, %v19766_v56 }
 0x383   : > { %14424 = vmatprep.mubr.msk.f32.mxu1 %vm323_vm2, %v19767_v7  ;;  %v19774_v7 = vld [vmem:[#allocation70_spill] sm:$0xff] }
 0x386   : > { %14425 = vmatmul.mubr.msk.f32.gmra.mrb[50].mxu1 %vm323_vm2, %v19768_v58 }
 0x387   : > { %14427 = vmatprep.mubr.msk.f32.mxu1 %vm323_vm2, %v19769_v60 }
 0x38a   : > { %14428 = vmatmul.mubr.msk.f32.gmra.mrb[52].mxu1 %vm323_vm2, %v19770_v14 }
 0x38b   : > { %14430 = vmatprep.mubr.msk.f32.mxu1 %vm323_vm2, %v19771_v23  ;;  %v18126_v23 = vld [vmem:[#allocation3 + $0x209] sm:$0xff] }
 0x38e   : > { %14431 = vmatmul.mubr.msk.f32.gmra.mrb[54].mxu1 %vm323_vm2, %v19772_v36 }
 0x38f   : > { %14433 = vmatprep.mubr.msk.f32.mxu1 %vm323_vm2, %v19773_v10  ;;  %v18130_v10 = vld [vmem:[#allocation3 + $0x211] sm:$0xff] }
 0x392   : > { %14434 = vmatmul.mubr.msk.f32.gmra.mrb[56].mxu1 %vm323_vm2, %v17900_v44 }
 0x393   : > { %14436 = vmatprep.mubr.msk.f32.mxu1 %vm323_vm2, %v19774_v7 }
 0x396   : > { %14437 = vmatmul.mubr.msk.f32.gmra.mrb[58].mxu1 %vm323_vm2, %v17908_v13 }
 0x397   : > { %14439 = vmatprep.mubr.msk.f32.mxu1 %vm323_vm2, %v17912_v6  ;;  %v12399_v6 = vld [vmem:[%s19425_s2 + $0x40] sm:$0xff] }
 0x39a   : > { %14440 = vmatmul.mubr.msk.f32.gmra.mrb[60].mxu1 %vm323_vm2, %v17916_v9 }
 0x39b   : > { %14442 = vmatprep.mubr.msk.f32.mxu1 %vm323_vm2, %v18126_v23 }
 0x39e   : > { %14443 = vmatmul.mubr.msk.f32.gmra.mrb[62].mxu1 %vm323_vm2, %v18130_v10 }
 0x39f   : > { %14447 = vmatprep.mubr.msk.f32.mxu1 %vm323_vm2, %v17679_v33  ;;  %v6362_v33 = vld [vmem:[#allocation3 + $0x227] sm:$0xff] }
 0x3a2   : > { %14448 = vmatmul.mubr.msk.f32.vlgmr.msra.gmra.mrb[32].mxu1 %vm323_vm2, %v17683_v38  ;;  %v6363_v38 = vld [vmem:[#allocation3 + $0x22f] sm:$0xff] }
 0x3a3   : > { %14496 = vmatpush3.msra.mxu1 %v12366_v34  ;;  %14450 = vmatprep.mubr.msk.f32.mxu1 %vm323_vm2, %v17687_v54  ;;  %v6719_v54 = vld [vmem:[#allocation3 + $0x48] sm:$0xff] }
 0x3a4   : > { %14545 = vmatprep.subr.mxu1 %v12399_v6 }
 0x3a6   : > { %14451 = vmatmul.mubr.msk.f32.gmra.mrb[34].mxu1 %vm323_vm2, %v17691_v47  ;;  %v12433_v47 = vld [vmem:[%s19426_s3 + $0x8] sm:$0xff] }
 0x3a7   : > { %14453 = vmatprep.mubr.msk.f32.mxu1 %vm323_vm2, %v17695_v62  ;;  %14595 = vmatprep.subr.mxu0 %v12433_v47  ;;  %v6720_v62 = vld [vmem:[#allocation3 + $0x50] sm:$0xff] }
 0x3a8   : > { %14596 = vmatpush3.msra.mxu0 %v12433_v47 }
 0x3aa   : > { %14454 = vmatmul.mubr.msk.f32.gmra.mrb[36].mxu1 %vm323_vm2, %v17699_v21  ;;  %v6721_v21 = vld [vmem:[#allocation3 + $0x68] sm:$0xff] }
 0x3ab   : > { %14456 = vmatprep.mubr.msk.f32.mxu1 %vm323_vm2, %v17703_v5  ;;  %v6722_v5 = vld [vmem:[#allocation3 + $0x70] sm:$0xff] }
 0x3ae   : > { %14457 = vmatmul.mubr.msk.f32.gmra.mrb[38].mxu1 %vm323_vm2, %v17707_v61  ;;  %v6723_v61 = vld [vmem:[#allocation3 + $0x88] sm:$0xff] }
 0x3af   : > { %14459 = vmatprep.mubr.msk.f32.mxu1 %vm323_vm2, %v17711_v19  ;;  %v6724_v19 = vld [vmem:[#allocation3 + $0x90] sm:$0xff] }
 0x3b2   : > { %14460 = vmatmul.mubr.msk.f32.gmra.mrb[40].mxu1 %vm323_vm2, %v17715_v35  ;;  %v6725_v35 = vld [vmem:[#allocation3 + $0xa8] sm:$0xff] }
 0x3b3   : > { %14462 = vmatprep.mubr.msk.f32.mxu1 %vm323_vm2, %v17719_v48  ;;  %v6726_v48 = vld [vmem:[#allocation3 + $0xb0] sm:$0xff] }
 0x3b6   : > { %14463 = vmatmul.mubr.msk.f32.gmra.mrb[42].mxu1 %vm323_vm2, %v17723_v27  ;;  %v6727_v27 = vld [vmem:[#allocation3 + $0xc8] sm:$0xff] }
 0x3b7   : > { %14465 = vmatprep.mubr.msk.f32.mxu1 %vm323_vm2, %v17727_v1  ;;  %v6728_v1 = vld [vmem:[#allocation3 + $0xd0] sm:$0xff] }
 0x3ba   : > { %14466 = vmatmul.mubr.msk.f32.gmra.mrb[44].mxu1 %vm323_vm2, %v17731_v49  ;;  %v6729_v49 = vld [vmem:[#allocation3 + $0xe8] sm:$0xff] }
 0x3bb   : > { %14468 = vmatprep.mubr.msk.f32.mxu1 %vm323_vm2, %v17735_v59  ;;  %v6730_v59 = vld [vmem:[#allocation3 + $0xf0] sm:$0xff] }
 0x3be   : > { %14469 = vmatmul.mubr.msk.f32.gmra.mrb[46].mxu1 %vm323_vm2, %v17739_v55  ;;  %v6731_v55 = vld [vmem:[#allocation3 + $0x108] sm:$0xff] }
 0x3bf   : > { %14471 = vmatprep.mubr.msk.f32.mxu1 %vm323_vm2, %v17743_v37  ;;  %v6732_v37 = vld [vmem:[#allocation3 + $0x110] sm:$0xff] }
 0x3c2   : > { %14472 = vmatmul.mubr.msk.f32.gmra.mrb[48].mxu1 %vm323_vm2, %v17747_v57  ;;  %v19785_v57 = vld [vmem:[#allocation63_spill] sm:$0xff] }
 0x3c3   : > { %14474 = vmatprep.mubr.msk.f32.mxu1 %vm323_vm2, %v17751_v22  ;;  %v19786_v22 = vld [vmem:[#allocation67_spill] sm:$0xff] }
 0x3c6   : > { %14475 = vmatmul.mubr.msk.f32.gmra.mrb[50].mxu1 %vm323_vm2, %v17755_v39  ;;  %v19787_v39 = vld [vmem:[#allocation69_spill] sm:$0xff] }
 0x3c7   : > { %14477 = vmatprep.mubr.msk.f32.mxu1 %vm323_vm2, %v17759_v50  ;;  %v19788_v50 = vld [vmem:[#allocation71_spill] sm:$0xff] }
 0x3ca   : > { %14478 = vmatmul.mubr.msk.f32.gmra.mrb[52].mxu1 %vm323_vm2, %v17763_v0  ;;  %v7136_v0 = vld [vmem:[#allocation3 + $0x229] sm:$0xff] }
 0x3cb   : > { %14480 = vmatprep.mubr.msk.f32.mxu1 %vm323_vm2, %v17767_v40  ;;  %v7691_v40 = vld [vmem:[#allocation3 + $0x8] sm:$0xff] }
 0x3cc   : > { %14597 = vmatprep.mubr.msk.f32.mxu0 %vm323_vm2, %v7691_v40 }
 0x3ce   : > { %14481 = vmatmul.mubr.msk.f32.gmra.mrb[54].mxu1 %vm323_vm2, %v17771_v51  ;;  %v7692_v51 = vld [vmem:[#allocation3 + $0x10] sm:$0xff] }
 0x3cf   : > { %14483 = vmatprep.mubr.msk.f32.mxu1 %vm323_vm2, %v17775_v28  ;;  %14598 = vmatmul.mubr.msk.f32.vlgmr.msra.gmra.mrb[32].mxu0 %vm323_vm2, %v7692_v51  ;;  %v7690_v28 = vld [vmem:[%s19426_s3] sm:$0xff] }
 0x3d0   : > { %14645 = vmatprep.subr.mxu0 %v7690_v28 }
 0x3d1   : > { %14646 = vmatpush3.msra.mxu0 %v7690_v28 }
 0x3d2   : > { %14484 = vmatmul.mubr.msk.f32.gmra.mrb[56].mxu1 %vm323_vm2, %v17779_v42  ;;  %v18320_v42 = vld [vmem:[%s19426_s3 + $0x10] sm:$0xff] }
 0x3d3   : > { %14486 = vmatprep.mubr.msk.f32.mxu1 %vm323_vm2, %v17783_v41  ;;  %14695 = vmatprep.subr.mxu0 %v18320_v42  ;;  %v18326_v41 = vld [vmem:[%s19428_s5 + $0x1] ss:$0 sm:$0xff] }
 0x3d6   : > { %14487 = vmatmul.mubr.msk.f32.gmra.mrb[58].mxu1 %vm323_vm2, %v17787_v53 }
 0x3d7   : > { %14489 = vmatprep.mubr.msk.f32.mxu1 %vm323_vm2, %v17984_v46 }
 0x3da   : > { %14490 = vmatmul.mubr.msk.f32.gmra.mrb[60].mxu1 %vm323_vm2, %v17988_v45 }
 0x3db   : > { %14492 = vmatprep.mubr.msk.f32.mxu1 %vm323_vm2, %v6362_v33 }
 0x3de   : > { %14493 = vmatmul.mubr.msk.f32.gmra.mrb[62].mxu1 %vm323_vm2, %v6363_v38 }
 0x3df   : > { %14497 = vmatprep.mubr.msk.f32.mxu1 %vm323_vm2, %v6719_v54 }
 0x3e2   : > { %14498 = vmatmul.mubr.msk.f32.vlgmr.msra.gmra.mrb[32].mxu1 %vm323_vm2, %v6720_v62 }
 0x3e3   : > { %14546 = vmatpush3.msra.mxu1 %v12399_v6  ;;  %14500 = vmatprep.mubr.msk.f32.mxu1 %vm323_vm2, %v6721_v21 }
 0x3e6   : > { %14501 = vmatmul.mubr.msk.f32.gmra.mrb[34].mxu1 %vm323_vm2, %v6722_v5 }
 0x3e7   : > { %14503 = vmatprep.mubr.msk.f32.mxu1 %vm323_vm2, %v6723_v61 }
 0x3ea   : > { %14504 = vmatmul.mubr.msk.f32.gmra.mrb[36].mxu1 %vm323_vm2, %v6724_v19 }
 0x3eb   : > { %14506 = vmatprep.mubr.msk.f32.mxu1 %vm323_vm2, %v6725_v35 }
 0x3ee   : > { %14507 = vmatmul.mubr.msk.f32.gmra.mrb[38].mxu1 %vm323_vm2, %v6726_v48 }
 0x3ef   : > { %14509 = vmatprep.mubr.msk.f32.mxu1 %vm323_vm2, %v6727_v27 }
 0x3f2   : > { %14510 = vmatmul.mubr.msk.f32.gmra.mrb[40].mxu1 %vm323_vm2, %v6728_v1 }
 0x3f3   : > { %14512 = vmatprep.mubr.msk.f32.mxu1 %vm323_vm2, %v6729_v49 }
 0x3f6   : > { %14513 = vmatmul.mubr.msk.f32.gmra.mrb[42].mxu1 %vm323_vm2, %v6730_v59 }
 0x3f7   : > { %14515 = vmatprep.mubr.msk.f32.mxu1 %vm323_vm2, %v6731_v55 }
 0x3fa   : > { %14516 = vmatmul.mubr.msk.f32.gmra.mrb[44].mxu1 %vm323_vm2, %v6732_v37 }
 0x3fb   : > { %14518 = vmatprep.mubr.msk.f32.mxu1 %vm323_vm2, %v17579_v3  ;;  %v6749_v3 = vld [vmem:[#allocation3 + $0x228] sm:$0xff] }
 0x3fe   : > { %14519 = vmatmul.mubr.msk.f32.gmra.mrb[46].mxu1 %vm323_vm2, %v17585_v16  ;;  %v6750_v16 = vld [vmem:[#allocation3 + $0x230] sm:$0xff] }
 0x3ff   : > { %14521 = vmatprep.mubr.msk.f32.mxu1 %vm323_vm2, %v17593_v52  ;;  %v19775_v52 = vld [vmem:[#allocation52_spill] sm:$0xff] }
 0x402   : > { %14522 = vmatmul.mubr.msk.f32.gmra.mrb[48].mxu1 %vm323_vm2, %v17599_v31  ;;  %v19776_v31 = vld [vmem:[#allocation53_spill] sm:$0xff] }
 0x403   : > { %14524 = vmatprep.mubr.msk.f32.mxu1 %vm323_vm2, %v17607_v17  ;;  %v19777_v17 = vld [vmem:[#allocation54_spill] sm:$0xff] }
 0x406   : > { %14525 = vmatmul.mubr.msk.f32.gmra.mrb[50].mxu1 %vm323_vm2, %v17613_v25  ;;  %v19778_v25 = vld [vmem:[#allocation55_spill] sm:$0xff] }
 0x407   : > { %14527 = vmatprep.mubr.msk.f32.mxu1 %vm323_vm2, %v17621_v20  ;;  %v19779_v20 = vld [vmem:[#allocation56_spill] sm:$0xff] }
 0x40a   : > { %14528 = vmatmul.mubr.msk.f32.gmra.mrb[52].mxu1 %vm323_vm2, %v17627_v63  ;;  %v19780_v63 = vld [vmem:[#allocation57_spill] sm:$0xff] }
 0x40b   : > { %14530 = vmatprep.mubr.msk.f32.mxu1 %vm323_vm2, %v17635_v4  ;;  %v19781_v4 = vld [vmem:[#allocation58_spill] sm:$0xff] }
 0x40e   : > { %14531 = vmatmul.mubr.msk.f32.gmra.mrb[54].mxu1 %vm323_vm2, %v17640_v18  ;;  %v19782_v18 = vld [vmem:[#allocation59_spill] sm:$0xff] }
 0x40f   : > { %14533 = vmatprep.mubr.msk.f32.mxu1 %vm323_vm2, %v17645_v8  ;;  %v19783_v8 = vld [vmem:[#allocation60_spill] sm:$0xff] }
 0x412   : > { %14534 = vmatmul.mubr.msk.f32.gmra.mrb[56].mxu1 %vm323_vm2, %v17650_v43  ;;  %v19784_v43 = vld [vmem:[#allocation61_spill] sm:$0xff] }
 0x413   : > { %14536 = vmatprep.mubr.msk.f32.mxu1 %vm323_vm2, %v19747_v26 }
 0x416   : > { %14537 = vmatmul.mubr.msk.f32.gmra.mrb[58].mxu1 %vm323_vm2, %v19748_v15 }
 0x417   : > { %14539 = vmatprep.mubr.msk.f32.mxu1 %vm323_vm2, %v18055_v12 }
 0x41a   : > { %14540 = vmatmul.mubr.msk.f32.gmra.mrb[60].mxu1 %vm323_vm2, %v18059_v30 }
 0x41b   : > { %14542 = vmatprep.mubr.msk.f32.mxu1 %vm323_vm2, %v6749_v3 }
 0x41e   : > { %14543 = vmatmul.mubr.msk.f32.gmra.mrb[62].mxu1 %vm323_vm2, %v6750_v16 }
 0x41f   : > { %14547 = vmatprep.mubr.msk.f32.mxu1 %vm323_vm2, %v19751_v29 }
 0x422   : > { %14548 = vmatmul.mubr.msk.f32.vlgmr.msra.gmra.mrb[32].mxu1 %vm323_vm2, %v19752_v24 }
 0x423   : > { %14550 = vmatprep.mubr.msk.f32.mxu1 %vm323_vm2, %v19753_v2 }
 0x426   : > { %14551 = vmatmul.mubr.msk.f32.gmra.mrb[34].mxu1 %vm323_vm2, %v19754_v32 }
 0x427   : > { %14553 = vmatprep.mubr.msk.f32.mxu1 %vm323_vm2, %v19755_v11 }
 0x42a   : > { %14554 = vmatmul.mubr.msk.f32.gmra.mrb[36].mxu1 %vm323_vm2, %v19775_v52 }
 0x42b   : > { %14556 = vmatprep.mubr.msk.f32.mxu1 %vm323_vm2, %v19776_v31 }
 0x42e   : > { %14557 = vmatmul.mubr.msk.f32.gmra.mrb[38].mxu1 %vm323_vm2, %v19777_v17 }
 0x42f   : > { %14559 = vmatprep.mubr.msk.f32.mxu1 %vm323_vm2, %v19778_v25 }
 0x432   : > { %14560 = vmatmul.mubr.msk.f32.gmra.mrb[40].mxu1 %vm323_vm2, %v19779_v20 }
 0x433   : > { %14562 = vmatprep.mubr.msk.f32.mxu1 %vm323_vm2, %v19780_v63 }
 0x436   : > { %14563 = vmatmul.mubr.msk.f32.gmra.mrb[42].mxu1 %vm323_vm2, %v19781_v4 }
 0x437   : > { %14565 = vmatprep.mubr.msk.f32.mxu1 %vm323_vm2, %v19782_v18 }
 0x43a   : > { %14566 = vmatmul.mubr.msk.f32.gmra.mrb[44].mxu1 %vm323_vm2, %v19783_v8 }
 0x43b   : > { %14568 = vmatprep.mubr.msk.f32.mxu1 %vm323_vm2, %v19784_v43 }
 0x43e   : > { %14569 = vmatmul.mubr.msk.f32.gmra.mrb[46].mxu1 %vm323_vm2, %v19766_v56 }
 0x43f   : > { %14571 = vmatprep.mubr.msk.f32.mxu1 %vm323_vm2, %v19785_v57 }
 0x442   : > { %14572 = vmatmul.mubr.msk.f32.gmra.mrb[48].mxu1 %vm323_vm2, %v19768_v58 }
 0x443   : > { %14574 = vmatprep.mubr.msk.f32.mxu1 %vm323_vm2, %v19769_v60 }
 0x446   : > { %14575 = vmatmul.mubr.msk.f32.gmra.mrb[50].mxu1 %vm323_vm2, %v19770_v14 }
 0x447   : > { %14577 = vmatprep.mubr.msk.f32.mxu1 %vm323_vm2, %v19786_v22 }
 0x44a   : > { %14578 = vmatmul.mubr.msk.f32.gmra.mrb[52].mxu1 %vm323_vm2, %v19772_v36 }
 0x44b   : > { %14580 = vmatprep.mubr.msk.f32.mxu1 %vm323_vm2, %v19787_v39 }
 0x44e   : > { %14581 = vmatmul.mubr.msk.f32.gmra.mrb[54].mxu1 %vm323_vm2, %v17900_v44  ;;  %v7137_v44 = vld [vmem:[#allocation3 + $0x231] sm:$0xff] }
 0x44f   : > { %14583 = vmatprep.mubr.msk.f32.mxu1 %vm323_vm2, %v19774_v7 }
 0x452   : > { %14584 = vmatmul.mubr.msk.f32.gmra.mrb[56].mxu1 %vm323_vm2, %v17908_v13 }
 0x453   : > { %14586 = vmatprep.mubr.msk.f32.mxu1 %vm323_vm2, %v19788_v50 }
 0x456   : > { %14587 = vmatmul.mubr.msk.f32.gmra.mrb[58].mxu1 %vm323_vm2, %v17916_v9 }
 0x457   : > { %14589 = vmatprep.mubr.msk.f32.mxu1 %vm323_vm2, %v18126_v23 }
 0x45a   : > { %14590 = vmatmul.mubr.msk.f32.gmra.mrb[60].mxu1 %vm323_vm2, %v18130_v10 }
 0x45b   : > { %14592 = vmatprep.mubr.msk.f32.mxu1 %vm323_vm2, %v7136_v0 }
 0x45e   : > { %14593 = vmatmul.mubr.msk.f32.gmra.mrb[62].mxu1 %vm323_vm2, %v7137_v44 }
 0x4f5   : > { %v14549_v53 = vpop.f32.mrb[32].mxu1 }
 0x4f6   : > { %v7499_v13 = vadd.f32 %v14549_v53, %v18326_v41  ;;  %v7302_v6 = vpop.f32.mrb[33].mxu1 }
 0x4f7   : > { %v7498_v9 = vadd.f32 %v18326_v41, %v7302_v6 }
 0x4f8   : > { %vm7531_vm9 = vcmp.ge.f32.partialorder %v7499_v13, 0.0  ;;  %v7563_v46 = vmul.f32 0.1, %v7499_v13 }
 0x4f9   : > { %vm7530_vm10 = vcmp.ge.f32.partialorder %v7498_v9, 0.0  ;;  %v7562_v45 = vmul.f32 0.1, %v7498_v9  ;;  %v14552_v26 = vpop.f32.mrb[34].mxu1 }
 0x4fa   : > { %v7595_v15 = vsel %vm7531_vm9, %v7499_v13, %v7563_v46  ;;  %v7501_v12 = vadd.f32 %v14552_v26, %v18326_v41  ;;  %v7312_v30 = vpop.f32.mrb[35].mxu1 }
 0x4fb   : > { %7627 = vst.msk [vmem:[#allocation3 + $0x30] sm:$0xff] %vm323_vm2, %v7595_v15  ;;  %v7594_v34 = vsel %vm7530_vm10, %v7498_v9, %v7562_v45  ;;  %v7500_v29 = vadd.f32 %v18326_v41, %v7312_v30 }
 0x4fc   : > { %7626 = vst.msk [vmem:[#allocation3 + $0x28] sm:$0xff] %vm323_vm2, %v7594_v34  ;;  %vm7533_vm11 = vcmp.ge.f32.partialorder %v7501_v12, 0.0  ;;  %v7565_v24 = vmul.f32 0.1, %v7501_v12 }
 0x4fd   : > { %vm7532_vm12 = vcmp.ge.f32.partialorder %v7500_v29, 0.0  ;;  %v7564_v2 = vmul.f32 0.1, %v7500_v29  ;;  %v14555_v32 = vpop.f32.mrb[36].mxu1 }
 0x4fe   : > { %v7597_v11 = vsel %vm7533_vm11, %v7501_v12, %v7565_v24  ;;  %v7503_v36 = vadd.f32 %v14555_v32, %v18326_v41  ;;  %v7322_v10 = vpop.f32.mrb[37].mxu1 }
 0x4ff   : > { %7629 = vst.msk [vmem:[#allocation3 + $0x50] sm:$0xff] %vm323_vm2, %v7597_v11  ;;  %v7596_v56 = vsel %vm7532_vm12, %v7500_v29, %v7564_v2  ;;  %v7502_v7 = vadd.f32 %v18326_v41, %v7322_v10 }
 0x500   : > { %7628 = vst.msk [vmem:[#allocation3 + $0x48] sm:$0xff] %vm323_vm2, %v7596_v56  ;;  %vm7535_vm13 = vcmp.ge.f32.partialorder %v7503_v36, 0.0  ;;  %v7567_v58 = vmul.f32 0.1, %v7503_v36 }
 0x501   : > { %vm7534_vm14 = vcmp.ge.f32.partialorder %v7502_v7, 0.0  ;;  %v7566_v60 = vmul.f32 0.1, %v7502_v7  ;;  %v14558_v14 = vpop.f32.mrb[38].mxu1 }
 0x502   : > { %v7599_v23 = vsel %vm7535_vm13, %v7503_v36, %v7567_v58  ;;  %v7505_v33 = vadd.f32 %v14558_v14, %v18326_v41  ;;  %v7332_v38 = vpop.f32.mrb[39].mxu1  ;;  %v18346_v5 = vld [vmem:[#allocation3 + $0x30] sm:$0xff] }
 0x503   : > { %7631 = vst.msk [vmem:[#allocation3 + $0x70] sm:$0xff] %vm323_vm2, %v7599_v23  ;;  %v7598_v54 = vsel %vm7534_vm14, %v7502_v7, %v7566_v60  ;;  %v7504_v47 = vadd.f32 %v18326_v41, %v7332_v38  ;;  %v18341_v62 = vld [vmem:[#allocation3 + $0x28] sm:$0xff] }
 0x504   : > { %7630 = vst.msk [vmem:[#allocation3 + $0x68] sm:$0xff] %vm323_vm2, %v7598_v54  ;;  %vm7537_vm15 = vcmp.ge.f32.partialorder %v7505_v33, 0.0  ;;  %v7569_v21 = vmul.f32 0.1, %v7505_v33  ;;  %14600 = vmatprep.mubr.msk.f32.mxu0 %vm323_vm2, %v18341_v62 }
 0x505   : > { %vm7536_vm3 = vcmp.ge.f32.partialorder %v7504_v47, 0.0  ;;  %v7568_v61 = vmul.f32 0.1, %v7504_v47  ;;  %v14561_v19 = vpop.f32.mrb[40].mxu1  ;;  %14601 = vmatmul.mubr.msk.f32.gmra.mrb[34].mxu0 %vm323_vm2, %v18346_v5 }
 0x506   : > { %v7601_v35 = vsel %vm7537_vm15, %v7505_v33, %v7569_v21  ;;  %v7507_v48 = vadd.f32 %v14561_v19, %v18326_v41  ;;  %v7342_v27 = vpop.f32.mrb[41].mxu1  ;;  %v18358_v37 = vld [vmem:[#allocation3 + $0x50] sm:$0xff] }
 0x507   : > { %7633 = vst.msk [vmem:[#allocation3 + $0x90] sm:$0xff] %vm323_vm2, %v7601_v35  ;;  %v7600_v1 = vsel %vm7536_vm3, %v7504_v47, %v7568_v61  ;;  %v7506_v49 = vadd.f32 %v18326_v41, %v7342_v27  ;;  %v18353_v59 = vld [vmem:[#allocation3 + $0x48] sm:$0xff] }
 0x508   : > { %7632 = vst.msk [vmem:[#allocation3 + $0x88] sm:$0xff] %vm323_vm2, %v7600_v1  ;;  %vm7539_vm4 = vcmp.ge.f32.partialorder %v7507_v48, 0.0  ;;  %v7571_v55 = vmul.f32 0.1, %v7507_v48  ;;  %14603 = vmatprep.mubr.msk.f32.mxu0 %vm323_vm2, %v18353_v59 }
 0x509   : > { %vm7538_vm5 = vcmp.ge.f32.partialorder %v7506_v49, 0.0  ;;  %v7570_v3 = vmul.f32 0.1, %v7506_v49  ;;  %v14564_v16 = vpop.f32.mrb[42].mxu1  ;;  %14604 = vmatmul.mubr.msk.f32.gmra.mrb[36].mxu0 %vm323_vm2, %v18358_v37 }
 0x50a   : > { %v7603_v52 = vsel %vm7539_vm4, %v7507_v48, %v7571_v55  ;;  %v7509_v31 = vadd.f32 %v14564_v16, %v18326_v41  ;;  %v7352_v17 = vpop.f32.mrb[43].mxu1  ;;  %v18370_v18 = vld [vmem:[#allocation3 + $0x70] sm:$0xff] }
 0x50b   : > { %7635 = vst.msk [vmem:[#allocation3 + $0xb0] sm:$0xff] %vm323_vm2, %v7603_v52  ;;  %v7602_v25 = vsel %vm7538_vm5, %v7506_v49, %v7570_v3  ;;  %v7508_v20 = vadd.f32 %v18326_v41, %v7352_v17  ;;  %v18365_v63 = vld [vmem:[#allocation3 + $0x68] sm:$0xff] }
 0x50c   : > { %7634 = vst.msk [vmem:[#allocation3 + $0xa8] sm:$0xff] %vm323_vm2, %v7602_v25  ;;  %vm7541_vm6 = vcmp.ge.f32.partialorder %v7509_v31, 0.0  ;;  %v7573_v4 = vmul.f32 0.1, %v7509_v31  ;;  %14606 = vmatprep.mubr.msk.f32.mxu0 %vm323_vm2, %v18365_v63 }
 0x50d   : > { %vm7540_vm7 = vcmp.ge.f32.partialorder %v7508_v20, 0.0  ;;  %v7572_v8 = vmul.f32 0.1, %v7508_v20  ;;  %v14567_v43 = vpop.f32.mrb[44].mxu1  ;;  %14607 = vmatmul.mubr.msk.f32.gmra.mrb[38].mxu0 %vm323_vm2, %v18370_v18 }
 0x50e   : > { %v7605_v57 = vsel %vm7541_vm6, %v7509_v31, %v7573_v4  ;;  %v7511_v22 = vadd.f32 %v14567_v43, %v18326_v41  ;;  %v7362_v39 = vpop.f32.mrb[45].mxu1  ;;  %v18382_v51 = vld [vmem:[#allocation3 + $0x90] sm:$0xff] }
 0x50f   : > { %7637 = vst.msk [vmem:[#allocation3 + $0xd0] sm:$0xff] %vm323_vm2, %v7605_v57  ;;  %v7604_v50 = vsel %vm7540_vm7, %v7508_v20, %v7572_v8  ;;  %v7510_v0 = vadd.f32 %v18326_v41, %v7362_v39  ;;  %v18377_v44 = vld [vmem:[#allocation3 + $0x88] sm:$0xff] }
 0x510   : > { %7636 = vst.msk [vmem:[#allocation3 + $0xc8] sm:$0xff] %vm323_vm2, %v7604_v50  ;;  %vm7543_vm8 = vcmp.ge.f32.partialorder %v7511_v22, 0.0  ;;  %v7575_v40 = vmul.f32 0.1, %v7511_v22  ;;  %14609 = vmatprep.mubr.msk.f32.mxu0 %vm323_vm2, %v18377_v44 }
 0x511   : > { %vm7542_vm9 = vcmp.ge.f32.partialorder %v7510_v0, 0.0  ;;  %v7574_v28 = vmul.f32 0.1, %v7510_v0  ;;  %v14570_v53 = vpop.f32.mrb[46].mxu1  ;;  %14610 = vmatmul.mubr.msk.f32.gmra.mrb[40].mxu0 %vm323_vm2, %v18382_v51 }
 0x512   : > { %v7607_v13 = vsel %vm7543_vm8, %v7511_v22, %v7575_v40  ;;  %v7513_v6 = vadd.f32 %v14570_v53, %v18326_v41  ;;  %v7372_v9 = vpop.f32.mrb[47].mxu1  ;;  %v18394_v12 = vld [vmem:[#allocation3 + $0xb0] sm:$0xff] }
 0x513   : > { %7639 = vst.msk [vmem:[#allocation3 + $0xf0] sm:$0xff] %vm323_vm2, %v7607_v13  ;;  %v7606_v46 = vsel %vm7542_vm9, %v7510_v0, %v7574_v28  ;;  %v7512_v45 = vadd.f32 %v18326_v41, %v7372_v9  ;;  %v18389_v26 = vld [vmem:[#allocation3 + $0xa8] sm:$0xff] }
 0x514   : > { %7638 = vst.msk [vmem:[#allocation3 + $0xe8] sm:$0xff] %vm323_vm2, %v7606_v46  ;;  %vm7545_vm10 = vcmp.ge.f32.partialorder %v7513_v6, 0.0  ;;  %v7577_v15 = vmul.f32 0.1, %v7513_v6  ;;  %14612 = vmatprep.mubr.msk.f32.mxu0 %vm323_vm2, %v18389_v26 }
 0x515   : > { %vm7544_vm11 = vcmp.ge.f32.partialorder %v7512_v45, 0.0  ;;  %v7576_v30 = vmul.f32 0.1, %v7512_v45  ;;  %v14573_v34 = vpop.f32.mrb[48].mxu1  ;;  %14613 = vmatmul.mubr.msk.f32.gmra.mrb[42].mxu0 %vm323_vm2, %v18394_v12 }
 0x516   : > { %v7609_v29 = vsel %vm7545_vm10, %v7513_v6, %v7577_v15  ;;  %v7515_v24 = vadd.f32 %v14573_v34, %v18326_v41  ;;  %v7382_v2 = vpop.f32.mrb[49].mxu1  ;;  %v18406_v56 = vld [vmem:[#allocation3 + $0xd0] sm:$0xff] }
 0x517   : > { %7641 = vst.msk [vmem:[#allocation3 + $0x110] sm:$0xff] %vm323_vm2, %v7609_v29  ;;  %v7608_v32 = vsel %vm7544_vm11, %v7512_v45, %v7576_v30  ;;  %v7514_v11 = vadd.f32 %v18326_v41, %v7382_v2  ;;  %v18401_v36 = vld [vmem:[#allocation3 + $0xc8] sm:$0xff] }
 0x518   : > { %7640 = vst.msk [vmem:[#allocation3 + $0x108] sm:$0xff] %vm323_vm2, %v7608_v32  ;;  %vm7547_vm12 = vcmp.ge.f32.partialorder %v7515_v24, 0.0  ;;  %v7579_v10 = vmul.f32 0.1, %v7515_v24  ;;  %14615 = vmatprep.mubr.msk.f32.mxu0 %vm323_vm2, %v18401_v36 }
 0x519   : > { %vm7546_vm13 = vcmp.ge.f32.partialorder %v7514_v11, 0.0  ;;  %v7578_v7 = vmul.f32 0.1, %v7514_v11  ;;  %v14576_v58 = vpop.f32.mrb[50].mxu1  ;;  %14616 = vmatmul.mubr.msk.f32.gmra.mrb[44].mxu0 %vm323_vm2, %v18406_v56 }
 0x51a   : > { %v7611_v60 = vsel %vm7547_vm12, %v7515_v24, %v7579_v10  ;;  %v7517_v14 = vadd.f32 %v14576_v58, %v18326_v41  ;;  %v7392_v23 = vpop.f32.mrb[51].mxu1  ;;  %v18418_v21 = vld [vmem:[#allocation3 + $0xf0] sm:$0xff] }
 0x51b   : > { %7643 = vst.msk [vmem:[#allocation3 + $0x130] sm:$0xff] %vm323_vm2, %v7611_v60  ;;  %v7610_v33 = vsel %vm7546_vm13, %v7514_v11, %v7578_v7  ;;  %v7516_v38 = vadd.f32 %v18326_v41, %v7392_v23  ;;  %v18413_v54 = vld [vmem:[#allocation3 + $0xe8] sm:$0xff] }
 0x51c   : > { %7642 = vst.msk [vmem:[#allocation3 + $0x128] sm:$0xff] %vm323_vm2, %v7610_v33  ;;  %vm7549_vm14 = vcmp.ge.f32.partialorder %v7517_v14, 0.0  ;;  %v7581_v47 = vmul.f32 0.1, %v7517_v14  ;;  %14618 = vmatprep.mubr.msk.f32.mxu0 %vm323_vm2, %v18413_v54 }
 0x51d   : > { %vm7548_vm15 = vcmp.ge.f32.partialorder %v7516_v38, 0.0  ;;  %v7580_v61 = vmul.f32 0.1, %v7516_v38  ;;  %v14579_v19 = vpop.f32.mrb[52].mxu1  ;;  %14619 = vmatmul.mubr.msk.f32.gmra.mrb[46].mxu0 %vm323_vm2, %v18418_v21 }
 0x51e   : > { %v7613_v35 = vsel %vm7549_vm14, %v7517_v14, %v7581_v47  ;;  %v7519_v48 = vadd.f32 %v14579_v19, %v18326_v41  ;;  %v7402_v27 = vpop.f32.mrb[53].mxu1  ;;  %v18430_v16 = vld [vmem:[#allocation3 + $0x110] sm:$0xff] }
 0x51f   : > { %7645 = vst.msk [vmem:[#allocation3 + $0x150] sm:$0xff] %vm323_vm2, %v7613_v35  ;;  %v7612_v1 = vsel %vm7548_vm15, %v7516_v38, %v7580_v61  ;;  %v7518_v49 = vadd.f32 %v18326_v41, %v7402_v27  ;;  %v18425_v55 = vld [vmem:[#allocation3 + $0x108] sm:$0xff] }
 0x520   : > { %7644 = vst.msk [vmem:[#allocation3 + $0x148] sm:$0xff] %vm323_vm2, %v7612_v1  ;;  %vm7551_vm3 = vcmp.ge.f32.partialorder %v7519_v48, 0.0  ;;  %v7583_v3 = vmul.f32 0.1, %v7519_v48  ;;  %14621 = vmatprep.mubr.msk.f32.mxu0 %vm323_vm2, %v18425_v55 }
 0x521   : > { %vm7550_vm4 = vcmp.ge.f32.partialorder %v7518_v49, 0.0  ;;  %v7582_v52 = vmul.f32 0.1, %v7518_v49  ;;  %v14582_v31 = vpop.f32.mrb[54].mxu1  ;;  %14622 = vmatmul.mubr.msk.f32.gmra.mrb[48].mxu0 %vm323_vm2, %v18430_v16 }
 0x522   : > { %v7615_v17 = vsel %vm7551_vm3, %v7519_v48, %v7583_v3  ;;  %v7521_v25 = vadd.f32 %v14582_v31, %v18326_v41  ;;  %v7412_v20 = vpop.f32.mrb[55].mxu1  ;;  %v18442_v22 = vld [vmem:[#allocation3 + $0x130] sm:$0xff] }
 0x523   : > { %7647 = vst.msk [vmem:[#allocation3 + $0x170] sm:$0xff] %vm323_vm2, %v7615_v17  ;;  %v7614_v4 = vsel %vm7550_vm4, %v7518_v49, %v7582_v52  ;;  %v7520_v8 = vadd.f32 %v18326_v41, %v7412_v20  ;;  %v18437_v43 = vld [vmem:[#allocation3 + $0x128] sm:$0xff] }
 0x524   : > { %7646 = vst.msk [vmem:[#allocation3 + $0x168] sm:$0xff] %vm323_vm2, %v7614_v4  ;;  %vm7553_vm5 = vcmp.ge.f32.partialorder %v7521_v25, 0.0  ;;  %v7585_v57 = vmul.f32 0.1, %v7521_v25  ;;  %14624 = vmatprep.mubr.msk.f32.mxu0 %vm323_vm2, %v18437_v43 }
 0x525   : > { %vm7552_vm6 = vcmp.ge.f32.partialorder %v7520_v8, 0.0  ;;  %v7584_v39 = vmul.f32 0.1, %v7520_v8  ;;  %v14585_v50 = vpop.f32.mrb[56].mxu1  ;;  %14625 = vmatmul.mubr.msk.f32.gmra.mrb[50].mxu0 %vm323_vm2, %v18442_v22 }
 0x526   : > { %v7617_v0 = vsel %vm7553_vm5, %v7521_v25, %v7585_v57  ;;  %v7523_v40 = vadd.f32 %v14585_v50, %v18326_v41  ;;  %v7422_v28 = vpop.f32.mrb[57].mxu1  ;;  %v18454_v46 = vld [vmem:[#allocation3 + $0x150] sm:$0xff]  ;;  %v7658_v50 = vld [vmem:[#allocation3 + $0x7] sm:$0xff] }
 0x527   : > { %7649 = vst.msk [vmem:[#allocation3 + $0x190] sm:$0xff] %vm323_vm2, %v7617_v0  ;;  %v7616_v53 = vsel %vm7552_vm6, %v7520_v8, %v7584_v39  ;;  %v7522_v13 = vadd.f32 %v18326_v41, %v7422_v28  ;;  %v18449_v6 = vld [vmem:[#allocation3 + $0x148] sm:$0xff]  ;;  %v18516_v28 = vld [vmem:[%s19426_s3 + $0x18] sm:$0xff] }
 0x528   : > { %7648 = vst.msk [vmem:[#allocation3 + $0x188] sm:$0xff] %vm323_vm2, %v7616_v53  ;;  %vm7555_vm7 = vcmp.ge.f32.partialorder %v7523_v40, 0.0  ;;  %v7587_v9 = vmul.f32 0.1, %v7523_v40  ;;  %14627 = vmatprep.mubr.msk.f32.mxu0 %vm323_vm2, %v18449_v6  ;;  %v18519_v53 = vld [vmem:[#allocation3 + $0x27] sm:$0xff] }
 0x529   : > { %vm7554_vm8 = vcmp.ge.f32.partialorder %v7522_v13, 0.0  ;;  %v7586_v45 = vmul.f32 0.1, %v7522_v13  ;;  %v14588_v15 = vpop.f32.mrb[58].mxu1  ;;  %14628 = vmatmul.mubr.msk.f32.gmra.mrb[52].mxu0 %vm323_vm2, %v18454_v46 }
 0x52a   : > { %v7619_v30 = vsel %vm7555_vm7, %v7523_v40, %v7587_v9  ;;  %v7525_v34 = vadd.f32 %v14588_v15, %v18326_v41  ;;  %v7432_v29 = vpop.f32.mrb[59].mxu1  ;;  %v18466_v10 = vld [vmem:[#allocation3 + $0x170] sm:$0xff]  ;;  %v18529_v9 = vld [vmem:[#allocation3 + $0x47] sm:$0xff] }
 0x52b   : > { %7651 = vst.msk [vmem:[#allocation3 + $0x1b0] sm:$0xff] %vm323_vm2, %v7619_v30  ;;  %v7618_v24 = vsel %vm7554_vm8, %v7522_v13, %v7586_v45  ;;  %v7524_v2 = vadd.f32 %v18326_v41, %v7432_v29  ;;  %v18461_v32 = vld [vmem:[#allocation3 + $0x168] sm:$0xff] }
 0x52c   : > { %7650 = vst.msk [vmem:[#allocation3 + $0x1a8] sm:$0xff] %vm323_vm2, %v7618_v24  ;;  %vm7557_vm9 = vcmp.ge.f32.partialorder %v7525_v34, 0.0  ;;  %v7589_v11 = vmul.f32 0.1, %v7525_v34  ;;  %14630 = vmatprep.mubr.msk.f32.mxu0 %vm323_vm2, %v18461_v32  ;;  %v7659_v40 = vld [vmem:[#allocation3 + $0xf] sm:$0xff]  ;;  %v18545_v30 = vld [vmem:[#allocation3 + $0x87] sm:$0xff] }
 0x52d   : > { %vm7556_vm10 = vcmp.ge.f32.partialorder %v7524_v2, 0.0  ;;  %v7588_v7 = vmul.f32 0.1, %v7524_v2  ;;  %v14591_v58 = vpop.f32.mrb[60].mxu1  ;;  %14631 = vmatmul.mubr.msk.f32.gmra.mrb[54].mxu0 %vm323_vm2, %v18466_v10  ;;  %v18525_v13 = vld [vmem:[#allocation3 + $0x2f] sm:$0xff]  ;;  %v18553_v29 = vld [vmem:[#allocation3 + $0xa7] sm:$0xff] }
 0x52e   : > { %v7621_v60 = vsel %vm7557_vm9, %v7525_v34, %v7589_v11  ;;  %v7527_v14 = vadd.f32 %v14591_v58, %v18326_v41  ;;  %v7442_v23 = vpop.f32.mrb[61].mxu1  ;;  %v18478_v19 = vld [vmem:[#allocation3 + $0x190] sm:$0xff] }
 0x52f   : > { %7653 = vst.msk [vmem:[#allocation3 + $0x1d0] sm:$0xff] %vm323_vm2, %v7621_v60  ;;  %v7620_v33 = vsel %vm7556_vm10, %v7524_v2, %v7588_v7  ;;  %v7526_v38 = vadd.f32 %v18326_v41, %v7442_v23  ;;  %v18473_v47 = vld [vmem:[#allocation3 + $0x188] sm:$0xff] }
 0x530   : > { %7652 = vst.msk [vmem:[#allocation3 + $0x1c8] sm:$0xff] %vm323_vm2, %v7620_v33  ;;  %vm7559_vm11 = vcmp.ge.f32.partialorder %v7527_v14, 0.0  ;;  %v7591_v61 = vmul.f32 0.1, %v7527_v14  ;;  %14633 = vmatprep.mubr.msk.f32.mxu0 %vm323_vm2, %v18473_v47  ;;  %v18533_v45 = vld [vmem:[#allocation3 + $0x4f] sm:$0xff]  ;;  %v18561_v2 = vld [vmem:[#allocation3 + $0xc7] sm:$0xff] }
 0x531   : > { %vm7558_vm12 = vcmp.ge.f32.partialorder %v7526_v38, 0.0  ;;  %v7590_v35 = vmul.f32 0.1, %v7526_v38  ;;  %v14594_v48 = vpop.f32.mrb[62].mxu1  ;;  %14634 = vmatmul.mubr.msk.f32.gmra.mrb[56].mxu0 %vm323_vm2, %v18478_v19  ;;  %v18541_v15 = vld [vmem:[#allocation3 + $0x6f] sm:$0xff]  ;;  %v18569_v7 = vld [vmem:[#allocation3 + $0xe7] sm:$0xff] }
 0x532   : > { %v7623_v27 = vsel %vm7559_vm11, %v7527_v14, %v7591_v61  ;;  %v7529_v1 = vadd.f32 %v14594_v48, %v18326_v41  ;;  %v7452_v49 = vpop.f32.mrb[63].mxu1  ;;  %v18490_v25 = vld [vmem:[#allocation3 + $0x1b0] sm:$0xff]  ;;  %v18577_v60 = vld [vmem:[#allocation3 + $0x107] sm:$0xff] }
 0x533   : > { %7655 = vst.msk [vmem:[#allocation3 + $0x1f0] sm:$0xff] %vm323_vm2, %v7623_v27  ;;  %v7622_v3 = vsel %vm7558_vm12, %v7526_v38, %v7590_v35  ;;  %v7528_v52 = vadd.f32 %v18326_v41, %v7452_v49  ;;  %v18485_v31 = vld [vmem:[#allocation3 + $0x1a8] sm:$0xff] }
 0x534   : > { %7654 = vst.msk [vmem:[#allocation3 + $0x1e8] sm:$0xff] %vm323_vm2, %v7622_v3  ;;  %vm7561_vm13 = vcmp.ge.f32.partialorder %v7529_v1, 0.0  ;;  %v7593_v17 = vmul.f32 0.1, %v7529_v1  ;;  %14636 = vmatprep.mubr.msk.f32.mxu0 %vm323_vm2, %v18485_v31  ;;  %v18549_v34 = vld [vmem:[#allocation3 + $0x8f] sm:$0xff]  ;;  %v18585_v23 = vld [vmem:[#allocation3 + $0x127] sm:$0xff] }
 0x535   : > { %vm7560_vm14 = vcmp.ge.f32.partialorder %v7528_v52, 0.0  ;;  %v7592_v20 = vmul.f32 0.1, %v7528_v52  ;;  %14637 = vmatmul.mubr.msk.f32.gmra.mrb[58].mxu0 %vm323_vm2, %v18490_v25  ;;  %v18557_v24 = vld [vmem:[#allocation3 + $0xaf] sm:$0xff]  ;;  %v18593_v38 = vld [vmem:[#allocation3 + $0x147] sm:$0xff] }
 0x536   : > { %v7625_v4 = vsel %vm7561_vm13, %v7529_v1, %v7593_v17  ;;  %v18500_v57 = vld [vmem:[#allocation3 + $0x1d0] sm:$0xff]  ;;  %v18601_v35 = vld [vmem:[#allocation3 + $0x167] sm:$0xff] }
 0x537   : > { %7657 = vst.msk [vmem:[#allocation3 + $0x210] sm:$0xff] %vm323_vm2, %v7625_v4  ;;  %v7624_v41 = vsel %vm7560_vm14, %v7528_v52, %v7592_v20  ;;  %v18495_v8 = vld [vmem:[#allocation3 + $0x1c8] sm:$0xff] }
 0x538   : > { %7656 = vst.msk [vmem:[#allocation3 + $0x208] sm:$0xff] %vm323_vm2, %v7624_v41  ;;  %14639 = vmatprep.mubr.msk.f32.mxu0 %vm323_vm2, %v18495_v8  ;;  %v18565_v11 = vld [vmem:[#allocation3 + $0xcf] sm:$0xff]  ;;  %v18609_v27 = vld [vmem:[#allocation3 + $0x187] sm:$0xff] }
 0x539   : > { %14640 = vmatmul.mubr.msk.f32.gmra.mrb[60].mxu0 %vm323_vm2, %v18500_v57  ;;  %v18573_v58 = vld [vmem:[#allocation3 + $0xef] sm:$0xff]  ;;  %v18617_v49 = vld [vmem:[#allocation3 + $0x1a7] sm:$0xff] }
 0x53a   : > { %v18508_v0 = vld [vmem:[#allocation3 + $0x1f0] sm:$0xff]  ;;  %v18625_v52 = vld [vmem:[#allocation3 + $0x1c7] sm:$0xff] }
 0x53b   : > { %v18504_v39 = vld [vmem:[#allocation3 + $0x1e8] sm:$0xff]  ;;  %19790 = vst [vmem:[#allocation73_spill] sm:$0xff] %v18508_v0 }
 0x53c   : > { %19789 = vst [vmem:[#allocation72_spill] sm:$0xff] %v18504_v39  ;;  %14642 = vmatprep.mubr.msk.f32.mxu0 %vm323_vm2, %v18504_v39  ;;  %v18581_v14 = vld [vmem:[#allocation3 + $0x10f] sm:$0xff]  ;;  %v18633_v20 = vld [vmem:[#allocation3 + $0x1e7] sm:$0xff] }
 0x53d   : > { %14643 = vmatmul.mubr.msk.f32.gmra.mrb[62].mxu0 %vm323_vm2, %v18508_v0  ;;  %v18589_v33 = vld [vmem:[#allocation3 + $0x12f] sm:$0xff] }
 0x53e   : > { %14647 = vmatprep.mubr.msk.f32.mxu0 %vm323_vm2, %v7658_v50  ;;  %v18597_v61 = vld [vmem:[#allocation3 + $0x14f] sm:$0xff] }
 0x53f   : > { %v18605_v48 = vld [vmem:[#allocation3 + $0x16f] sm:$0xff] }
 0x540   : > { %v18613_v1 = vld [vmem:[#allocation3 + $0x18f] sm:$0xff] }
 0x541   : > { %14648 = vmatmul.mubr.msk.f32.vlgmr.msra.gmra.mrb[32].mxu0 %vm323_vm2, %v7659_v40  ;;  %v18621_v3 = vld [vmem:[#allocation3 + $0x1af] sm:$0xff]  ;;  %v18645_v40 = vld [vmem:[%s19426_s3 + $0x20] sm:$0xff] }
 0x542   : > { %14696 = vmatpush3.msra.mxu0 %v18320_v42  ;;  %14650 = vmatprep.mubr.msk.f32.mxu0 %vm323_vm2, %v18519_v53  ;;  %v18537_v42 = vld [vmem:[#allocation3 + $0x67] sm:$0xff]  ;;  %v18629_v17 = vld [vmem:[#allocation3 + $0x1cf] sm:$0xff] }
 0x543   : > { %14745 = vmatprep.subr.mxu0 %v18516_v28  ;;  %v8367_v4 = vld [vmem:[#allocation3 + $0x9] sm:$0xff]  ;;  %v8368_v50 = vld [vmem:[#allocation3 + $0x11] sm:$0xff] }
 0x544   : > { %v18637_v41 = vld [vmem:[#allocation3 + $0x1ef] sm:$0xff] }
 0x545   : > { %14651 = vmatmul.mubr.msk.f32.gmra.mrb[34].mxu0 %vm323_vm2, %v18525_v13  ;;  %v18648_v0 = vld [vmem:[#allocation3 + $0x29] sm:$0xff]  ;;  %v18654_v39 = vld [vmem:[#allocation3 + $0x31] sm:$0xff] }
 0x546   : > { %14653 = vmatprep.mubr.msk.f32.mxu0 %vm323_vm2, %v18529_v9  ;;  %19791 = vst [vmem:[#allocation74_spill] sm:$0xff] %v18648_v0  ;;  %19792 = vst [vmem:[#allocation75_spill] sm:$0xff] %v18654_v39 }
 0x549   : > { %14654 = vmatmul.mubr.msk.f32.gmra.mrb[36].mxu0 %vm323_vm2, %v18533_v45 }
 0x54a   : > { %14656 = vmatprep.mubr.msk.f32.mxu0 %vm323_vm2, %v18537_v42 }
 0x54d   : > { %14657 = vmatmul.mubr.msk.f32.gmra.mrb[38].mxu0 %vm323_vm2, %v18541_v15 }
 0x54e   : > { %14659 = vmatprep.mubr.msk.f32.mxu0 %vm323_vm2, %v18545_v30 }
 0x551   : > { %14660 = vmatmul.mubr.msk.f32.gmra.mrb[40].mxu0 %vm323_vm2, %v18549_v34 }
 0x552   : > { %14662 = vmatprep.mubr.msk.f32.mxu0 %vm323_vm2, %v18553_v29 }
 0x555   : > { %14663 = vmatmul.mubr.msk.f32.gmra.mrb[42].mxu0 %vm323_vm2, %v18557_v24 }
 0x556   : > { %14665 = vmatprep.mubr.msk.f32.mxu0 %vm323_vm2, %v18561_v2 }
 0x559   : > { %14666 = vmatmul.mubr.msk.f32.gmra.mrb[44].mxu0 %vm323_vm2, %v18565_v11 }
 0x55a   : > { %14668 = vmatprep.mubr.msk.f32.mxu0 %vm323_vm2, %v18569_v7 }
 0x55d   : > { %14669 = vmatmul.mubr.msk.f32.gmra.mrb[46].mxu0 %vm323_vm2, %v18573_v58 }
 0x55e   : > { %14671 = vmatprep.mubr.msk.f32.mxu0 %vm323_vm2, %v18577_v60 }
 0x561   : > { %14672 = vmatmul.mubr.msk.f32.gmra.mrb[48].mxu0 %vm323_vm2, %v18581_v14 }
 0x562   : > { %14674 = vmatprep.mubr.msk.f32.mxu0 %vm323_vm2, %v18585_v23 }
 0x565   : > { %14675 = vmatmul.mubr.msk.f32.gmra.mrb[50].mxu0 %vm323_vm2, %v18589_v33 }
 0x566   : > { %14677 = vmatprep.mubr.msk.f32.mxu0 %vm323_vm2, %v18593_v38 }
 0x569   : > { %14678 = vmatmul.mubr.msk.f32.gmra.mrb[52].mxu0 %vm323_vm2, %v18597_v61 }
 0x56a   : > { %14680 = vmatprep.mubr.msk.f32.mxu0 %vm323_vm2, %v18601_v35 }
 0x56d   : > { %14681 = vmatmul.mubr.msk.f32.gmra.mrb[54].mxu0 %vm323_vm2, %v18605_v48 }
 0x56e   : > { %14683 = vmatprep.mubr.msk.f32.mxu0 %vm323_vm2, %v18609_v27 }
 0x571   : > { %14684 = vmatmul.mubr.msk.f32.gmra.mrb[56].mxu0 %vm323_vm2, %v18613_v1 }
 0x572   : > { %14686 = vmatprep.mubr.msk.f32.mxu0 %vm323_vm2, %v18617_v49 }
 0x575   : > { %14687 = vmatmul.mubr.msk.f32.gmra.mrb[58].mxu0 %vm323_vm2, %v18621_v3 }
 0x576   : > { %14689 = vmatprep.mubr.msk.f32.mxu0 %vm323_vm2, %v18625_v52 }
 0x579   : > { %14690 = vmatmul.mubr.msk.f32.gmra.mrb[60].mxu0 %vm323_vm2, %v18629_v17 }
 0x57a   : > { %14692 = vmatprep.mubr.msk.f32.mxu0 %vm323_vm2, %v18633_v20 }
 0x57d   : > { %14693 = vmatmul.mubr.msk.f32.gmra.mrb[62].mxu0 %vm323_vm2, %v18637_v41 }
 0x57e   : > { %14697 = vmatprep.mubr.msk.f32.mxu0 %vm323_vm2, %v8367_v4  ;;  %v18658_v4 = vld [vmem:[#allocation3 + $0x49] sm:$0xff] }
 0x57f   : > { %19793 = vst [vmem:[#allocation45_spill] sm:$0xff] %v18658_v4 }
 0x581   : > { %14698 = vmatmul.mubr.msk.f32.vlgmr.msra.gmra.mrb[32].mxu0 %vm323_vm2, %v8368_v50  ;;  %v18662_v50 = vld [vmem:[#allocation3 + $0x51] sm:$0xff] }
 0x582   : > { %14746 = vmatpush3.msra.mxu0 %v18516_v28  ;;  %14700 = vmatprep.mubr.msk.f32.mxu0 %vm323_vm2, %v18648_v0  ;;  %19794 = vst [vmem:[#allocation46_spill] sm:$0xff] %v18662_v50  ;;  %v18666_v28 = vld [vmem:[#allocation3 + $0x69] sm:$0xff]  ;;  %v18670_v0 = vld [vmem:[#allocation3 + $0x71] sm:$0xff] }
 0x583   : > { %14795 = vmatprep.subr.mxu0 %v18645_v40  ;;  %19795 = vst [vmem:[#allocation42_spill] sm:$0xff] %v18666_v28  ;;  %19796 = vst [vmem:[#allocation41_spill] sm:$0xff] %v18670_v0 }
 0x585   : > { %14701 = vmatmul.mubr.msk.f32.gmra.mrb[34].mxu0 %vm323_vm2, %v18654_v39  ;;  %v18674_v39 = vld [vmem:[#allocation3 + $0x89] sm:$0xff] }
 0x586   : > { %14703 = vmatprep.mubr.msk.f32.mxu0 %vm323_vm2, %v18658_v4  ;;  %19797 = vst [vmem:[#allocation43_spill] sm:$0xff] %v18674_v39  ;;  %v18678_v4 = vld [vmem:[#allocation3 + $0x91] sm:$0xff] }
 0x587   : > { %19798 = vst [vmem:[#allocation44_spill] sm:$0xff] %v18678_v4 }
 0x589   : > { %14704 = vmatmul.mubr.msk.f32.gmra.mrb[36].mxu0 %vm323_vm2, %v18662_v50  ;;  %v18682_v50 = vld [vmem:[#allocation3 + $0xa9] sm:$0xff] }
 0x58a   : > { %14706 = vmatprep.mubr.msk.f32.mxu0 %vm323_vm2, %v18666_v28  ;;  %19799 = vst [vmem:[#allocation47_spill] sm:$0xff] %v18682_v50  ;;  %v18686_v28 = vld [vmem:[#allocation3 + $0xb1] sm:$0xff] }
 0x58b   : > { %19800 = vst [vmem:[#allocation49_spill] sm:$0xff] %v18686_v28 }
 0x58d   : > { %14707 = vmatmul.mubr.msk.f32.gmra.mrb[38].mxu0 %vm323_vm2, %v18670_v0  ;;  %v18690_v0 = vld [vmem:[#allocation3 + $0xc9] sm:$0xff] }
 0x58e   : > { %14709 = vmatprep.mubr.msk.f32.mxu0 %vm323_vm2, %v18674_v39  ;;  %19801 = vst [vmem:[#allocation48_spill] sm:$0xff] %v18690_v0  ;;  %v18694_v39 = vld [vmem:[#allocation3 + $0xd1] sm:$0xff] }
 0x58f   : > { %19802 = vst [vmem:[#allocation50_spill] sm:$0xff] %v18694_v39 }
 0x591   : > { %14710 = vmatmul.mubr.msk.f32.gmra.mrb[40].mxu0 %vm323_vm2, %v18678_v4  ;;  %v18698_v4 = vld [vmem:[#allocation3 + $0xe9] sm:$0xff] }
 0x592   : > { %14712 = vmatprep.mubr.msk.f32.mxu0 %vm323_vm2, %v18682_v50  ;;  %19803 = vst [vmem:[#allocation51_spill] sm:$0xff] %v18698_v4  ;;  %v18702_v50 = vld [vmem:[#allocation3 + $0xf1] sm:$0xff] }
 0x593   : > { %19804 = vst [vmem:[#allocation62_spill] sm:$0xff] %v18702_v50 }
 0x595   : > { %14713 = vmatmul.mubr.msk.f32.gmra.mrb[42].mxu0 %vm323_vm2, %v18686_v28  ;;  %v18706_v28 = vld [vmem:[#allocation3 + $0x109] sm:$0xff] }
 0x596   : > { %14715 = vmatprep.mubr.msk.f32.mxu0 %vm323_vm2, %v18690_v0  ;;  %19805 = vst [vmem:[#allocation64_spill] sm:$0xff] %v18706_v28  ;;  %v18710_v0 = vld [vmem:[#allocation3 + $0x111] sm:$0xff] }
 0x597   : > { %19806 = vst [vmem:[#allocation65_spill] sm:$0xff] %v18710_v0 }
 0x599   : > { %14716 = vmatmul.mubr.msk.f32.gmra.mrb[44].mxu0 %vm323_vm2, %v18694_v39  ;;  %v18714_v39 = vld [vmem:[#allocation3 + $0x129] sm:$0xff] }
 0x59a   : > { %14718 = vmatprep.mubr.msk.f32.mxu0 %vm323_vm2, %v18698_v4  ;;  %19807 = vst [vmem:[#allocation66_spill] sm:$0xff] %v18714_v39  ;;  %v18718_v4 = vld [vmem:[#allocation3 + $0x131] sm:$0xff] }
 0x59b   : > { %19808 = vst [vmem:[#allocation68_spill] sm:$0xff] %v18718_v4 }
 0x59d   : > { %14719 = vmatmul.mubr.msk.f32.gmra.mrb[46].mxu0 %vm323_vm2, %v18702_v50  ;;  %v18722_v50 = vld [vmem:[#allocation3 + $0x149] sm:$0xff] }
 0x59e   : > { %14721 = vmatprep.mubr.msk.f32.mxu0 %vm323_vm2, %v18706_v28  ;;  %19809 = vst [vmem:[#allocation70_spill] sm:$0xff] %v18722_v50  ;;  %v18726_v28 = vld [vmem:[#allocation3 + $0x151] sm:$0xff] }
 0x59f   : > { %19810 = vst [vmem:[#allocation52_spill] sm:$0xff] %v18726_v28 }
 0x5a1   : > { %14722 = vmatmul.mubr.msk.f32.gmra.mrb[48].mxu0 %vm323_vm2, %v18710_v0  ;;  %v18730_v0 = vld [vmem:[#allocation3 + $0x169] sm:$0xff] }
 0x5a2   : > { %14724 = vmatprep.mubr.msk.f32.mxu0 %vm323_vm2, %v18714_v39  ;;  %19811 = vst [vmem:[#allocation53_spill] sm:$0xff] %v18730_v0  ;;  %v18734_v39 = vld [vmem:[#allocation3 + $0x171] sm:$0xff] }
 0x5a3   : > { %19812 = vst [vmem:[#allocation54_spill] sm:$0xff] %v18734_v39 }
 0x5a5   : > { %14725 = vmatmul.mubr.msk.f32.gmra.mrb[50].mxu0 %vm323_vm2, %v18718_v4  ;;  %v18738_v4 = vld [vmem:[#allocation3 + $0x189] sm:$0xff] }
 0x5a6   : > { %14727 = vmatprep.mubr.msk.f32.mxu0 %vm323_vm2, %v18722_v50  ;;  %19813 = vst [vmem:[#allocation55_spill] sm:$0xff] %v18738_v4  ;;  %v18742_v50 = vld [vmem:[#allocation3 + $0x191] sm:$0xff] }
 0x5a7   : > { %19814 = vst [vmem:[#allocation56_spill] sm:$0xff] %v18742_v50 }
 0x5a9   : > { %14728 = vmatmul.mubr.msk.f32.gmra.mrb[52].mxu0 %vm323_vm2, %v18726_v28  ;;  %v18746_v28 = vld [vmem:[#allocation3 + $0x1a9] sm:$0xff] }
 0x5aa   : > { %14730 = vmatprep.mubr.msk.f32.mxu0 %vm323_vm2, %v18730_v0  ;;  %19815 = vst [vmem:[#allocation57_spill] sm:$0xff] %v18746_v28  ;;  %v18750_v0 = vld [vmem:[#allocation3 + $0x1b1] sm:$0xff] }
 0x5ad   : > { %14731 = vmatmul.mubr.msk.f32.gmra.mrb[54].mxu0 %vm323_vm2, %v18734_v39  ;;  %v18754_v39 = vld [vmem:[#allocation3 + $0x1c9] sm:$0xff] }
 0x5ae   : > { %14733 = vmatprep.mubr.msk.f32.mxu0 %vm323_vm2, %v18738_v4  ;;  %19816 = vst [vmem:[#allocation58_spill] sm:$0xff] %v18754_v39  ;;  %v18758_v4 = vld [vmem:[#allocation3 + $0x1d1] sm:$0xff] }
 0x5b1   : > { %14734 = vmatmul.mubr.msk.f32.gmra.mrb[56].mxu0 %vm323_vm2, %v18742_v50  ;;  %v18762_v50 = vld [vmem:[#allocation3 + $0x1e9] sm:$0xff] }
 0x5b2   : > { %14736 = vmatprep.mubr.msk.f32.mxu0 %vm323_vm2, %v18746_v28  ;;  %19817 = vst [vmem:[#allocation59_spill] sm:$0xff] %v18762_v50  ;;  %v18766_v28 = vld [vmem:[#allocation3 + $0x1f1] sm:$0xff] }
 0x5b5   : > { %14737 = vmatmul.mubr.msk.f32.gmra.mrb[58].mxu0 %vm323_vm2, %v18750_v0 }
 0x5b6   : > { %14739 = vmatprep.mubr.msk.f32.mxu0 %vm323_vm2, %v18754_v39  ;;  %v12597_v39 = vld [vmem:[%s19426_s3 + $0x28] sm:$0xff] }
 0x5b9   : > { %14740 = vmatmul.mubr.msk.f32.gmra.mrb[60].mxu0 %vm323_vm2, %v18758_v4 }
 0x5ba   : > { %14742 = vmatprep.mubr.msk.f32.mxu0 %vm323_vm2, %v18762_v50 }
 0x5bd   : > { %14743 = vmatmul.mubr.msk.f32.gmra.mrb[62].mxu0 %vm323_vm2, %v18766_v28 }
 0x5be   : > { %14747 = vmatprep.mubr.msk.f32.mxu0 %vm323_vm2, %v18519_v53  ;;  %v18834_v53 = vld [vmem:[#allocation3 + $0x207] sm:$0xff] }
 0x5c1   : > { %14748 = vmatmul.mubr.msk.f32.vlgmr.msra.gmra.mrb[32].mxu0 %vm323_vm2, %v18525_v13  ;;  %v18838_v13 = vld [vmem:[#allocation3 + $0x20f] sm:$0xff] }
 0x5c2   : > { %14796 = vmatpush3.msra.mxu0 %v18645_v40  ;;  %14750 = vmatprep.mubr.msk.f32.mxu0 %vm323_vm2, %v18529_v9  ;;  %v12630_v40 = vld [vmem:[%s19426_s3 + $0x30] sm:$0xff] }
 0x5c3   : > { %14845 = vmatprep.subr.mxu0 %v12597_v39 }
 0x5c5   : > { %14751 = vmatmul.mubr.msk.f32.gmra.mrb[34].mxu0 %vm323_vm2, %v18533_v45 }
 0x5c6   : > { %14753 = vmatprep.mubr.msk.f32.mxu0 %vm323_vm2, %v18537_v42 }
 0x5c9   : > { %14754 = vmatmul.mubr.msk.f32.gmra.mrb[36].mxu0 %vm323_vm2, %v18541_v15 }
 0x5ca   : > { %14756 = vmatprep.mubr.msk.f32.mxu0 %vm323_vm2, %v18545_v30 }
 0x5cd   : > { %14757 = vmatmul.mubr.msk.f32.gmra.mrb[38].mxu0 %vm323_vm2, %v18549_v34 }
 0x5ce   : > { %14759 = vmatprep.mubr.msk.f32.mxu0 %vm323_vm2, %v18553_v29 }
 0x5d1   : > { %14760 = vmatmul.mubr.msk.f32.gmra.mrb[40].mxu0 %vm323_vm2, %v18557_v24 }
 0x5d2   : > { %14762 = vmatprep.mubr.msk.f32.mxu0 %vm323_vm2, %v18561_v2 }
 0x5d5   : > { %14763 = vmatmul.mubr.msk.f32.gmra.mrb[42].mxu0 %vm323_vm2, %v18565_v11 }
 0x5d6   : > { %14765 = vmatprep.mubr.msk.f32.mxu0 %vm323_vm2, %v18569_v7 }
 0x5d9   : > { %14766 = vmatmul.mubr.msk.f32.gmra.mrb[44].mxu0 %vm323_vm2, %v18573_v58 }
 0x5da   : > { %14768 = vmatprep.mubr.msk.f32.mxu0 %vm323_vm2, %v18577_v60 }
 0x5dd   : > { %14769 = vmatmul.mubr.msk.f32.gmra.mrb[46].mxu0 %vm323_vm2, %v18581_v14 }
 0x5de   : > { %14771 = vmatprep.mubr.msk.f32.mxu0 %vm323_vm2, %v18585_v23 }
 0x5e1   : > { %14772 = vmatmul.mubr.msk.f32.gmra.mrb[48].mxu0 %vm323_vm2, %v18589_v33 }
 0x5e2   : > { %14774 = vmatprep.mubr.msk.f32.mxu0 %vm323_vm2, %v18593_v38 }
 0x5e5   : > { %14775 = vmatmul.mubr.msk.f32.gmra.mrb[50].mxu0 %vm323_vm2, %v18597_v61 }
 0x5e6   : > { %14777 = vmatprep.mubr.msk.f32.mxu0 %vm323_vm2, %v18601_v35 }
 0x5e9   : > { %14778 = vmatmul.mubr.msk.f32.gmra.mrb[52].mxu0 %vm323_vm2, %v18605_v48 }
 0x5ea   : > { %14780 = vmatprep.mubr.msk.f32.mxu0 %vm323_vm2, %v18609_v27 }
 0x5ed   : > { %14781 = vmatmul.mubr.msk.f32.gmra.mrb[54].mxu0 %vm323_vm2, %v18613_v1 }
 0x5ee   : > { %14783 = vmatprep.mubr.msk.f32.mxu0 %vm323_vm2, %v18617_v49 }
 0x5f1   : > { %14784 = vmatmul.mubr.msk.f32.gmra.mrb[56].mxu0 %vm323_vm2, %v18621_v3 }
 0x5f2   : > { %14786 = vmatprep.mubr.msk.f32.mxu0 %vm323_vm2, %v18625_v52 }
 0x5f5   : > { %14787 = vmatmul.mubr.msk.f32.gmra.mrb[58].mxu0 %vm323_vm2, %v18629_v17 }
 0x5f6   : > { %14789 = vmatprep.mubr.msk.f32.mxu0 %vm323_vm2, %v18633_v20 }
 0x5f9   : > { %14790 = vmatmul.mubr.msk.f32.gmra.mrb[60].mxu0 %vm323_vm2, %v18637_v41 }
 0x5fa   : > { %14792 = vmatprep.mubr.msk.f32.mxu0 %vm323_vm2, %v18834_v53 }
 0x5fd   : > { %14793 = vmatmul.mubr.msk.f32.gmra.mrb[62].mxu0 %vm323_vm2, %v18838_v13 }
 0x5fe   : > { %14797 = vmatprep.mubr.msk.f32.mxu0 %vm323_vm2, %v18341_v62  ;;  %v19818_v62 = vld [vmem:[#allocation72_spill] sm:$0xff] }
 0x601   : > { %14798 = vmatmul.mubr.msk.f32.vlgmr.msra.gmra.mrb[32].mxu0 %vm323_vm2, %v18346_v5  ;;  %v19819_v5 = vld [vmem:[#allocation73_spill] sm:$0xff] }
 0x602   : > { %14846 = vmatpush3.msra.mxu0 %v12597_v39  ;;  %14800 = vmatprep.mubr.msk.f32.mxu0 %vm323_vm2, %v18353_v59  ;;  %v18905_v59 = vld [vmem:[#allocation3 + $0x208] sm:$0xff] }
 0x603   : > { %14895 = vmatprep.subr.mxu0 %v12630_v40  ;;  %v19831_v39 = vld [vmem:[#allocation50_spill] sm:$0xff] }
 0x605   : > { %14801 = vmatmul.mubr.msk.f32.gmra.mrb[34].mxu0 %vm323_vm2, %v18358_v37  ;;  %v18909_v37 = vld [vmem:[#allocation3 + $0x210] sm:$0xff] }
 0x606   : > { %14803 = vmatprep.mubr.msk.f32.mxu0 %vm323_vm2, %v18365_v63  ;;  %v19820_v63 = vld [vmem:[#allocation74_spill] sm:$0xff] }
 0x609   : > { %14804 = vmatmul.mubr.msk.f32.gmra.mrb[36].mxu0 %vm323_vm2, %v18370_v18  ;;  %v12663_v18 = vld [vmem:[%s19426_s3 + $0x38] sm:$0xff] }
 0x60a   : > { %14806 = vmatprep.mubr.msk.f32.mxu0 %vm323_vm2, %v18377_v44  ;;  %v19821_v44 = vld [vmem:[#allocation75_spill] sm:$0xff] }
 0x60d   : > { %14807 = vmatmul.mubr.msk.f32.gmra.mrb[38].mxu0 %vm323_vm2, %v18382_v51  ;;  %v19822_v51 = vld [vmem:[#allocation45_spill] sm:$0xff] }
 0x60e   : > { %14809 = vmatprep.mubr.msk.f32.mxu0 %vm323_vm2, %v18389_v26  ;;  %v19823_v26 = vld [vmem:[#allocation46_spill] sm:$0xff] }
 0x611   : > { %14810 = vmatmul.mubr.msk.f32.gmra.mrb[40].mxu0 %vm323_vm2, %v18394_v12  ;;  %v19824_v12 = vld [vmem:[#allocation42_spill] sm:$0xff] }
 0x612   : > { %14812 = vmatprep.mubr.msk.f32.mxu0 %vm323_vm2, %v18401_v36  ;;  %v19825_v36 = vld [vmem:[#allocation41_spill] sm:$0xff] }
 0x615   : > { %14813 = vmatmul.mubr.msk.f32.gmra.mrb[42].mxu0 %vm323_vm2, %v18406_v56  ;;  %v19826_v56 = vld [vmem:[#allocation43_spill] sm:$0xff] }
 0x616   : > { %14815 = vmatprep.mubr.msk.f32.mxu0 %vm323_vm2, %v18413_v54  ;;  %v19827_v54 = vld [vmem:[#allocation44_spill] sm:$0xff] }
 0x619   : > { %14816 = vmatmul.mubr.msk.f32.gmra.mrb[44].mxu0 %vm323_vm2, %v18418_v21  ;;  %v19828_v21 = vld [vmem:[#allocation47_spill] sm:$0xff] }
 0x61a   : > { %14818 = vmatprep.mubr.msk.f32.mxu0 %vm323_vm2, %v18425_v55  ;;  %v19829_v55 = vld [vmem:[#allocation49_spill] sm:$0xff] }
 0x61d   : > { %14819 = vmatmul.mubr.msk.f32.gmra.mrb[46].mxu0 %vm323_vm2, %v18430_v16  ;;  %v19830_v16 = vld [vmem:[#allocation48_spill] sm:$0xff] }
 0x61e   : > { %14821 = vmatprep.mubr.msk.f32.mxu0 %vm323_vm2, %v18437_v43 }
 0x621   : > { %14822 = vmatmul.mubr.msk.f32.gmra.mrb[48].mxu0 %vm323_vm2, %v18442_v22 }
 0x622   : > { %14824 = vmatprep.mubr.msk.f32.mxu0 %vm323_vm2, %v18449_v6 }
 0x625   : > { %14825 = vmatmul.mubr.msk.f32.gmra.mrb[50].mxu0 %vm323_vm2, %v18454_v46 }
 0x626   : > { %14827 = vmatprep.mubr.msk.f32.mxu0 %vm323_vm2, %v18461_v32 }
 0x629   : > { %14828 = vmatmul.mubr.msk.f32.gmra.mrb[52].mxu0 %vm323_vm2, %v18466_v10 }
 0x62a   : > { %14830 = vmatprep.mubr.msk.f32.mxu0 %vm323_vm2, %v18473_v47 }
 0x62d   : > { %14831 = vmatmul.mubr.msk.f32.gmra.mrb[54].mxu0 %vm323_vm2, %v18478_v19 }
 0x62e   : > { %14833 = vmatprep.mubr.msk.f32.mxu0 %vm323_vm2, %v18485_v31 }
 0x631   : > { %14834 = vmatmul.mubr.msk.f32.gmra.mrb[56].mxu0 %vm323_vm2, %v18490_v25 }
 0x632   : > { %14836 = vmatprep.mubr.msk.f32.mxu0 %vm323_vm2, %v18495_v8 }
 0x635   : > { %14837 = vmatmul.mubr.msk.f32.gmra.mrb[58].mxu0 %vm323_vm2, %v18500_v57 }
 0x636   : > { %14839 = vmatprep.mubr.msk.f32.mxu0 %vm323_vm2, %v19818_v62 }
 0x639   : > { %14840 = vmatmul.mubr.msk.f32.gmra.mrb[60].mxu0 %vm323_vm2, %v19819_v5 }
 0x63a   : > { %14842 = vmatprep.mubr.msk.f32.mxu0 %vm323_vm2, %v18905_v59 }
 0x63d   : > { %14843 = vmatmul.mubr.msk.f32.gmra.mrb[62].mxu0 %vm323_vm2, %v18909_v37 }
 0x63e   : > { %14847 = vmatprep.mubr.msk.f32.mxu0 %vm323_vm2, %v19820_v63  ;;  %v19833_v63 = vld [vmem:[#allocation62_spill] sm:$0xff] }
 0x641   : > { %14848 = vmatmul.mubr.msk.f32.vlgmr.msra.gmra.mrb[32].mxu0 %vm323_vm2, %v19821_v44  ;;  %v19834_v44 = vld [vmem:[#allocation64_spill] sm:$0xff] }
 0x642   : > { %14896 = vmatpush3.msra.mxu0 %v12630_v40  ;;  %14850 = vmatprep.mubr.msk.f32.mxu0 %vm323_vm2, %v19822_v51  ;;  %v19832_v40 = vld [vmem:[#allocation51_spill] sm:$0xff] }
 0x643   : > { %14945 = vmatprep.subr.mxu0 %v12663_v18 }
 0x645   : > { %14851 = vmatmul.mubr.msk.f32.gmra.mrb[34].mxu0 %vm323_vm2, %v19823_v26 }
 0x646   : > { %14853 = vmatprep.mubr.msk.f32.mxu0 %vm323_vm2, %v19824_v12 }
 0x649   : > { %14854 = vmatmul.mubr.msk.f32.gmra.mrb[36].mxu0 %vm323_vm2, %v19825_v36 }
 0x64a   : > { %14856 = vmatprep.mubr.msk.f32.mxu0 %vm323_vm2, %v19826_v56 }
 0x64d   : > { %14857 = vmatmul.mubr.msk.f32.gmra.mrb[38].mxu0 %vm323_vm2, %v19827_v54  ;;  %v19835_v54 = vld [vmem:[#allocation65_spill] sm:$0xff] }
 0x64e   : > { %14859 = vmatprep.mubr.msk.f32.mxu0 %vm323_vm2, %v19828_v21  ;;  %v19836_v21 = vld [vmem:[#allocation66_spill] sm:$0xff] }
 0x651   : > { %14860 = vmatmul.mubr.msk.f32.gmra.mrb[40].mxu0 %vm323_vm2, %v19829_v55  ;;  %v19837_v55 = vld [vmem:[#allocation68_spill] sm:$0xff] }
 0x652   : > { %14862 = vmatprep.mubr.msk.f32.mxu0 %vm323_vm2, %v19830_v16  ;;  %v19838_v16 = vld [vmem:[#allocation70_spill] sm:$0xff] }
 0x655   : > { %14863 = vmatmul.mubr.msk.f32.gmra.mrb[42].mxu0 %vm323_vm2, %v19831_v39  ;;  %v19839_v39 = vld [vmem:[#allocation52_spill] sm:$0xff] }
 0x656   : > { %14865 = vmatprep.mubr.msk.f32.mxu0 %vm323_vm2, %v19832_v40  ;;  %v19840_v40 = vld [vmem:[#allocation53_spill] sm:$0xff] }
 0x659   : > { %14866 = vmatmul.mubr.msk.f32.gmra.mrb[44].mxu0 %vm323_vm2, %v19833_v63  ;;  %v19841_v63 = vld [vmem:[#allocation54_spill] sm:$0xff] }
 0x65a   : > { %14868 = vmatprep.mubr.msk.f32.mxu0 %vm323_vm2, %v19834_v44  ;;  %v19842_v44 = vld [vmem:[#allocation55_spill] sm:$0xff] }
 0x65d   : > { %14869 = vmatmul.mubr.msk.f32.gmra.mrb[46].mxu0 %vm323_vm2, %v19835_v54  ;;  %v19843_v54 = vld [vmem:[#allocation56_spill] sm:$0xff] }
 0x65e   : > { %14871 = vmatprep.mubr.msk.f32.mxu0 %vm323_vm2, %v19836_v21  ;;  %v19844_v21 = vld [vmem:[#allocation57_spill] sm:$0xff] }
 0x661   : > { %14872 = vmatmul.mubr.msk.f32.gmra.mrb[48].mxu0 %vm323_vm2, %v19837_v55 }
 0x662   : > { %14874 = vmatprep.mubr.msk.f32.mxu0 %vm323_vm2, %v19838_v16  ;;  %v19845_v16 = vld [vmem:[#allocation58_spill] sm:$0xff] }
 0x665   : > { %14875 = vmatmul.mubr.msk.f32.gmra.mrb[50].mxu0 %vm323_vm2, %v19839_v39 }
 0x666   : > { %14877 = vmatprep.mubr.msk.f32.mxu0 %vm323_vm2, %v19840_v40 }
 0x669   : > { %14878 = vmatmul.mubr.msk.f32.gmra.mrb[52].mxu0 %vm323_vm2, %v19841_v63 }
 0x66a   : > { %14880 = vmatprep.mubr.msk.f32.mxu0 %vm323_vm2, %v19842_v44  ;;  %v18976_v44 = vld [vmem:[#allocation3 + $0x209] sm:$0xff] }
 0x66d   : > { %14881 = vmatmul.mubr.msk.f32.gmra.mrb[54].mxu0 %vm323_vm2, %v19843_v54 }
 0x66e   : > { %14883 = vmatprep.mubr.msk.f32.mxu0 %vm323_vm2, %v19844_v21  ;;  %v18980_v21 = vld [vmem:[#allocation3 + $0x211] sm:$0xff] }
 0x671   : > { %14884 = vmatmul.mubr.msk.f32.gmra.mrb[56].mxu0 %vm323_vm2, %v18750_v0 }
 0x672   : > { %14886 = vmatprep.mubr.msk.f32.mxu0 %vm323_vm2, %v19845_v16 }
 0x675   : > { %14887 = vmatmul.mubr.msk.f32.gmra.mrb[58].mxu0 %vm323_vm2, %v18758_v4 }
 0x676   : > { %14889 = vmatprep.mubr.msk.f32.mxu0 %vm323_vm2, %v18762_v50  ;;  %v12696_v50 = vld [vmem:[%s19426_s3 + $0x40] sm:$0xff] }
 0x679   : > { %14890 = vmatmul.mubr.msk.f32.gmra.mrb[60].mxu0 %vm323_vm2, %v18766_v28 }
 0x67a   : > { %14892 = vmatprep.mubr.msk.f32.mxu0 %vm323_vm2, %v18976_v44 }
 0x67d   : > { %14893 = vmatmul.mubr.msk.f32.gmra.mrb[62].mxu0 %vm323_vm2, %v18980_v21 }
 0x67e   : > { %14897 = vmatprep.mubr.msk.f32.mxu0 %vm323_vm2, %v18529_v9  ;;  %v9945_v9 = vld [vmem:[#allocation3 + $0x227] sm:$0xff] }
 0x681   : > { %14898 = vmatmul.mubr.msk.f32.vlgmr.msra.gmra.mrb[32].mxu0 %vm323_vm2, %v18533_v45  ;;  %v9946_v45 = vld [vmem:[#allocation3 + $0x22f] sm:$0xff] }
 0x682   : > { %14946 = vmatpush3.msra.mxu0 %v12663_v18  ;;  %14900 = vmatprep.mubr.msk.f32.mxu0 %vm323_vm2, %v18537_v42  ;;  %v10302_v42 = vld [vmem:[#allocation3 + $0x48] sm:$0xff]  ;;  %v19875_v18 = vld [vmem:[#allocation24_spill] sm:$0xff] }
 0x683   : > { %14995 = vmatprep.subr.mxu0 %v12696_v50 }
 0x685   : > { %14901 = vmatmul.mubr.msk.f32.gmra.mrb[34].mxu0 %vm323_vm2, %v18541_v15  ;;  %v10303_v15 = vld [vmem:[#allocation3 + $0x50] sm:$0xff] }
 0x686   : > { %14903 = vmatprep.mubr.msk.f32.mxu0 %vm323_vm2, %v18545_v30  ;;  %v11113_v30 = vld [vmem:[%s19427_s4] sm:$0xf] }
 0x689   : > { %14904 = vmatmul.mubr.msk.f32.gmra.mrb[36].mxu0 %vm323_vm2, %v18549_v34  ;;  %v10304_v34 = vld [vmem:[#allocation3 + $0x68] sm:$0xff] }
 0x68a   : > { %14906 = vmatprep.mubr.msk.f32.mxu0 %vm323_vm2, %v18553_v29  ;;  %v10305_v29 = vld [vmem:[#allocation3 + $0x70] sm:$0xff] }
 0x68d   : > { %14907 = vmatmul.mubr.msk.f32.gmra.mrb[38].mxu0 %vm323_vm2, %v18557_v24  ;;  %v10306_v24 = vld [vmem:[#allocation3 + $0x88] sm:$0xff] }
 0x68e   : > { %14909 = vmatprep.mubr.msk.f32.mxu0 %vm323_vm2, %v18561_v2  ;;  %v10307_v2 = vld [vmem:[#allocation3 + $0x90] sm:$0xff] }
 0x691   : > { %14910 = vmatmul.mubr.msk.f32.gmra.mrb[40].mxu0 %vm323_vm2, %v18565_v11  ;;  %v10308_v11 = vld [vmem:[#allocation3 + $0xa8] sm:$0xff] }
 0x692   : > { %14912 = vmatprep.mubr.msk.f32.mxu0 %vm323_vm2, %v18569_v7  ;;  %v10309_v7 = vld [vmem:[#allocation3 + $0xb0] sm:$0xff] }
 0x695   : > { %14913 = vmatmul.mubr.msk.f32.gmra.mrb[42].mxu0 %vm323_vm2, %v18573_v58  ;;  %v10310_v58 = vld [vmem:[#allocation3 + $0xc8] sm:$0xff] }
 0x696   : > { %14915 = vmatprep.mubr.msk.f32.mxu0 %vm323_vm2, %v18577_v60  ;;  %v10311_v60 = vld [vmem:[#allocation3 + $0xd0] sm:$0xff] }
 0x699   : > { %14916 = vmatmul.mubr.msk.f32.gmra.mrb[44].mxu0 %vm323_vm2, %v18581_v14  ;;  %v10312_v14 = vld [vmem:[#allocation3 + $0xe8] sm:$0xff] }
 0x69a   : > { %14918 = vmatprep.mubr.msk.f32.mxu0 %vm323_vm2, %v18585_v23  ;;  %v10313_v23 = vld [vmem:[#allocation3 + $0xf0] sm:$0xff] }
 0x69d   : > { %14919 = vmatmul.mubr.msk.f32.gmra.mrb[46].mxu0 %vm323_vm2, %v18589_v33  ;;  %v10314_v33 = vld [vmem:[#allocation3 + $0x108] sm:$0xff] }
 0x69e   : > { %14921 = vmatprep.mubr.msk.f32.mxu0 %vm323_vm2, %v18593_v38  ;;  %v10315_v38 = vld [vmem:[#allocation3 + $0x110] sm:$0xff] }
 0x6a1   : > { %14922 = vmatmul.mubr.msk.f32.gmra.mrb[48].mxu0 %vm323_vm2, %v18597_v61  ;;  %v19856_v61 = vld [vmem:[#allocation70_spill] sm:$0xff] }
 0x6a2   : > { %14924 = vmatprep.mubr.msk.f32.mxu0 %vm323_vm2, %v18601_v35  ;;  %v19857_v35 = vld [vmem:[#allocation55_spill] sm:$0xff] }
 0x6a5   : > { %14925 = vmatmul.mubr.msk.f32.gmra.mrb[50].mxu0 %vm323_vm2, %v18605_v48  ;;  %v19858_v48 = vld [vmem:[#allocation57_spill] sm:$0xff] }
 0x6a6   : > { %14927 = vmatprep.mubr.msk.f32.mxu0 %vm323_vm2, %v18609_v27  ;;  %v19859_v27 = vld [vmem:[#allocation59_spill] sm:$0xff] }
 0x6a9   : > { %14928 = vmatmul.mubr.msk.f32.gmra.mrb[52].mxu0 %vm323_vm2, %v18613_v1  ;;  %v10719_v1 = vld [vmem:[#allocation3 + $0x229] sm:$0xff] }
 0x6aa   : > { %14930 = vmatprep.mubr.msk.f32.mxu0 %vm323_vm2, %v18617_v49  ;;  %v19860_v49 = vld [vmem:[#allocation9_spill] sm:$0xff] }
 0x6ad   : > { %14931 = vmatmul.mubr.msk.f32.gmra.mrb[54].mxu0 %vm323_vm2, %v18621_v3  ;;  %v19861_v3 = vld [vmem:[#allocation10_spill] sm:$0xff] }
 0x6ae   : > { %14933 = vmatprep.mubr.msk.f32.mxu0 %vm323_vm2, %v18625_v52  ;;  %v19862_v52 = vld [vmem:[#allocation11_spill] sm:$0xff] }
 0x6b1   : > { %14934 = vmatmul.mubr.msk.f32.gmra.mrb[56].mxu0 %vm323_vm2, %v18629_v17  ;;  %v19863_v17 = vld [vmem:[#allocation12_spill] sm:$0xff] }
 0x6b2   : > { %14936 = vmatprep.mubr.msk.f32.mxu0 %vm323_vm2, %v18633_v20  ;;  %v19864_v20 = vld [vmem:[#allocation13_spill] sm:$0xff] }
 0x6b5   : > { %14937 = vmatmul.mubr.msk.f32.gmra.mrb[58].mxu0 %vm323_vm2, %v18637_v41  ;;  %v19865_v41 = vld [vmem:[#allocation14_spill] sm:$0xff] }
 0x6b6   : > { %14939 = vmatprep.mubr.msk.f32.mxu0 %vm323_vm2, %v18834_v53  ;;  %v19869_v53 = vld [vmem:[#allocation18_spill] sm:$0xff] }
 0x6b9   : > { %14940 = vmatmul.mubr.msk.f32.gmra.mrb[60].mxu0 %vm323_vm2, %v18838_v13  ;;  %v19870_v13 = vld [vmem:[#allocation19_spill] sm:$0xff] }
 0x6ba   : > { %14942 = vmatprep.mubr.msk.f32.mxu0 %vm323_vm2, %v9945_v9  ;;  %v19889_v9 = vld [vmem:[#allocation38_spill] sm:$0xff] }
 0x6bd   : > { %14943 = vmatmul.mubr.msk.f32.gmra.mrb[62].mxu0 %vm323_vm2, %v9946_v45  ;;  %v19890_v45 = vld [vmem:[#allocation39_spill] sm:$0xff] }
 0x6be   : > { %14947 = vmatprep.mubr.msk.f32.mxu0 %vm323_vm2, %v10302_v42  ;;  %v19891_v42 = vld [vmem:[#allocation40_spill] sm:$0xff] }
 0x6c1   : > { %14948 = vmatmul.mubr.msk.f32.vlgmr.msra.gmra.mrb[32].mxu0 %vm323_vm2, %v10303_v15  ;;  %v19231_v15 = vld [vmem:[%s19428_s5 + $0x2] ss:$0 sm:$0xff] }
 0x6c2   : > { %14996 = vmatpush3.msra.mxu0 %v12696_v50  ;;  %14950 = vmatprep.mubr.msk.f32.mxu0 %vm323_vm2, %v10304_v34  ;;  %v19867_v50 = vld [vmem:[#allocation16_spill] sm:$0xff]  ;;  %v19236_v34 = vld [vmem:[%s19428_s5 + $0x3] ss:$0 sm:$0xff] }
 0x6c3   : > { %15045 = vmatprep.subr.msk.mxu0 %vm624_vm0, %v11113_v30 }
 0x6c5   : > { %14951 = vmatmul.mubr.msk.f32.gmra.mrb[34].mxu0 %vm323_vm2, %v10305_v29 }
 0x6c6   : > { %14953 = vmatprep.mubr.msk.f32.mxu0 %vm323_vm2, %v10306_v24 }
 0x6c9   : > { %14954 = vmatmul.mubr.msk.f32.gmra.mrb[36].mxu0 %vm323_vm2, %v10307_v2 }
 0x6ca   : > { %14956 = vmatprep.mubr.msk.f32.mxu0 %vm323_vm2, %v10308_v11 }
 0x6cd   : > { %14957 = vmatmul.mubr.msk.f32.gmra.mrb[38].mxu0 %vm323_vm2, %v10309_v7 }
 0x6ce   : > { %14959 = vmatprep.mubr.msk.f32.mxu0 %vm323_vm2, %v10310_v58 }
 0x6d1   : > { %14960 = vmatmul.mubr.msk.f32.gmra.mrb[40].mxu0 %vm323_vm2, %v10311_v60 }
 0x6d2   : > { %14962 = vmatprep.mubr.msk.f32.mxu0 %vm323_vm2, %v10312_v14 }
 0x6d5   : > { %14963 = vmatmul.mubr.msk.f32.gmra.mrb[42].mxu0 %vm323_vm2, %v10313_v23 }
 0x6d6   : > { %14965 = vmatprep.mubr.msk.f32.mxu0 %vm323_vm2, %v10314_v33 }
 0x6d9   : > { %14966 = vmatmul.mubr.msk.f32.gmra.mrb[44].mxu0 %vm323_vm2, %v10315_v38 }
 0x6da   : > { %14968 = vmatprep.mubr.msk.f32.mxu0 %vm323_vm2, %v18437_v43  ;;  %v10332_v43 = vld [vmem:[#allocation3 + $0x228] sm:$0xff] }
 0x6dd   : > { %14969 = vmatmul.mubr.msk.f32.gmra.mrb[46].mxu0 %vm323_vm2, %v18442_v22  ;;  %v10333_v22 = vld [vmem:[#allocation3 + $0x230] sm:$0xff] }
 0x6de   : > { %14971 = vmatprep.mubr.msk.f32.mxu0 %vm323_vm2, %v18449_v6  ;;  %v19846_v6 = vld [vmem:[#allocation44_spill] sm:$0xff] }
 0x6e1   : > { %14972 = vmatmul.mubr.msk.f32.gmra.mrb[48].mxu0 %vm323_vm2, %v18454_v46  ;;  %v19847_v46 = vld [vmem:[#allocation47_spill] sm:$0xff] }
 0x6e2   : > { %14974 = vmatprep.mubr.msk.f32.mxu0 %vm323_vm2, %v18461_v32  ;;  %v19848_v32 = vld [vmem:[#allocation49_spill] sm:$0xff] }
 0x6e5   : > { %14975 = vmatmul.mubr.msk.f32.gmra.mrb[50].mxu0 %vm323_vm2, %v18466_v10  ;;  %v19849_v10 = vld [vmem:[#allocation48_spill] sm:$0xff] }
 0x6e6   : > { %14977 = vmatprep.mubr.msk.f32.mxu0 %vm323_vm2, %v18473_v47  ;;  %v19850_v47 = vld [vmem:[#allocation50_spill] sm:$0xff] }
 0x6e9   : > { %14978 = vmatmul.mubr.msk.f32.gmra.mrb[52].mxu0 %vm323_vm2, %v18478_v19  ;;  %v19851_v19 = vld [vmem:[#allocation51_spill] sm:$0xff] }
 0x6ea   : > { %14980 = vmatprep.mubr.msk.f32.mxu0 %vm323_vm2, %v18485_v31  ;;  %v19852_v31 = vld [vmem:[#allocation62_spill] sm:$0xff] }
 0x6ed   : > { %14981 = vmatmul.mubr.msk.f32.gmra.mrb[54].mxu0 %vm323_vm2, %v18490_v25  ;;  %v19853_v25 = vld [vmem:[#allocation64_spill] sm:$0xff] }
 0x6ee   : > { %14983 = vmatprep.mubr.msk.f32.mxu0 %vm323_vm2, %v18495_v8  ;;  %v19854_v8 = vld [vmem:[#allocation65_spill] sm:$0xff] }
 0x6f1   : > { %14984 = vmatmul.mubr.msk.f32.gmra.mrb[56].mxu0 %vm323_vm2, %v18500_v57  ;;  %v19855_v57 = vld [vmem:[#allocation66_spill] sm:$0xff] }
 0x6f2   : > { %14986 = vmatprep.mubr.msk.f32.mxu0 %vm323_vm2, %v19818_v62  ;;  %v19871_v62 = vld [vmem:[#allocation20_spill] sm:$0xff] }
 0x6f5   : > { %14987 = vmatmul.mubr.msk.f32.gmra.mrb[58].mxu0 %vm323_vm2, %v19819_v5  ;;  %v19872_v5 = vld [vmem:[#allocation21_spill] sm:$0xff] }
 0x6f6   : > { %14989 = vmatprep.mubr.msk.f32.mxu0 %vm323_vm2, %v18905_v59  ;;  %v19873_v59 = vld [vmem:[#allocation22_spill] sm:$0xff] }
 0x6f9   : > { %14990 = vmatmul.mubr.msk.f32.gmra.mrb[60].mxu0 %vm323_vm2, %v18909_v37  ;;  %v19874_v37 = vld [vmem:[#allocation23_spill] sm:$0xff] }
 0x6fa   : > { %14992 = vmatprep.mubr.msk.f32.mxu0 %vm323_vm2, %v10332_v43 }
 0x6fd   : > { %14993 = vmatmul.mubr.msk.f32.gmra.mrb[62].mxu0 %vm323_vm2, %v10333_v22 }
 0x6fe   : > { %14997 = vmatprep.mubr.msk.f32.mxu0 %vm323_vm2, %v19822_v51  ;;  %v19876_v51 = vld [vmem:[#allocation25_spill] sm:$0xff] }
 0x701   : > { %14998 = vmatmul.mubr.msk.f32.vlgmr.msra.gmra.mrb[32].mxu0 %vm323_vm2, %v19823_v26  ;;  %v19877_v26 = vld [vmem:[#allocation26_spill] sm:$0xff] }
 0x702   : > { %15046 = vmatpush3.msk.msra.mxu0 %vm624_vm0, %v11113_v30  ;;  %15000 = vmatprep.mubr.msk.f32.mxu0 %vm323_vm2, %v19824_v12  ;;  %v19878_v12 = vld [vmem:[#allocation27_spill] sm:$0xff] }
 0x705   : > { %15001 = vmatmul.mubr.msk.f32.gmra.mrb[34].mxu0 %vm323_vm2, %v19825_v36  ;;  %v19879_v36 = vld [vmem:[#allocation28_spill] sm:$0xff] }
 0x706   : > { %15003 = vmatprep.mubr.msk.f32.mxu0 %vm323_vm2, %v19826_v56  ;;  %v19880_v56 = vld [vmem:[#allocation29_spill] sm:$0xff] }
 0x709   : > { %15004 = vmatmul.mubr.msk.f32.gmra.mrb[36].mxu0 %vm323_vm2, %v19846_v6 }
 0x70a   : > { %15006 = vmatprep.mubr.msk.f32.mxu0 %vm323_vm2, %v19847_v46 }
 0x70d   : > { %15007 = vmatmul.mubr.msk.f32.gmra.mrb[38].mxu0 %vm323_vm2, %v19848_v32 }
 0x70e   : > { %15009 = vmatprep.mubr.msk.f32.mxu0 %vm323_vm2, %v19849_v10 }
 0x711   : > { %15010 = vmatmul.mubr.msk.f32.gmra.mrb[40].mxu0 %vm323_vm2, %v19850_v47 }
 0x712   : > { %15012 = vmatprep.mubr.msk.f32.mxu0 %vm323_vm2, %v19851_v19 }
 0x715   : > { %15013 = vmatmul.mubr.msk.f32.gmra.mrb[42].mxu0 %vm323_vm2, %v19852_v31 }
 0x716   : > { %15015 = vmatprep.mubr.msk.f32.mxu0 %vm323_vm2, %v19853_v25 }
 0x719   : > { %15016 = vmatmul.mubr.msk.f32.gmra.mrb[44].mxu0 %vm323_vm2, %v19854_v8 }
 0x71a   : > { %15018 = vmatprep.mubr.msk.f32.mxu0 %vm323_vm2, %v19855_v57 }
 0x71d   : > { %15019 = vmatmul.mubr.msk.f32.gmra.mrb[46].mxu0 %vm323_vm2, %v19837_v55  ;;  %v19883_v55 = vld [vmem:[#allocation32_spill] sm:$0xff] }
 0x71e   : > { %15021 = vmatprep.mubr.msk.f32.mxu0 %vm323_vm2, %v19856_v61 }
 0x721   : > { %15022 = vmatmul.mubr.msk.f32.gmra.mrb[48].mxu0 %vm323_vm2, %v19839_v39  ;;  %v19885_v39 = vld [vmem:[#allocation34_spill] sm:$0xff] }
 0x722   : > { %15024 = vmatprep.mubr.msk.f32.mxu0 %vm323_vm2, %v19840_v40  ;;  %v19886_v40 = vld [vmem:[#allocation35_spill] sm:$0xff] }
 0x725   : > { %15025 = vmatmul.mubr.msk.f32.gmra.mrb[50].mxu0 %vm323_vm2, %v19841_v63  ;;  %v19887_v63 = vld [vmem:[#allocation36_spill] sm:$0xff] }
 0x726   : > { %15027 = vmatprep.mubr.msk.f32.mxu0 %vm323_vm2, %v19857_v35 }
 0x729   : > { %15028 = vmatmul.mubr.msk.f32.gmra.mrb[52].mxu0 %vm323_vm2, %v19843_v54  ;;  %v19881_v54 = vld [vmem:[#allocation30_spill] sm:$0xff] }
 0x72a   : > { %15030 = vmatprep.mubr.msk.f32.mxu0 %vm323_vm2, %v19858_v48 }
 0x72d   : > { %15031 = vmatmul.mubr.msk.f32.gmra.mrb[54].mxu0 %vm323_vm2, %v18750_v0  ;;  %v10720_v0 = vld [vmem:[#allocation3 + $0x231] sm:$0xff] }
 0x72e   : > { %15033 = vmatprep.mubr.msk.f32.mxu0 %vm323_vm2, %v19845_v16  ;;  %v19884_v16 = vld [vmem:[#allocation33_spill] sm:$0xff] }
 0x731   : > { %15034 = vmatmul.mubr.msk.f32.gmra.mrb[56].mxu0 %vm323_vm2, %v18758_v4  ;;  %v19866_v4 = vld [vmem:[#allocation15_spill] sm:$0xff] }
 0x732   : > { %15036 = vmatprep.mubr.msk.f32.mxu0 %vm323_vm2, %v19859_v27 }
 0x735   : > { %15037 = vmatmul.mubr.msk.f32.gmra.mrb[58].mxu0 %vm323_vm2, %v18766_v28  ;;  %v19868_v28 = vld [vmem:[#allocation17_spill] sm:$0xff] }
 0x736   : > { %15039 = vmatprep.mubr.msk.f32.mxu0 %vm323_vm2, %v18976_v44  ;;  %v19888_v44 = vld [vmem:[#allocation37_spill] sm:$0xff] }
 0x739   : > { %15040 = vmatmul.mubr.msk.f32.gmra.mrb[60].mxu0 %vm323_vm2, %v18980_v21  ;;  %v19882_v21 = vld [vmem:[#allocation31_spill] sm:$0xff] }
 0x73a   : > { %15042 = vmatprep.mubr.msk.f32.mxu0 %vm323_vm2, %v10719_v1 }
 0x73d   : > { %15043 = vmatmul.mubr.msk.f32.gmra.mrb[62].mxu0 %vm323_vm2, %v10720_v0 }
 0x73e   : > { %15047 = vmatprep.mubr.msk.f32.mxu0 %vm250_vm1, %v19860_v49 }
 0x741   : > { %15048 = vmatmul.mubr.msk.f32.vlgmr.msra.gmra.mrb[32].mxu0 %vm250_vm1, %v19861_v3 }
 0x742   : > { %15050 = vmatprep.mubr.msk.f32.mxu0 %vm250_vm1, %v19862_v52 }
 0x745   : > { %15051 = vmatmul.mubr.msk.f32.gmra.mrb[34].mxu0 %vm250_vm1, %v19863_v17 }
 0x746   : > { %15053 = vmatprep.mubr.msk.f32.mxu0 %vm250_vm1, %v19864_v20 }
 0x749   : > { %15054 = vmatmul.mubr.msk.f32.gmra.mrb[36].mxu0 %vm250_vm1, %v19865_v41 }
 0x74a   : > { %15056 = vmatprep.mubr.msk.f32.mxu0 %vm250_vm1, %v19866_v4 }
 0x74d   : > { %15057 = vmatmul.mubr.msk.f32.gmra.mrb[38].mxu0 %vm250_vm1, %v19867_v50 }
 0x74e   : > { %15059 = vmatprep.mubr.msk.f32.mxu0 %vm250_vm1, %v19868_v28 }
 0x751   : > { %15060 = vmatmul.mubr.msk.f32.gmra.mrb[40].mxu0 %vm250_vm1, %v19869_v53 }
 0x752   : > { %15062 = vmatprep.mubr.msk.f32.mxu0 %vm250_vm1, %v19870_v13 }
 0x755   : > { %15063 = vmatmul.mubr.msk.f32.gmra.mrb[42].mxu0 %vm250_vm1, %v19871_v62 }
 0x756   : > { %15065 = vmatprep.mubr.msk.f32.mxu0 %vm250_vm1, %v19872_v5 }
 0x759   : > { %15066 = vmatmul.mubr.msk.f32.gmra.mrb[44].mxu0 %vm250_vm1, %v19873_v59 }
 0x75a   : > { %15068 = vmatprep.mubr.msk.f32.mxu0 %vm250_vm1, %v19874_v37 }
 0x75d   : > { %15069 = vmatmul.mubr.msk.f32.gmra.mrb[46].mxu0 %vm250_vm1, %v19875_v18 }
 0x75e   : > { %15071 = vmatprep.mubr.msk.f32.mxu0 %vm250_vm1, %v19876_v51 }
 0x761   : > { %15072 = vmatmul.mubr.msk.f32.gmra.mrb[48].mxu0 %vm250_vm1, %v19877_v26 }
 0x762   : > { %15074 = vmatprep.mubr.msk.f32.mxu0 %vm250_vm1, %v19878_v12 }
 0x765   : > { %15075 = vmatmul.mubr.msk.f32.gmra.mrb[50].mxu0 %vm250_vm1, %v19879_v36 }
 0x766   : > { %15077 = vmatprep.mubr.msk.f32.mxu0 %vm250_vm1, %v19880_v56 }
 0x769   : > { %15078 = vmatmul.mubr.msk.f32.gmra.mrb[52].mxu0 %vm250_vm1, %v19881_v54 }
 0x76a   : > { %15080 = vmatprep.mubr.msk.f32.mxu0 %vm250_vm1, %v19882_v21 }
 0x76d   : > { %15081 = vmatmul.mubr.msk.f32.gmra.mrb[54].mxu0 %vm250_vm1, %v19883_v55 }
 0x76e   : > { %15083 = vmatprep.mubr.msk.f32.mxu0 %vm250_vm1, %v19884_v16 }
 0x771   : > { %15084 = vmatmul.mubr.msk.f32.gmra.mrb[56].mxu0 %vm250_vm1, %v19885_v39 }
 0x772   : > { %15086 = vmatprep.mubr.msk.f32.mxu0 %vm250_vm1, %v19886_v40 }
 0x775   : > { %15087 = vmatmul.mubr.msk.f32.gmra.mrb[58].mxu0 %vm250_vm1, %v19887_v63 }
 0x776   : > { %15089 = vmatprep.mubr.msk.f32.mxu0 %vm250_vm1, %v19888_v44 }
 0x779   : > { %15090 = vmatmul.mubr.msk.f32.gmra.mrb[60].mxu0 %vm250_vm1, %v19889_v9 }
 0x77a   : > { %15092 = vmatprep.mubr.msk.f32.mxu0 %vm250_vm1, %v19890_v45 }
 0x77d   : > { %15093 = vmatmul.mubr.msk.f32.gmra.mrb[62].mxu0 %vm250_vm1, %v19891_v42 }
 0x814   : > { %v15049_v30 = vpop.f32.mrb[32].mxu0 }
 0x815   : > { %v15127_v29 = vadd.f32 %v15049_v30, %v19231_v15  ;;  %v11279_v24 = vpop.f32.mrb[33].mxu0 }
 0x816   : > { %v15128_v2 = vadd.f32 %v19231_v15, %v11279_v24 }
 0x817   : > { %v11476_v11 = vadd.f32 %v15127_v29, %v19236_v34 }
 0x818   : > { %v11475_v7 = vadd.f32 %v15128_v2, %v19236_v34  ;;  %v15052_v58 = vpop.f32.mrb[34].mxu0 }
 0x819   : > { %vm11508_vm0 = vcmp.ge.f32.partialorder %v11476_v11, 0.0  ;;  %v11540_v60 = vmul.f32 0.1, %v11476_v11  ;;  %v15129_v14 = vadd.f32 %v15052_v58, %v19231_v15  ;;  %v11289_v23 = vpop.f32.mrb[35].mxu0 }
 0x81a   : > { %vm11507_vm1 = vcmp.ge.f32.partialorder %v11475_v7, 0.0  ;;  %v11539_v33 = vmul.f32 0.1, %v11475_v7  ;;  %v15130_v38 = vadd.f32 %v19231_v15, %v11289_v23 }
 0x81b   : > { %v11572_v43 = vsel %vm11508_vm0, %v11476_v11, %v11540_v60  ;;  %v11478_v22 = vadd.f32 %v15129_v14, %v19236_v34 }
 0x81c   : > { %11604 = vst.msk [vmem:[#allocation4 + $0x8] sm:$0xff] %vm323_vm2, %v11572_v43  ;;  %v11571_v6 = vsel %vm11507_vm1, %v11475_v7, %v11539_v33  ;;  %v11477_v46 = vadd.f32 %v15130_v38, %v19236_v34  ;;  %v15055_v32 = vpop.f32.mrb[36].mxu0 }
 0x81d   : > { %11603 = vst.msk [vmem:[#allocation4] sm:$0xff] %vm323_vm2, %v11571_v6  ;;  %vm11510_vm15 = vcmp.ge.f32.partialorder %v11478_v22, 0.0  ;;  %v11542_v10 = vmul.f32 0.1, %v11478_v22  ;;  %v15131_v47 = vadd.f32 %v15055_v32, %v19231_v15  ;;  %v11299_v19 = vpop.f32.mrb[37].mxu0 }
 0x81e   : > { %vm11509_vm3 = vcmp.ge.f32.partialorder %v11477_v46, 0.0  ;;  %v11541_v31 = vmul.f32 0.1, %v11477_v46  ;;  %v15132_v25 = vadd.f32 %v19231_v15, %v11299_v19 }
 0x81f   : > { %v11574_v8 = vsel %vm11510_vm15, %v11478_v22, %v11542_v10  ;;  %v11480_v57 = vadd.f32 %v15131_v47, %v19236_v34 }
 0x820   : > { %11606 = vst.msk [vmem:[#allocation4 + $0x18] sm:$0xff] %vm323_vm2, %v11574_v8  ;;  %v11573_v61 = vsel %vm11509_vm3, %v11477_v46, %v11541_v31  ;;  %v11479_v35 = vadd.f32 %v15132_v25, %v19236_v34  ;;  %v15058_v48 = vpop.f32.mrb[38].mxu0 }
 0x821   : > { %11605 = vst.msk [vmem:[#allocation4 + $0x10] sm:$0xff] %vm323_vm2, %v11573_v61  ;;  %vm11512_vm4 = vcmp.ge.f32.partialorder %v11480_v57, 0.0  ;;  %v11544_v27 = vmul.f32 0.1, %v11480_v57  ;;  %v15133_v1 = vadd.f32 %v15058_v48, %v19231_v15  ;;  %v11309_v0 = vpop.f32.mrb[39].mxu0 }
 0x822   : > { %vm11511_vm5 = vcmp.ge.f32.partialorder %v11479_v35, 0.0  ;;  %v11543_v49 = vmul.f32 0.1, %v11479_v35  ;;  %v15134_v3 = vadd.f32 %v19231_v15, %v11309_v0 }
 0x823   : > { %v11576_v52 = vsel %vm11512_vm4, %v11480_v57, %v11544_v27  ;;  %v11482_v17 = vadd.f32 %v15133_v1, %v19236_v34  ;;  %v11636_v5 = vld [vmem:[#allocation4 + $0x8] sm:$0xff] }
 0x824   : > { %11608 = vst.msk [vmem:[#allocation4 + $0x28] sm:$0xff] %vm323_vm2, %v11576_v52  ;;  %v11575_v20 = vsel %vm11511_vm5, %v11479_v35, %v11543_v49  ;;  %v11481_v41 = vadd.f32 %v15134_v3, %v19236_v34  ;;  %v15061_v4 = vpop.f32.mrb[40].mxu0  ;;  %v11635_v51 = vld [vmem:[#allocation4] sm:$0xff] }
 0x825   : > { %11607 = vst.msk [vmem:[#allocation4 + $0x20] sm:$0xff] %vm323_vm2, %v11575_v20  ;;  %vm11514_vm6 = vcmp.ge.f32.partialorder %v11482_v17, 0.0  ;;  %v11546_v50 = vmul.f32 0.1, %v11482_v17  ;;  %v15135_v28 = vadd.f32 %v15061_v4, %v19231_v15  ;;  %v11319_v53 = vpop.f32.mrb[41].mxu0 }
 0x826   : > { %vm11513_vm7 = vcmp.ge.f32.partialorder %v11481_v41, 0.0  ;;  %v11545_v13 = vmul.f32 0.1, %v11481_v41  ;;  %v15136_v62 = vadd.f32 %v19231_v15, %v11319_v53 }
 0x827   : > { %v11653_v59 = vld [vmem:[#allocation4 + $0x18] sm:$0xff]  ;;  %v11578_v37 = vsel %vm11514_vm6, %v11482_v17, %v11546_v50  ;;  %v11484_v18 = vadd.f32 %v15135_v28, %v19236_v34 }
 0x828   : > { %v11669_v26 = vmax.f32 %v11636_v5, %v11653_v59  ;;  %v11652_v12 = vld [vmem:[#allocation4 + $0x10] sm:$0xff]  ;;  %11610 = vst.msk [vmem:[#allocation4 + $0x38] sm:$0xff] %vm323_vm2, %v11578_v37  ;;  %v11577_v36 = vsel %vm11513_vm7, %v11481_v41, %v11545_v13  ;;  %v11483_v56 = vadd.f32 %v15136_v62, %v19236_v34  ;;  %v15064_v54 = vpop.f32.mrb[42].mxu0 }
 0x829   : > { %v11668_v21 = vmax.f32 %v11635_v51, %v11652_v12  ;;  %11609 = vst.msk [vmem:[#allocation4 + $0x30] sm:$0xff] %vm323_vm2, %v11577_v36  ;;  %vm11516_vm8 = vcmp.ge.f32.partialorder %v11484_v18, 0.0  ;;  %v11548_v55 = vmul.f32 0.1, %v11484_v18  ;;  %v15137_v16 = vadd.f32 %v15064_v54, %v19231_v15  ;;  %v11329_v39 = vpop.f32.mrb[43].mxu0 }
 0x82a   : > { %11685 = vst.msk [vmem:[#allocation5 + $0x8] sm:$0xff] %vm323_vm2, %v11669_v26  ;;  %vm11515_vm9 = vcmp.ge.f32.partialorder %v11483_v56, 0.0  ;;  %v11547_v40 = vmul.f32 0.1, %v11483_v56  ;;  %v15138_v63 = vadd.f32 %v19231_v15, %v11329_v39 }
 0x82b   : > { %11684 = vst.msk [vmem:[#allocation5] sm:$0xff] %vm323_vm2, %v11668_v21  ;;  %v11580_v44 = vsel %vm11516_vm8, %v11484_v18, %v11548_v55  ;;  %v11486_v9 = vadd.f32 %v15137_v16, %v19236_v34  ;;  %v11638_v58 = vld [vmem:[#allocation4 + $0x28] sm:$0xff] }
 0x82c   : > { %11612 = vst.msk [vmem:[#allocation4 + $0x48] sm:$0xff] %vm323_vm2, %v11580_v44  ;;  %v11579_v45 = vsel %vm11515_vm9, %v11483_v56, %v11547_v40  ;;  %v11485_v42 = vadd.f32 %v15138_v63, %v19236_v34  ;;  %v15067_v30 = vpop.f32.mrb[44].mxu0  ;;  %v11637_v33 = vld [vmem:[#allocation4 + $0x20] sm:$0xff] }
 0x82d   : > { %11611 = vst.msk [vmem:[#allocation4 + $0x40] sm:$0xff] %vm323_vm2, %v11579_v45  ;;  %vm11518_vm10 = vcmp.ge.f32.partialorder %v11486_v9, 0.0  ;;  %v11550_v29 = vmul.f32 0.1, %v11486_v9  ;;  %v15139_v24 = vadd.f32 %v15067_v30, %v19231_v15  ;;  %v11339_v2 = vpop.f32.mrb[45].mxu0 }
 0x82e   : > { %vm11517_vm11 = vcmp.ge.f32.partialorder %v11485_v42, 0.0  ;;  %v11549_v11 = vmul.f32 0.1, %v11485_v42  ;;  %v15140_v7 = vadd.f32 %v19231_v15, %v11339_v2 }
 0x82f   : > { %v11655_v60 = vld [vmem:[#allocation4 + $0x38] sm:$0xff]  ;;  %v11582_v14 = vsel %vm11518_vm10, %v11486_v9, %v11550_v29  ;;  %v11488_v23 = vadd.f32 %v15139_v24, %v19236_v34 }
 0x830   : > { %v11671_v38 = vmax.f32 %v11638_v58, %v11655_v60  ;;  %v11654_v43 = vld [vmem:[#allocation4 + $0x30] sm:$0xff]  ;;  %11614 = vst.msk [vmem:[#allocation4 + $0x58] sm:$0xff] %vm323_vm2, %v11582_v14  ;;  %v11581_v22 = vsel %vm11517_vm11, %v11485_v42, %v11549_v11  ;;  %v11487_v6 = vadd.f32 %v15140_v7, %v19236_v34  ;;  %v15070_v46 = vpop.f32.mrb[46].mxu0 }
 0x831   : > { %v11670_v32 = vmax.f32 %v11637_v33, %v11654_v43  ;;  %11613 = vst.msk [vmem:[#allocation4 + $0x50] sm:$0xff] %vm323_vm2, %v11581_v22  ;;  %vm11520_vm12 = vcmp.ge.f32.partialorder %v11488_v23, 0.0  ;;  %v11552_v10 = vmul.f32 0.1, %v11488_v23  ;;  %v15141_v47 = vadd.f32 %v15070_v46, %v19231_v15  ;;  %v11349_v19 = vpop.f32.mrb[47].mxu0 }
 0x832   : > { %11687 = vst.msk [vmem:[#allocation5 + $0x18] sm:$0xff] %vm323_vm2, %v11671_v38  ;;  %vm11519_vm13 = vcmp.ge.f32.partialorder %v11487_v6, 0.0  ;;  %v11551_v31 = vmul.f32 0.1, %v11487_v6  ;;  %v15142_v25 = vadd.f32 %v19231_v15, %v11349_v19  ;;  %v11700_v8 = vld [vmem:[#allocation5] ss:$2 sm:$0xff] }
 0x833   : > { %11686 = vst.msk [vmem:[#allocation5 + $0x10] sm:$0xff] %vm323_vm2, %v11670_v32  ;;  %v11584_v57 = vsel %vm11520_vm12, %v11488_v23, %v11552_v10  ;;  %v11490_v61 = vadd.f32 %v15141_v47, %v19236_v34  ;;  %v11716_v35 = vld [vmem:[#allocation5 + $0x1] ss:$2 sm:$0xff] }
 0x834   : > { %11616 = vst.msk [vmem:[#allocation4 + $0x68] sm:$0xff] %vm323_vm2, %v11584_v57  ;;  %v11583_v48 = vsel %vm11519_vm13, %v11487_v6, %v11551_v31  ;;  %v11489_v27 = vadd.f32 %v15142_v25, %v19236_v34  ;;  %v15073_v1 = vpop.f32.mrb[48].mxu0  ;;  %v11731_v0 = vmax.f32 %v11700_v8, %v11716_v35  ;;  %v11640_v41 = vld [vmem:[#allocation4 + $0x48] sm:$0xff]  ;;  %v11639_v53 = vld [vmem:[#allocation4 + $0x40] sm:$0xff] }
 0x835   : > { %11615 = vst.msk [vmem:[#allocation4 + $0x60] sm:$0xff] %vm323_vm2, %v11583_v48  ;;  %vm11522_vm14 = vcmp.ge.f32.partialorder %v11490_v61, 0.0  ;;  %v11554_v49 = vmul.f32 0.1, %v11490_v61  ;;  %v15143_v3 = vadd.f32 %v15073_v1, %v19231_v15  ;;  %v11359_v52 = vpop.f32.mrb[49].mxu0 }
 0x836   : > { %vm11521_vm0 = vcmp.ge.f32.partialorder %v11489_v27, 0.0  ;;  %v11553_v17 = vmul.f32 0.1, %v11489_v27  ;;  %v15144_v20 = vadd.f32 %v19231_v15, %v11359_v52  ;;  %11739 = vst.msk [vmem:[%s19293_s20] sm:$0xff] %vm323_vm2, %v11731_v0 }
 0x837   : > { %v11657_v4 = vld [vmem:[#allocation4 + $0x58] sm:$0xff]  ;;  %v11586_v50 = vsel %vm11522_vm14, %v11490_v61, %v11554_v49  ;;  %v11492_v28 = vadd.f32 %v15143_v3, %v19236_v34 }
 0x838   : > { %v11673_v13 = vmax.f32 %v11640_v41, %v11657_v4  ;;  %v11656_v62 = vld [vmem:[#allocation4 + $0x50] sm:$0xff]  ;;  %11618 = vst.msk [vmem:[#allocation4 + $0x78] sm:$0xff] %vm323_vm2, %v11586_v50  ;;  %v11585_v5 = vsel %vm11521_vm0, %v11489_v27, %v11553_v17  ;;  %v11491_v59 = vadd.f32 %v15144_v20, %v19236_v34  ;;  %v15076_v37 = vpop.f32.mrb[50].mxu0 }
 0x839   : > { %v11672_v18 = vmax.f32 %v11639_v53, %v11656_v62  ;;  %11617 = vst.msk [vmem:[#allocation4 + $0x70] sm:$0xff] %vm323_vm2, %v11585_v5  ;;  %vm11524_vm1 = vcmp.ge.f32.partialorder %v11492_v28, 0.0  ;;  %v11556_v51 = vmul.f32 0.1, %v11492_v28  ;;  %v15145_v26 = vadd.f32 %v15076_v37, %v19231_v15  ;;  %v11369_v12 = vpop.f32.mrb[51].mxu0 }
 0x83a   : > { %11689 = vst.msk [vmem:[#allocation5 + $0x28] sm:$0xff] %vm323_vm2, %v11673_v13  ;;  %vm11523_vm15 = vcmp.ge.f32.partialorder %v11491_v59, 0.0  ;;  %v11555_v36 = vmul.f32 0.1, %v11491_v59  ;;  %v15146_v56 = vadd.f32 %v19231_v15, %v11369_v12  ;;  %v11702_v54 = vld [vmem:[#allocation5 + $0x10] ss:$2 sm:$0xff] }
 0x83b   : > { %11688 = vst.msk [vmem:[#allocation5 + $0x20] sm:$0xff] %vm323_vm2, %v11672_v18  ;;  %v11588_v21 = vsel %vm11524_vm1, %v11492_v28, %v11556_v51  ;;  %v11494_v55 = vadd.f32 %v15145_v26, %v19236_v34  ;;  %v11718_v16 = vld [vmem:[#allocation5 + $0x11] ss:$2 sm:$0xff]  ;;  %v11642_v24 = vld [vmem:[#allocation4 + $0x68] sm:$0xff] }
 0x83c   : > { %11620 = vst.msk [vmem:[#allocation4 + $0x88] sm:$0xff] %vm323_vm2, %v11588_v21  ;;  %v11587_v39 = vsel %vm11523_vm15, %v11491_v59, %v11555_v36  ;;  %v11493_v40 = vadd.f32 %v15146_v56, %v19236_v34  ;;  %v15079_v63 = vpop.f32.mrb[52].mxu0  ;;  %v11732_v44 = vmax.f32 %v11702_v54, %v11718_v16  ;;  %v11641_v58 = vld [vmem:[#allocation4 + $0x60] sm:$0xff] }
 0x83d   : > { %11619 = vst.msk [vmem:[#allocation4 + $0x80] sm:$0xff] %vm323_vm2, %v11587_v39  ;;  %vm11526_vm3 = vcmp.ge.f32.partialorder %v11494_v55, 0.0  ;;  %v11558_v9 = vmul.f32 0.1, %v11494_v55  ;;  %v15147_v45 = vadd.f32 %v15079_v63, %v19231_v15  ;;  %v11379_v42 = vpop.f32.mrb[53].mxu0 }
 0x83e   : > { %vm11525_vm4 = vcmp.ge.f32.partialorder %v11493_v40, 0.0  ;;  %v11557_v30 = vmul.f32 0.1, %v11493_v40  ;;  %v15148_v29 = vadd.f32 %v19231_v15, %v11379_v42  ;;  %11740 = vst.msk [vmem:[%s19293_s20 + $0x8] sm:$0xff] %vm323_vm2, %v11732_v44 }
 0x83f   : > { %v11659_v2 = vld [vmem:[#allocation4 + $0x78] sm:$0xff]  ;;  %v11590_v11 = vsel %vm11526_vm3, %v11494_v55, %v11558_v9  ;;  %v11496_v7 = vadd.f32 %v15147_v45, %v19236_v34 }
 0x840   : > { %v11675_v60 = vmax.f32 %v11642_v24, %v11659_v2  ;;  %v11658_v14 = vld [vmem:[#allocation4 + $0x70] sm:$0xff]  ;;  %11622 = vst.msk [vmem:[#allocation4 + $0x98] sm:$0xff] %vm323_vm2, %v11590_v11  ;;  %v11589_v23 = vsel %vm11525_vm4, %v11493_v40, %v11557_v30  ;;  %v11495_v33 = vadd.f32 %v15148_v29, %v19236_v34  ;;  %v15082_v38 = vpop.f32.mrb[54].mxu0 }
 0x841   : > { %v11674_v43 = vmax.f32 %v11641_v58, %v11658_v14  ;;  %11621 = vst.msk [vmem:[#allocation4 + $0x90] sm:$0xff] %vm323_vm2, %v11589_v23  ;;  %vm11528_vm5 = vcmp.ge.f32.partialorder %v11496_v7, 0.0  ;;  %v11560_v22 = vmul.f32 0.1, %v11496_v7  ;;  %v15149_v6 = vadd.f32 %v15082_v38, %v19231_v15  ;;  %v11389_v46 = vpop.f32.mrb[55].mxu0 }
 0x842   : > { %11691 = vst.msk [vmem:[#allocation5 + $0x38] sm:$0xff] %vm323_vm2, %v11675_v60  ;;  %vm11527_vm6 = vcmp.ge.f32.partialorder %v11495_v33, 0.0  ;;  %v11559_v32 = vmul.f32 0.1, %v11495_v33  ;;  %v15150_v10 = vadd.f32 %v19231_v15, %v11389_v46  ;;  %v11704_v47 = vld [vmem:[#allocation5 + $0x20] ss:$2 sm:$0xff] }
 0x843   : > { %11690 = vst.msk [vmem:[#allocation5 + $0x30] sm:$0xff] %vm323_vm2, %v11674_v43  ;;  %v11592_v19 = vsel %vm11528_vm5, %v11496_v7, %v11560_v22  ;;  %v11498_v31 = vadd.f32 %v15149_v6, %v19236_v34  ;;  %v11720_v25 = vld [vmem:[#allocation5 + $0x21] ss:$2 sm:$0xff] }
 0x844   : > { %11624 = vst.msk [vmem:[#allocation4 + $0xa8] sm:$0xff] %vm323_vm2, %v11592_v19  ;;  %v11591_v8 = vsel %vm11527_vm6, %v11495_v33, %v11559_v32  ;;  %v11497_v57 = vadd.f32 %v15150_v10, %v19236_v34  ;;  %v15085_v61 = vpop.f32.mrb[56].mxu0  ;;  %v11733_v35 = vmax.f32 %v11704_v47, %v11720_v25  ;;  %v11644_v3 = vld [vmem:[#allocation4 + $0x88] sm:$0xff]  ;;  %v11643_v41 = vld [vmem:[#allocation4 + $0x80] sm:$0xff] }
 0x845   : > { %11623 = vst.msk [vmem:[#allocation4 + $0xa0] sm:$0xff] %vm323_vm2, %v11591_v8  ;;  %vm11530_vm7 = vcmp.ge.f32.partialorder %v11498_v31, 0.0  ;;  %v11562_v48 = vmul.f32 0.1, %v11498_v31  ;;  %v15151_v27 = vadd.f32 %v15085_v61, %v19231_v15  ;;  %v11399_v1 = vpop.f32.mrb[57].mxu0 }
 0x846   : > { %vm11529_vm8 = vcmp.ge.f32.partialorder %v11497_v57, 0.0  ;;  %v11561_v0 = vmul.f32 0.1, %v11497_v57  ;;  %v15152_v49 = vadd.f32 %v19231_v15, %v11399_v1  ;;  %11741 = vst.msk [vmem:[%s19293_s20 + $0x10] sm:$0xff] %vm323_vm2, %v11733_v35 }
 0x847   : > { %v11661_v52 = vld [vmem:[#allocation4 + $0x98] sm:$0xff]  ;;  %v11594_v17 = vsel %vm11530_vm7, %v11498_v31, %v11562_v48  ;;  %v11500_v20 = vadd.f32 %v15151_v27, %v19236_v34 }
 0x848   : > { %v11677_v4 = vmax.f32 %v11644_v3, %v11661_v52  ;;  %v11660_v50 = vld [vmem:[#allocation4 + $0x90] sm:$0xff]  ;;  %11626 = vst.msk [vmem:[#allocation4 + $0xb8] sm:$0xff] %vm323_vm2, %v11594_v17  ;;  %v11593_v28 = vsel %vm11529_vm8, %v11497_v57, %v11561_v0  ;;  %v11499_v53 = vadd.f32 %v15152_v49, %v19236_v34  ;;  %v15088_v13 = vpop.f32.mrb[58].mxu0 }
 0x849   : > { %v11676_v62 = vmax.f32 %v11643_v41, %v11660_v50  ;;  %11625 = vst.msk [vmem:[#allocation4 + $0xb0] sm:$0xff] %vm323_vm2, %v11593_v28  ;;  %vm11532_vm9 = vcmp.ge.f32.partialorder %v11500_v20, 0.0  ;;  %v11564_v5 = vmul.f32 0.1, %v11500_v20  ;;  %v15153_v59 = vadd.f32 %v15088_v13, %v19231_v15  ;;  %v11409_v37 = vpop.f32.mrb[59].mxu0 }
 0x84a   : > { %11693 = vst.msk [vmem:[#allocation5 + $0x48] sm:$0xff] %vm323_vm2, %v11677_v4  ;;  %vm11531_vm10 = vcmp.ge.f32.partialorder %v11499_v53, 0.0  ;;  %v11563_v18 = vmul.f32 0.1, %v11499_v53  ;;  %v15154_v51 = vadd.f32 %v19231_v15, %v11409_v37  ;;  %v11706_v26 = vld [vmem:[#allocation5 + $0x30] ss:$2 sm:$0xff] }
 0x84b   : > { %11692 = vst.msk [vmem:[#allocation5 + $0x40] sm:$0xff] %vm323_vm2, %v11676_v62  ;;  %v11596_v12 = vsel %vm11532_vm9, %v11500_v20, %v11564_v5  ;;  %v11502_v36 = vadd.f32 %v15153_v59, %v19236_v34  ;;  %v11722_v56 = vld [vmem:[#allocation5 + $0x31] ss:$2 sm:$0xff]  ;;  %v11646_v45 = vld [vmem:[#allocation4 + $0xa8] sm:$0xff] }
 0x84c   : > { %11628 = vst.msk [vmem:[#allocation4 + $0xc8] sm:$0xff] %vm323_vm2, %v11596_v12  ;;  %v11595_v54 = vsel %vm11531_vm10, %v11499_v53, %v11563_v18  ;;  %v11501_v21 = vadd.f32 %v15154_v51, %v19236_v34  ;;  %v15091_v55 = vpop.f32.mrb[60].mxu0  ;;  %v11734_v16 = vmax.f32 %v11706_v26, %v11722_v56  ;;  %v11645_v24 = vld [vmem:[#allocation4 + $0xa0] sm:$0xff] }
 0x84d   : > { %11627 = vst.msk [vmem:[#allocation4 + $0xc0] sm:$0xff] %vm323_vm2, %v11595_v54  ;;  %vm11534_vm11 = vcmp.ge.f32.partialorder %v11502_v36, 0.0  ;;  %v11566_v39 = vmul.f32 0.1, %v11502_v36  ;;  %v15155_v40 = vadd.f32 %v15091_v55, %v19231_v15  ;;  %v11419_v63 = vpop.f32.mrb[61].mxu0 }
 0x84e   : > { %vm11533_vm12 = vcmp.ge.f32.partialorder %v11501_v21, 0.0  ;;  %v11565_v44 = vmul.f32 0.1, %v11501_v21  ;;  %v15156_v9 = vadd.f32 %v19231_v15, %v11419_v63  ;;  %11742 = vst.msk [vmem:[%s19293_s20 + $0x18] sm:$0xff] %vm323_vm2, %v11734_v16 }
 0x84f   : > { %v11663_v42 = vld [vmem:[#allocation4 + $0xb8] sm:$0xff]  ;;  %v11598_v30 = vsel %vm11534_vm11, %v11502_v36, %v11566_v39  ;;  %v11504_v29 = vadd.f32 %v15155_v40, %v19236_v34 }
 0x850   : > { %v11679_v2 = vmax.f32 %v11646_v45, %v11663_v42  ;;  %v11662_v11 = vld [vmem:[#allocation4 + $0xb0] sm:$0xff]  ;;  %11630 = vst.msk [vmem:[#allocation4 + $0xd8] sm:$0xff] %vm323_vm2, %v11598_v30  ;;  %v11597_v7 = vsel %vm11533_vm12, %v11501_v21, %v11565_v44  ;;  %v11503_v58 = vadd.f32 %v15156_v9, %v19236_v34  ;;  %v15094_v60 = vpop.f32.mrb[62].mxu0 }
 0x851   : > { %v11678_v14 = vmax.f32 %v11645_v24, %v11662_v11  ;;  %11629 = vst.msk [vmem:[#allocation4 + $0xd0] sm:$0xff] %vm323_vm2, %v11597_v7  ;;  %vm11536_vm13 = vcmp.ge.f32.partialorder %v11504_v29, 0.0  ;;  %v11568_v23 = vmul.f32 0.1, %v11504_v29  ;;  %v15157_v33 = vadd.f32 %v15094_v60, %v19231_v15  ;;  %v11429_v38 = vpop.f32.mrb[63].mxu0 }
 0x852   : > { %11695 = vst.msk [vmem:[#allocation5 + $0x58] sm:$0xff] %vm323_vm2, %v11679_v2  ;;  %vm11535_vm14 = vcmp.ge.f32.partialorder %v11503_v58, 0.0  ;;  %v11567_v43 = vmul.f32 0.1, %v11503_v58  ;;  %v15158_v22 = vadd.f32 %v19231_v15, %v11429_v38  ;;  %v11708_v6 = vld [vmem:[#allocation5 + $0x40] ss:$2 sm:$0xff] }
 0x853   : > { %11694 = vst.msk [vmem:[#allocation5 + $0x50] sm:$0xff] %vm323_vm2, %v11678_v14  ;;  %v11600_v46 = vsel %vm11536_vm13, %v11504_v29, %v11568_v23  ;;  %v11506_v32 = vadd.f32 %v15157_v33, %v19236_v34  ;;  %v11724_v10 = vld [vmem:[#allocation5 + $0x41] ss:$2 sm:$0xff] }
 0x854   : > { %11632 = vst.msk [vmem:[#allocation4 + $0xe8] sm:$0xff] %vm323_vm2, %v11600_v46  ;;  %v11599_v47 = vsel %vm11535_vm14, %v11503_v58, %v11567_v43  ;;  %v11505_v19 = vadd.f32 %v15158_v22, %v19236_v34  ;;  %v11735_v31 = vmax.f32 %v11708_v6, %v11724_v10  ;;  %v11648_v15 = vld [vmem:[#allocation4 + $0xc8] sm:$0xff]  ;;  %v11647_v35 = vld [vmem:[#allocation4 + $0xc0] sm:$0xff] }
 0x855   : > { %11631 = vst.msk [vmem:[#allocation4 + $0xe0] sm:$0xff] %vm323_vm2, %v11599_v47  ;;  %vm11538_vm0 = vcmp.ge.f32.partialorder %v11506_v32, 0.0  ;;  %v11570_v25 = vmul.f32 0.1, %v11506_v32 }
 0x856   : > { %vm11537_vm1 = vcmp.ge.f32.partialorder %v11505_v19, 0.0  ;;  %v11569_v8 = vmul.f32 0.1, %v11505_v19  ;;  %11743 = vst.msk [vmem:[%s19293_s20 + $0x20] sm:$0xff] %vm323_vm2, %v11735_v31 }
 0x857   : > { %v11665_v57 = vld [vmem:[#allocation4 + $0xd8] sm:$0xff]  ;;  %v11602_v61 = vsel %vm11538_vm0, %v11506_v32, %v11570_v25 }
 0x858   : > { %v11681_v48 = vmax.f32 %v11648_v15, %v11665_v57  ;;  %v11664_v27 = vld [vmem:[#allocation4 + $0xd0] sm:$0xff]  ;;  %11634 = vst.msk [vmem:[#allocation4 + $0xf8] sm:$0xff] %vm323_vm2, %v11602_v61  ;;  %v11601_v1 = vsel %vm11537_vm1, %v11505_v19, %v11569_v8 }
 0x859   : > { %v11680_v34 = vmax.f32 %v11647_v35, %v11664_v27  ;;  %11633 = vst.msk [vmem:[#allocation4 + $0xf0] sm:$0xff] %vm323_vm2, %v11601_v1 }
 0x85a   : > { %11697 = vst.msk [vmem:[#allocation5 + $0x68] sm:$0xff] %vm323_vm2, %v11681_v48  ;;  %v11710_v0 = vld [vmem:[#allocation5 + $0x50] ss:$2 sm:$0xff]  ;;  %v11726_v49 = vld [vmem:[#allocation5 + $0x51] ss:$2 sm:$0xff] }
 0x85b   : > { %11696 = vst.msk [vmem:[#allocation5 + $0x60] sm:$0xff] %vm323_vm2, %v11680_v34  ;;  %v11736_v3 = vmax.f32 %v11710_v0, %v11726_v49  ;;  %v11650_v52 = vld [vmem:[#allocation4 + $0xe8] sm:$0xff] }
 0x85c   : > { %v11649_v20 = vld [vmem:[#allocation4 + $0xe0] sm:$0xff] }
 0x85d   : > { %11744 = vst.msk [vmem:[%s19293_s20 + $0x28] sm:$0xff] %vm323_vm2, %v11736_v3 }
 0x85f   : > { %v11667_v17 = vld [vmem:[#allocation4 + $0xf8] sm:$0xff] }
 0x860   : > { %v11683_v41 = vmax.f32 %v11650_v52, %v11667_v17  ;;  %v11666_v4 = vld [vmem:[#allocation4 + $0xf0] sm:$0xff] }
 0x861   : > { %v11682_v50 = vmax.f32 %v11649_v20, %v11666_v4 }
 0x862   : > { %11699 = vst.msk [vmem:[#allocation5 + $0x78] sm:$0xff] %vm323_vm2, %v11683_v41  ;;  %v11712_v28 = vld [vmem:[#allocation5 + $0x60] ss:$2 sm:$0xff]  ;;  %v11728_v53 = vld [vmem:[#allocation5 + $0x61] ss:$2 sm:$0xff] }
 0x863   : > { %11698 = vst.msk [vmem:[#allocation5 + $0x70] sm:$0xff] %vm323_vm2, %v11682_v50  ;;  %v11737_v13 = vmax.f32 %v11712_v28, %v11728_v53 }
 0x865   : > { %11745 = vst.msk [vmem:[%s19293_s20 + $0x30] sm:$0xff] %vm323_vm2, %v11737_v13 }
 0x86a   : > { %v11714_v62 = vld [vmem:[#allocation5 + $0x70] ss:$2 sm:$0xff]  ;;  %v11730_v5 = vld [vmem:[#allocation5 + $0x71] ss:$2 sm:$0xff] }
 0x86b   : > { %v11738_v59 = vmax.f32 %v11714_v62, %v11730_v5 }
 0x86d   : > { %11746 = vst.msk [vmem:[%s19293_s20 + $0x38] sm:$0xff] %vm323_vm2, %v11738_v59 }
 0x86e   : > { %15982 = shalt.err (!%p15979_p3)
}
 0x86f   : > { %s15983_s15 = scalar_lea.hbm %s19374_s10, 1024  ;;  %s15987_s18 = scalar_lea.hbm %s19429_s6, 2048 }
 0x870   : > { %p15984_p4 = scmp.ne.s32.totalorder %s19374_s10, %s15983_s15  ;;  %p15988_p9 = scmp.lt.u32.totalorder %s19374_s10, %s19429_s6 }
 0x871   : > { %p15989_p10 = scmp.lt.u32.totalorder %s15987_s18, %s15983_s15  ;;  %p15991_p12 = scmp.lt.u32.totalorder %s15983_s15, %s19374_s10 }
 0x872   : > { %p15985_p7 = pnand %p15984_p4, %p16110_p5 }
 0x873   : > { %p15990_p11 = por %p15989_p10, %p15988_p9 }
 0x874   : > { %p15986_p8 = pneg %p15985_p7 }
 0x875   : > { %p15992_p13 = por %p15991_p12, %p15990_p11 }
 0x877   : > { %p15993_p0 = pnand %p15992_p13, %p15986_p8 }
 0x879   : > { %15996 = shalt.err (!%p15993_p0)
}
 0x87a   : > { %s16035_s26 = smov 128   ;;  %s16036_s29 = smov 8  }
 0x87b   : > { %15927 = dma.vmem_to_hbm [thread:$0]  (%p16110_p5), %s19376_s28, 1024, %s19374_s10, %s19382_s11, %s16035_s26, %s16035_s26, %s16036_s29  }
 0x87c PF: > { %p15933_p1 = scmp.ge.s32.totalorder %s16031_s24, 2  ;;  %s11776_s9 = sand.u32 1, %s16019_s21  }
 0x87d   : > { %s11777_s25 = scalar_lea.sflag [#allocation7], %s11776_s9 }
 0x87e   : > { %p15930_p2 = pnand %p15933_p1, %p16114_p6 }
 0x880   : > { %16014 = dma.done.wait (!%p15930_p2), %s11777_s25, 1024  }
 0x881   : > { %16016 = vsyncadd (!%p15930_p2), %s11777_s25, 4294966272  ;;  %p16_p3 = scmp.ge.s32.totalorder %s16097_s27, 4   ;;  %s19892_s21 = smov %s16023_s22 }
 0x882   : > { %s19893_s22 = smov %s16027_s23  ;;  %s19894_s23 = smov %s16108_s30 }
 0x883   : > { %s19895_s24 = smov %s16097_s27  ;;  %18 = sbr.rel (!%p16_p3) target bundleno = 3 (0x3), region = 123 }
 0x88a   :  { %11782 = vsyncpa [#allocation7], 1 }
 0x88b   :  { %11784 = vsyncpa [#allocation7 + $0x1], 1 }

</bundles_post_ra>
